<compile_context>
chip_gen: v7x
topology: tpu7x:2x2x1
jax: 0.10.0
libtpu: 0.0.40
codegen_flags: <defaults>
</compile_context>

<pallas_src>
import functools

import numpy as np

import jax
import jax.numpy as jnp
from jax.experimental import pallas as pl
from jax.experimental.pallas import tpu as pltpu


_TB = 8   # images per grid step (sublane batch tile); 7*TB=56 MXU rows, fits vregs


# ----------------------------------------------------------------------------
# host-side, one-time weight packing (runs once, outside the forward pass)
# ----------------------------------------------------------------------------

def _banded_conv(w, width, k_pad):
    """Pack a [O, Cin, 5, 5] conv weight into per-kh banded GEMM matrices.

    A conv-input row `h` is stored as a length-(width*Cin) vector with lane
    index w*Cin + c.  band[kh] is [k_pad, 256] such that  row(h) @ band[kh]
    yields, in lane u*128 + wp*O + o, the kh-slice of the conv output at
    (wo = 2*wp + u, out-channel o).  Summing over kh (with the matching input
    rows) gives the full 5x5 valid convolution of one output row.
    """
    w = np.asarray(w, np.float32)
    O, C, k, _ = w.shape
    wo_n = width - k + 1              # conv output width
    wp_n = wo_n // 2                  # pooled output width
    band = np.zeros((k, k_pad, 256), np.float32)
    for kh in range(k):
        for u in range(2):            # even / odd conv output column
            for wp in range(wp_n):
                for kw in range(k):
                    wi = 2 * wp + u + kw            # input column
                    band[kh, wi * C:(wi + 1) * C,
                         u * 128 + wp * O:u * 128 + (wp + 1) * O] = w[:, :, kh, kw].T
    return band


def _conv_bias_lanes(b, wp_n):
    b = np.asarray(b, np.float32)
    v = np.zeros((1, 128), np.float32)
    v[0, :wp_n * b.size] = np.tile(b, wp_n)         # lane = wp*O + o
    return v


def _fc1_banded(w):
    """fc1 weight [l1, 400] -> [5, 128, 128]; absorbs the NCHW flatten.

    The conv2+pool output row h has lane index wp*16 + o; torch's
    view(-1, 400) flattens as o*25 + h*5 + wp, so permute columns to match.
    """
    w = np.asarray(w, np.float32)
    l1 = w.shape[0]
    w4 = w.reshape(l1, 16, 5, 5)                    # [j, o, h, wp]
    t = np.transpose(w4, (2, 3, 1, 0))              # [h, wp, o, j]
    out = np.zeros((5, 128, 128), np.float32)
    out[:, :80, :l1] = t.reshape(5, 80, l1)
    return out


def _fc_pad_t(w):
    w = np.asarray(w, np.float32)                   # [n_out, n_in]
    out = np.zeros((128, 128), np.float32)
    out[:w.shape[1], :w.shape[0]] = w.T
    return out


def _pad_bias(b):
    b = np.asarray(b, np.float32)
    v = np.zeros((1, 128), np.float32)
    v[0, :b.size] = b
    return v


def prepack_params(params):
    """Pad / transpose / band all weights once; matmul operands -> bf16."""
    assert params["fc1_w"].shape[0] <= 128 and params["fc2_w"].shape[0] <= 128
    f32_parts = {
        "b1": _conv_bias_lanes(params["conv1_b"], 14),
        "b2": _conv_bias_lanes(params["conv2_b"], 5),
        "bf1": _pad_bias(params["fc1_b"]),
        "bf2": _pad_bias(params["fc2_b"]),
        "bf3": _pad_bias(params["fc3_b"]),
    }
    bf16_parts = {
        "w1": _banded_conv(params["conv1_w"], 32, 96),     # [5, 96, 256]
        "w2": _banded_conv(params["conv2_w"], 14, 128),    # [5, 128, 256]
        "wf1": _fc1_banded(params["fc1_w"]),               # [5, 128, 128]
        "wf2": _fc_pad_t(params["fc2_w"]),                 # [128, 128]
        "wf3": _fc_pad_t(params["fc3_w"]),                 # [128, 128]
    }
    packed = {k: jnp.asarray(v, jnp.float32) for k, v in f32_parts.items()}
    packed.update({k: jnp.asarray(v, jnp.bfloat16) for k, v in bf16_parts.items()})
    return packed


# ----------------------------------------------------------------------------
# the fused Pallas kernel (whole forward, TB images per grid step)
# ----------------------------------------------------------------------------

def _net_kernel(x_ref, w1, b1, w2, b2, wf1, bf1, wf2, bf2, wf3, bf3, o_ref, *,
                tb):
    f32, bf16 = jnp.float32, jnp.bfloat16

    def mm(a, b):
        # bf16 MXU inputs, f32 accumulation
        return jnp.dot(a, b, preferred_element_type=f32)

    def conv_relu_pool(window, w_ref, b_ref):
        """Banded row-GEMM conv + bias + ReLU with the 2x2 max-pool fused.

        Lane halves (even/odd conv columns) are pooled per phase before the
        row-phase max, so only one full [rows, 256] f32 accumulator is live.
        Returns bf16 (consumed by the next GEMM).
        """
        halves = []
        for p in range(2):                  # the two conv rows of a pool window
            acc = mm(window(p, 0), w_ref[0])
            for kh in range(1, 5):
                acc = acc + mm(window(p, kh), w_ref[kh])
            halves.append(jnp.maximum(acc[:, :128], acc[:, 128:]))
        m = jnp.maximum(halves[0], halves[1])       # pool over the two conv rows
        return jnp.maximum(m + b_ref[...], 0.0).astype(bf16)

    # ---- conv1 (3->6, 5x5) + ReLU + 2x2 max-pool ----------------------------
    # xs[s][j*tb + b] = image b, row (s + 4*j); bf16, lane = w*3 + c
    xs = [x_ref[0, s] for s in range(4)]                    # each [8*tb, 96]
    # hoisted row windows, one per t = 2*r + p + kh in [0, 8)
    win1 = [xs[t % 4][(t // 4) * tb:(t // 4 + 7) * tb, :] for t in range(8)]
    y1 = []                                 # pooled rows, split by row parity
    for r in range(2):
        y1.append(conv_relu_pool(lambda p, kh, r=r: win1[2 * r + p + kh],
                                 w1, b1))                   # [7*tb, 128]

    # ---- conv2 (6->16, 5x5) + ReLU + 2x2 max-pool ---------------------------
    # hoisted windows, one per t = p + kh in [0, 6)
    win2 = [y1[t % 2][(t // 2) * tb:(t // 2 + 5) * tb, :] for t in range(6)]
    y2 = conv_relu_pool(lambda p, kh: win2[p + kh], w2, b2)  # [5*tb, 128]

    # ---- flatten + fc1/ReLU + fc2/ReLU + fc3 --------------------------------
    z = mm(y2[0:tb, :], wf1[0])             # flatten is folded into wf1
    for h in range(1, 5):
        z = z + mm(y2[h * tb:(h + 1) * tb, :], wf1[h])
    z = jnp.maximum(z + bf1[...], 0.0)
    z = jnp.maximum(mm(z.astype(bf16), wf2[...]) + bf2[...], 0.0)
    z = mm(z.astype(bf16), wf3[...]) + bf3[...]
    o_ref[...] = z                          # dense (tb, 128) f32 store


def _resident(shape):
    n = len(shape)
    return pl.BlockSpec(shape, lambda g: (0,) * n)


@jax.jit
def net_forward(x_nchw, packed):
    B, C, H, W = x_nchw.shape
    assert (C, H, W) == (3, 32, 32)   # fixed by the module's .view(-1, 16*5*5)

    tb = _TB
    G = pl.cdiv(B, tb)
    Bp = G * tb

    # Boundary-only layout change (tiny): NCHW -> per-row vectors (lane = w*C+c)
    # in bf16, grouped into row-mod-4 slabs with the TB images of a grid step
    # stacked image-minor along the sublane axis, so every in-kernel slice is
    # a contiguous sublane window.
    x = jnp.transpose(x_nchw, (0, 2, 3, 1)).reshape(B, H, W * C)
    if Bp != B:
        x = jnp.pad(x, ((0, Bp - B), (0, 0), (0, 0)))
    x = x.astype(jnp.bfloat16)
    x_slabs = (x.reshape(G, tb, 8, 4, W * C)         # [g, b, j, s, lane]
                 .transpose(0, 3, 2, 1, 4)           # [g, s, j, b, lane]
                 .reshape(G, 4, 8 * tb, W * C))      # [g, s, j*tb + b, lane]

    wkeys = ("w1", "b1", "w2", "b2", "wf1", "bf1", "wf2", "bf2", "wf3", "bf3")
    weights = tuple(packed[k] for k in wkeys)

    out = pl.pallas_call(
        functools.partial(_net_kernel, tb=tb),
        out_shape=jax.ShapeDtypeStruct((Bp, 128), jnp.float32),
        grid=(G,),
        in_specs=[pl.BlockSpec((1, 4, 8 * tb, W * C), lambda g: (g, 0, 0, 0))]
                 + [_resident(w.shape) for w in weights],
        out_specs=pl.BlockSpec((tb, 128), lambda g: (g, 0)),
        compiler_params=pltpu.CompilerParams(
            dimension_semantics=("parallel",)),  # split grid steps across TCs on v7x
    )(x_slabs, *weights)
    return out[:B, :10]


# ----------------------------------------------------------------------------
# params, pure-JAX reference, driver
# ----------------------------------------------------------------------------

def init_params(key, l1=120, l2=84):
    ks = jax.random.split(key, 10)

    def w(k, shape, scale):
        return jax.random.normal(k, shape, jnp.float32) * scale

    return {
        "conv1_w": w(ks[0], (6, 3, 5, 5), 0.10),
        "conv1_b": w(ks[1], (6,), 0.10),
        "conv2_w": w(ks[2], (16, 6, 5, 5), 0.10),
        "conv2_b": w(ks[3], (16,), 0.10),
        "fc1_w": w(ks[4], (l1, 16 * 5 * 5), 0.05),
        "fc1_b": w(ks[5], (l1,), 0.05),
        "fc2_w": w(ks[6], (l2, l1), 0.05),
        "fc2_b": w(ks[7], (l2,), 0.05),
        "fc3_w": w(ks[8], (10, l2), 0.05),
        "fc3_b": w(ks[9], (10,), 0.05),
    }


def net_reference(x, params):
    dn = ("NCHW", "OIHW", "NCHW")
    hi = jax.lax.Precision.HIGHEST

    def pool(y):
        B, C, H, W = y.shape
        return y.reshape(B, C, H // 2, 2, W // 2, 2).max(axis=(3, 5))

    y = jax.lax.conv_general_dilated(x, params["conv1_w"], (1, 1), "VALID",
                                     dimension_numbers=dn, precision=hi)
    y = pool(jax.nn.relu(y + params["conv1_b"][None, :, None, None]))
    y = jax.lax.conv_general_dilated(y, params["conv2_w"], (1, 1), "VALID",
                                     dimension_numbers=dn, precision=hi)
    y = pool(jax.nn.relu(y + params["conv2_b"][None, :, None, None]))
    y = y.reshape(y.shape[0], -1)
    y = jax.nn.relu(jnp.dot(y, params["fc1_w"].T, precision=hi) + params["fc1_b"])
    y = jax.nn.relu(jnp.dot(y, params["fc2_w"].T, precision=hi) + params["fc2_b"])
    return jnp.dot(y, params["fc3_w"].T, precision=hi) + params["fc3_b"]


if __name__ == "__main__":
    key = jax.random.PRNGKey(0)
    k_x, k_p = jax.random.split(key)
    # The module's .view(-1, 16*5*5) pins the spatial size to 32x32 (CIFAR-10).
    # batch=16 -> 2 grid steps of TB=8 (even step count feeds both v7x cores).
    x = jax.random.normal(k_x, (16, 3, 32, 32), jnp.float32)
    params = init_params(k_p)
    packed = prepack_params(params)     # one-time padding/banding, not per step

    out = net_forward(x, packed)
    out = jax.block_until_ready(out)
    assert out.shape == (16, 10), out.shape

    # sanity check vs. a plain-JAX f32 reference (kernel matmuls are bf16 with
    # f32 accumulation, hence the loose tolerance)
    ref = net_reference(x, params)
    assert jnp.allclose(out, ref, rtol=3e-2, atol=3e-2), \
        float(jnp.max(jnp.abs(out - ref)))
    print("KERNEL_OK")
</pallas_src>

<mosaic_0001>
module attributes {stable_mosaic.version = 11 : i64} {
  func.func @_net_kernel(%arg0: i32, %arg1: memref<1x4x64x96xbf16, #tpu.memory_space<vmem>>, %arg2: memref<5x96x256xbf16, #tpu.memory_space<vmem>>, %arg3: memref<1x128xf32, #tpu.memory_space<vmem>>, %arg4: memref<5x128x256xbf16, #tpu.memory_space<vmem>>, %arg5: memref<1x128xf32, #tpu.memory_space<vmem>>, %arg6: memref<5x128x128xbf16, #tpu.memory_space<vmem>>, %arg7: memref<1x128xf32, #tpu.memory_space<vmem>>, %arg8: memref<128x128xbf16, #tpu.memory_space<vmem>>, %arg9: memref<1x128xf32, #tpu.memory_space<vmem>>, %arg10: memref<128x128xbf16, #tpu.memory_space<vmem>>, %arg11: memref<1x128xf32, #tpu.memory_space<vmem>>, %arg12: memref<8x128xf32, #tpu.memory_space<vmem>>) attributes {dimension_semantics = [#tpu.dimension_semantics<parallel>], iteration_bounds = array<i64: 2>, scalar_prefetch = 0 : i64, scratch_operands = 0 : i64, tpu.core_type = #tpu.core_type<tc>, window_params = [{transform_indices = @transform_0, window_bounds = array<i64: 1, 4, 64, 96>}, {pipeline_mode = #tpu.pipeline_mode<synchronous>, transform_indices = @transform_1, window_bounds = array<i64: 5, 96, 256>}, {pipeline_mode = #tpu.pipeline_mode<synchronous>, transform_indices = @transform_2, window_bounds = array<i64: 1, 128>}, {pipeline_mode = #tpu.pipeline_mode<synchronous>, transform_indices = @transform_3, window_bounds = array<i64: 5, 128, 256>}, {pipeline_mode = #tpu.pipeline_mode<synchronous>, transform_indices = @transform_4, window_bounds = array<i64: 1, 128>}, {pipeline_mode = #tpu.pipeline_mode<synchronous>, transform_indices = @transform_5, window_bounds = array<i64: 5, 128, 128>}, {pipeline_mode = #tpu.pipeline_mode<synchronous>, transform_indices = @transform_6, window_bounds = array<i64: 1, 128>}, {pipeline_mode = #tpu.pipeline_mode<synchronous>, transform_indices = @transform_7, window_bounds = array<i64: 128, 128>}, {pipeline_mode = #tpu.pipeline_mode<synchronous>, transform_indices = @transform_8, window_bounds = array<i64: 1, 128>}, {pipeline_mode = #tpu.pipeline_mode<synchronous>, transform_indices = @transform_9, window_bounds = array<i64: 128, 128>}, {pipeline_mode = #tpu.pipeline_mode<synchronous>, transform_indices = @transform_10, window_bounds = array<i64: 1, 128>}, {transform_indices = @transform_11, window_bounds = array<i64: 8, 128>}]} {
    %c0 = arith.constant 0 : index
    %c0_0 = arith.constant 0 : index
    %c0_1 = arith.constant 0 : index
    %c0_2 = arith.constant 0 : index
    %0 = vector.load %arg1[%c0, %c0_0, %c0_1, %c0_2] : memref<1x4x64x96xbf16, #tpu.memory_space<vmem>>, vector<1x1x64x96xbf16>
    %1 = vector.shape_cast %0 : vector<1x1x64x96xbf16> to vector<64x96xbf16>
    %c0_3 = arith.constant 0 : index
    %c1 = arith.constant 1 : index
    %c0_4 = arith.constant 0 : index
    %c0_5 = arith.constant 0 : index
    %2 = vector.load %arg1[%c0_3, %c1, %c0_4, %c0_5] : memref<1x4x64x96xbf16, #tpu.memory_space<vmem>>, vector<1x1x64x96xbf16>
    %3 = vector.shape_cast %2 : vector<1x1x64x96xbf16> to vector<64x96xbf16>
    %c0_6 = arith.constant 0 : index
    %c2 = arith.constant 2 : index
    %c0_7 = arith.constant 0 : index
    %c0_8 = arith.constant 0 : index
    %4 = vector.load %arg1[%c0_6, %c2, %c0_7, %c0_8] : memref<1x4x64x96xbf16, #tpu.memory_space<vmem>>, vector<1x1x64x96xbf16>
    %5 = vector.shape_cast %4 : vector<1x1x64x96xbf16> to vector<64x96xbf16>
    %c0_9 = arith.constant 0 : index
    %c3 = arith.constant 3 : index
    %c0_10 = arith.constant 0 : index
    %c0_11 = arith.constant 0 : index
    %6 = vector.load %arg1[%c0_9, %c3, %c0_10, %c0_11] : memref<1x4x64x96xbf16, #tpu.memory_space<vmem>>, vector<1x1x64x96xbf16>
    %7 = vector.shape_cast %6 : vector<1x1x64x96xbf16> to vector<64x96xbf16>
    %8 = vector.extract_strided_slice %1 {offsets = [0, 0], sizes = [56, 96], strides = [1, 1]} : vector<64x96xbf16> to vector<56x96xbf16>
    %9 = vector.extract_strided_slice %3 {offsets = [0, 0], sizes = [56, 96], strides = [1, 1]} : vector<64x96xbf16> to vector<56x96xbf16>
    %10 = vector.extract_strided_slice %5 {offsets = [0, 0], sizes = [56, 96], strides = [1, 1]} : vector<64x96xbf16> to vector<56x96xbf16>
    %11 = vector.extract_strided_slice %7 {offsets = [0, 0], sizes = [56, 96], strides = [1, 1]} : vector<64x96xbf16> to vector<56x96xbf16>
    %12 = vector.extract_strided_slice %1 {offsets = [8, 0], sizes = [56, 96], strides = [1, 1]} : vector<64x96xbf16> to vector<56x96xbf16>
    %13 = vector.extract_strided_slice %3 {offsets = [8, 0], sizes = [56, 96], strides = [1, 1]} : vector<64x96xbf16> to vector<56x96xbf16>
    %14 = vector.extract_strided_slice %5 {offsets = [8, 0], sizes = [56, 96], strides = [1, 1]} : vector<64x96xbf16> to vector<56x96xbf16>
    %15 = vector.extract_strided_slice %7 {offsets = [8, 0], sizes = [56, 96], strides = [1, 1]} : vector<64x96xbf16> to vector<56x96xbf16>
    %c0_12 = arith.constant 0 : index
    %c0_13 = arith.constant 0 : index
    %c0_14 = arith.constant 0 : index
    %16 = vector.load %arg2[%c0_12, %c0_13, %c0_14] : memref<5x96x256xbf16, #tpu.memory_space<vmem>>, vector<1x96x256xbf16>
    %17 = vector.shape_cast %16 : vector<1x96x256xbf16> to vector<96x256xbf16>
    %cst = arith.constant dense<0.000000e+00> : vector<56x256xf32>
    %18 = tpu.matmul %8, %17, %cst {dimension_numbers = #tpu.dot_dimension_numbers<[1], [0], [0], [1], [0, 0, 1, 1], [], []>} : vector<56x96xbf16>, vector<96x256xbf16>, vector<56x256xf32> -> vector<56x256xf32>
    %c1_15 = arith.constant 1 : index
    %c0_16 = arith.constant 0 : index
    %c0_17 = arith.constant 0 : index
    %19 = vector.load %arg2[%c1_15, %c0_16, %c0_17] : memref<5x96x256xbf16, #tpu.memory_space<vmem>>, vector<1x96x256xbf16>
    %20 = vector.shape_cast %19 : vector<1x96x256xbf16> to vector<96x256xbf16>
    %cst_18 = arith.constant dense<0.000000e+00> : vector<56x256xf32>
    %21 = tpu.matmul %9, %20, %cst_18 {dimension_numbers = #tpu.dot_dimension_numbers<[1], [0], [0], [1], [0, 0, 1, 1], [], []>} : vector<56x96xbf16>, vector<96x256xbf16>, vector<56x256xf32> -> vector<56x256xf32>
    %22 = arith.addf %18, %21 : vector<56x256xf32>
    %c2_19 = arith.constant 2 : index
    %c0_20 = arith.constant 0 : index
    %c0_21 = arith.constant 0 : index
    %23 = vector.load %arg2[%c2_19, %c0_20, %c0_21] : memref<5x96x256xbf16, #tpu.memory_space<vmem>>, vector<1x96x256xbf16>
    %24 = vector.shape_cast %23 : vector<1x96x256xbf16> to vector<96x256xbf16>
    %cst_22 = arith.constant dense<0.000000e+00> : vector<56x256xf32>
    %25 = tpu.matmul %10, %24, %cst_22 {dimension_numbers = #tpu.dot_dimension_numbers<[1], [0], [0], [1], [0, 0, 1, 1], [], []>} : vector<56x96xbf16>, vector<96x256xbf16>, vector<56x256xf32> -> vector<56x256xf32>
    %26 = arith.addf %22, %25 : vector<56x256xf32>
    %c3_23 = arith.constant 3 : index
    %c0_24 = arith.constant 0 : index
    %c0_25 = arith.constant 0 : index
    %27 = vector.load %arg2[%c3_23, %c0_24, %c0_25] : memref<5x96x256xbf16, #tpu.memory_space<vmem>>, vector<1x96x256xbf16>
    %28 = vector.shape_cast %27 : vector<1x96x256xbf16> to vector<96x256xbf16>
    %cst_26 = arith.constant dense<0.000000e+00> : vector<56x256xf32>
    %29 = tpu.matmul %11, %28, %cst_26 {dimension_numbers = #tpu.dot_dimension_numbers<[1], [0], [0], [1], [0, 0, 1, 1], [], []>} : vector<56x96xbf16>, vector<96x256xbf16>, vector<56x256xf32> -> vector<56x256xf32>
    %30 = arith.addf %26, %29 : vector<56x256xf32>
    %c4 = arith.constant 4 : index
    %c0_27 = arith.constant 0 : index
    %c0_28 = arith.constant 0 : index
    %31 = vector.load %arg2[%c4, %c0_27, %c0_28] : memref<5x96x256xbf16, #tpu.memory_space<vmem>>, vector<1x96x256xbf16>
    %32 = vector.shape_cast %31 : vector<1x96x256xbf16> to vector<96x256xbf16>
    %cst_29 = arith.constant dense<0.000000e+00> : vector<56x256xf32>
    %33 = tpu.matmul %12, %32, %cst_29 {dimension_numbers = #tpu.dot_dimension_numbers<[1], [0], [0], [1], [0, 0, 1, 1], [], []>} : vector<56x96xbf16>, vector<96x256xbf16>, vector<56x256xf32> -> vector<56x256xf32>
    %34 = arith.addf %30, %33 : vector<56x256xf32>
    %35 = vector.extract_strided_slice %34 {offsets = [0, 0], sizes = [56, 128], strides = [1, 1]} : vector<56x256xf32> to vector<56x128xf32>
    %36 = vector.extract_strided_slice %34 {offsets = [0, 128], sizes = [56, 128], strides = [1, 1]} : vector<56x256xf32> to vector<56x128xf32>
    %37 = arith.maximumf %35, %36 : vector<56x128xf32>
    %c0_30 = arith.constant 0 : index
    %c0_31 = arith.constant 0 : index
    %c0_32 = arith.constant 0 : index
    %38 = vector.load %arg2[%c0_30, %c0_31, %c0_32] : memref<5x96x256xbf16, #tpu.memory_space<vmem>>, vector<1x96x256xbf16>
    %39 = vector.shape_cast %38 : vector<1x96x256xbf16> to vector<96x256xbf16>
    %cst_33 = arith.constant dense<0.000000e+00> : vector<56x256xf32>
    %40 = tpu.matmul %9, %39, %cst_33 {dimension_numbers = #tpu.dot_dimension_numbers<[1], [0], [0], [1], [0, 0, 1, 1], [], []>} : vector<56x96xbf16>, vector<96x256xbf16>, vector<56x256xf32> -> vector<56x256xf32>
    %c1_34 = arith.constant 1 : index
    %c0_35 = arith.constant 0 : index
    %c0_36 = arith.constant 0 : index
    %41 = vector.load %arg2[%c1_34, %c0_35, %c0_36] : memref<5x96x256xbf16, #tpu.memory_space<vmem>>, vector<1x96x256xbf16>
    %42 = vector.shape_cast %41 : vector<1x96x256xbf16> to vector<96x256xbf16>
    %cst_37 = arith.constant dense<0.000000e+00> : vector<56x256xf32>
    %43 = tpu.matmul %10, %42, %cst_37 {dimension_numbers = #tpu.dot_dimension_numbers<[1], [0], [0], [1], [0, 0, 1, 1], [], []>} : vector<56x96xbf16>, vector<96x256xbf16>, vector<56x256xf32> -> vector<56x256xf32>
    %44 = arith.addf %40, %43 : vector<56x256xf32>
    %c2_38 = arith.constant 2 : index
    %c0_39 = arith.constant 0 : index
    %c0_40 = arith.constant 0 : index
    %45 = vector.load %arg2[%c2_38, %c0_39, %c0_40] : memref<5x96x256xbf16, #tpu.memory_space<vmem>>, vector<1x96x256xbf16>
    %46 = vector.shape_cast %45 : vector<1x96x256xbf16> to vector<96x256xbf16>
    %cst_41 = arith.constant dense<0.000000e+00> : vector<56x256xf32>
    %47 = tpu.matmul %11, %46, %cst_41 {dimension_numbers = #tpu.dot_dimension_numbers<[1], [0], [0], [1], [0, 0, 1, 1], [], []>} : vector<56x96xbf16>, vector<96x256xbf16>, vector<56x256xf32> -> vector<56x256xf32>
    %48 = arith.addf %44, %47 : vector<56x256xf32>
    %c3_42 = arith.constant 3 : index
    %c0_43 = arith.constant 0 : index
    %c0_44 = arith.constant 0 : index
    %49 = vector.load %arg2[%c3_42, %c0_43, %c0_44] : memref<5x96x256xbf16, #tpu.memory_space<vmem>>, vector<1x96x256xbf16>
    %50 = vector.shape_cast %49 : vector<1x96x256xbf16> to vector<96x256xbf16>
    %cst_45 = arith.constant dense<0.000000e+00> : vector<56x256xf32>
    %51 = tpu.matmul %12, %50, %cst_45 {dimension_numbers = #tpu.dot_dimension_numbers<[1], [0], [0], [1], [0, 0, 1, 1], [], []>} : vector<56x96xbf16>, vector<96x256xbf16>, vector<56x256xf32> -> vector<56x256xf32>
    %52 = arith.addf %48, %51 : vector<56x256xf32>
    %c4_46 = arith.constant 4 : index
    %c0_47 = arith.constant 0 : index
    %c0_48 = arith.constant 0 : index
    %53 = vector.load %arg2[%c4_46, %c0_47, %c0_48] : memref<5x96x256xbf16, #tpu.memory_space<vmem>>, vector<1x96x256xbf16>
    %54 = vector.shape_cast %53 : vector<1x96x256xbf16> to vector<96x256xbf16>
    %cst_49 = arith.constant dense<0.000000e+00> : vector<56x256xf32>
    %55 = tpu.matmul %13, %54, %cst_49 {dimension_numbers = #tpu.dot_dimension_numbers<[1], [0], [0], [1], [0, 0, 1, 1], [], []>} : vector<56x96xbf16>, vector<96x256xbf16>, vector<56x256xf32> -> vector<56x256xf32>
    %56 = arith.addf %52, %55 : vector<56x256xf32>
    %57 = vector.extract_strided_slice %56 {offsets = [0, 0], sizes = [56, 128], strides = [1, 1]} : vector<56x256xf32> to vector<56x128xf32>
    %58 = vector.extract_strided_slice %56 {offsets = [0, 128], sizes = [56, 128], strides = [1, 1]} : vector<56x256xf32> to vector<56x128xf32>
    %59 = arith.maximumf %57, %58 : vector<56x128xf32>
    %60 = arith.maximumf %37, %59 : vector<56x128xf32>
    %c0_50 = arith.constant 0 : index
    %c0_51 = arith.constant 0 : index
    %61 = vector.load %arg3[%c0_50, %c0_51] : memref<1x128xf32, #tpu.memory_space<vmem>>, vector<1x128xf32>
    %62 = vector.broadcast %61 : vector<1x128xf32> to vector<56x128xf32>
    %63 = arith.addf %60, %62 : vector<56x128xf32>
    %cst_52 = arith.constant 0.000000e+00 : f32
    %64 = vector.broadcast %cst_52 : f32 to vector<56x128xf32>
    %65 = arith.maximumf %63, %64 : vector<56x128xf32>
    %66 = arith.truncf %65 : vector<56x128xf32> to vector<56x128xbf16>
    %c0_53 = arith.constant 0 : index
    %c0_54 = arith.constant 0 : index
    %c0_55 = arith.constant 0 : index
    %67 = vector.load %arg2[%c0_53, %c0_54, %c0_55] : memref<5x96x256xbf16, #tpu.memory_space<vmem>>, vector<1x96x256xbf16>
    %68 = vector.shape_cast %67 : vector<1x96x256xbf16> to vector<96x256xbf16>
    %cst_56 = arith.constant dense<0.000000e+00> : vector<56x256xf32>
    %69 = tpu.matmul %10, %68, %cst_56 {dimension_numbers = #tpu.dot_dimension_numbers<[1], [0], [0], [1], [0, 0, 1, 1], [], []>} : vector<56x96xbf16>, vector<96x256xbf16>, vector<56x256xf32> -> vector<56x256xf32>
    %c1_57 = arith.constant 1 : index
    %c0_58 = arith.constant 0 : index
    %c0_59 = arith.constant 0 : index
    %70 = vector.load %arg2[%c1_57, %c0_58, %c0_59] : memref<5x96x256xbf16, #tpu.memory_space<vmem>>, vector<1x96x256xbf16>
    %71 = vector.shape_cast %70 : vector<1x96x256xbf16> to vector<96x256xbf16>
    %cst_60 = arith.constant dense<0.000000e+00> : vector<56x256xf32>
    %72 = tpu.matmul %11, %71, %cst_60 {dimension_numbers = #tpu.dot_dimension_numbers<[1], [0], [0], [1], [0, 0, 1, 1], [], []>} : vector<56x96xbf16>, vector<96x256xbf16>, vector<56x256xf32> -> vector<56x256xf32>
    %73 = arith.addf %69, %72 : vector<56x256xf32>
    %c2_61 = arith.constant 2 : index
    %c0_62 = arith.constant 0 : index
    %c0_63 = arith.constant 0 : index
    %74 = vector.load %arg2[%c2_61, %c0_62, %c0_63] : memref<5x96x256xbf16, #tpu.memory_space<vmem>>, vector<1x96x256xbf16>
    %75 = vector.shape_cast %74 : vector<1x96x256xbf16> to vector<96x256xbf16>
    %cst_64 = arith.constant dense<0.000000e+00> : vector<56x256xf32>
    %76 = tpu.matmul %12, %75, %cst_64 {dimension_numbers = #tpu.dot_dimension_numbers<[1], [0], [0], [1], [0, 0, 1, 1], [], []>} : vector<56x96xbf16>, vector<96x256xbf16>, vector<56x256xf32> -> vector<56x256xf32>
    %77 = arith.addf %73, %76 : vector<56x256xf32>
    %c3_65 = arith.constant 3 : index
    %c0_66 = arith.constant 0 : index
    %c0_67 = arith.constant 0 : index
    %78 = vector.load %arg2[%c3_65, %c0_66, %c0_67] : memref<5x96x256xbf16, #tpu.memory_space<vmem>>, vector<1x96x256xbf16>
    %79 = vector.shape_cast %78 : vector<1x96x256xbf16> to vector<96x256xbf16>
    %cst_68 = arith.constant dense<0.000000e+00> : vector<56x256xf32>
    %80 = tpu.matmul %13, %79, %cst_68 {dimension_numbers = #tpu.dot_dimension_numbers<[1], [0], [0], [1], [0, 0, 1, 1], [], []>} : vector<56x96xbf16>, vector<96x256xbf16>, vector<56x256xf32> -> vector<56x256xf32>
    %81 = arith.addf %77, %80 : vector<56x256xf32>
    %c4_69 = arith.constant 4 : index
    %c0_70 = arith.constant 0 : index
    %c0_71 = arith.constant 0 : index
    %82 = vector.load %arg2[%c4_69, %c0_70, %c0_71] : memref<5x96x256xbf16, #tpu.memory_space<vmem>>, vector<1x96x256xbf16>
    %83 = vector.shape_cast %82 : vector<1x96x256xbf16> to vector<96x256xbf16>
    %cst_72 = arith.constant dense<0.000000e+00> : vector<56x256xf32>
    %84 = tpu.matmul %14, %83, %cst_72 {dimension_numbers = #tpu.dot_dimension_numbers<[1], [0], [0], [1], [0, 0, 1, 1], [], []>} : vector<56x96xbf16>, vector<96x256xbf16>, vector<56x256xf32> -> vector<56x256xf32>
    %85 = arith.addf %81, %84 : vector<56x256xf32>
    %86 = vector.extract_strided_slice %85 {offsets = [0, 0], sizes = [56, 128], strides = [1, 1]} : vector<56x256xf32> to vector<56x128xf32>
    %87 = vector.extract_strided_slice %85 {offsets = [0, 128], sizes = [56, 128], strides = [1, 1]} : vector<56x256xf32> to vector<56x128xf32>
    %88 = arith.maximumf %86, %87 : vector<56x128xf32>
    %c0_73 = arith.constant 0 : index
    %c0_74 = arith.constant 0 : index
    %c0_75 = arith.constant 0 : index
    %89 = vector.load %arg2[%c0_73, %c0_74, %c0_75] : memref<5x96x256xbf16, #tpu.memory_space<vmem>>, vector<1x96x256xbf16>
    %90 = vector.shape_cast %89 : vector<1x96x256xbf16> to vector<96x256xbf16>
    %cst_76 = arith.constant dense<0.000000e+00> : vector<56x256xf32>
    %91 = tpu.matmul %11, %90, %cst_76 {dimension_numbers = #tpu.dot_dimension_numbers<[1], [0], [0], [1], [0, 0, 1, 1], [], []>} : vector<56x96xbf16>, vector<96x256xbf16>, vector<56x256xf32> -> vector<56x256xf32>
    %c1_77 = arith.constant 1 : index
    %c0_78 = arith.constant 0 : index
    %c0_79 = arith.constant 0 : index
    %92 = vector.load %arg2[%c1_77, %c0_78, %c0_79] : memref<5x96x256xbf16, #tpu.memory_space<vmem>>, vector<1x96x256xbf16>
    %93 = vector.shape_cast %92 : vector<1x96x256xbf16> to vector<96x256xbf16>
    %cst_80 = arith.constant dense<0.000000e+00> : vector<56x256xf32>
    %94 = tpu.matmul %12, %93, %cst_80 {dimension_numbers = #tpu.dot_dimension_numbers<[1], [0], [0], [1], [0, 0, 1, 1], [], []>} : vector<56x96xbf16>, vector<96x256xbf16>, vector<56x256xf32> -> vector<56x256xf32>
    %95 = arith.addf %91, %94 : vector<56x256xf32>
    %c2_81 = arith.constant 2 : index
    %c0_82 = arith.constant 0 : index
    %c0_83 = arith.constant 0 : index
    %96 = vector.load %arg2[%c2_81, %c0_82, %c0_83] : memref<5x96x256xbf16, #tpu.memory_space<vmem>>, vector<1x96x256xbf16>
    %97 = vector.shape_cast %96 : vector<1x96x256xbf16> to vector<96x256xbf16>
    %cst_84 = arith.constant dense<0.000000e+00> : vector<56x256xf32>
    %98 = tpu.matmul %13, %97, %cst_84 {dimension_numbers = #tpu.dot_dimension_numbers<[1], [0], [0], [1], [0, 0, 1, 1], [], []>} : vector<56x96xbf16>, vector<96x256xbf16>, vector<56x256xf32> -> vector<56x256xf32>
    %99 = arith.addf %95, %98 : vector<56x256xf32>
    %c3_85 = arith.constant 3 : index
    %c0_86 = arith.constant 0 : index
    %c0_87 = arith.constant 0 : index
    %100 = vector.load %arg2[%c3_85, %c0_86, %c0_87] : memref<5x96x256xbf16, #tpu.memory_space<vmem>>, vector<1x96x256xbf16>
    %101 = vector.shape_cast %100 : vector<1x96x256xbf16> to vector<96x256xbf16>
    %cst_88 = arith.constant dense<0.000000e+00> : vector<56x256xf32>
    %102 = tpu.matmul %14, %101, %cst_88 {dimension_numbers = #tpu.dot_dimension_numbers<[1], [0], [0], [1], [0, 0, 1, 1], [], []>} : vector<56x96xbf16>, vector<96x256xbf16>, vector<56x256xf32> -> vector<56x256xf32>
    %103 = arith.addf %99, %102 : vector<56x256xf32>
    %c4_89 = arith.constant 4 : index
    %c0_90 = arith.constant 0 : index
    %c0_91 = arith.constant 0 : index
    %104 = vector.load %arg2[%c4_89, %c0_90, %c0_91] : memref<5x96x256xbf16, #tpu.memory_space<vmem>>, vector<1x96x256xbf16>
    %105 = vector.shape_cast %104 : vector<1x96x256xbf16> to vector<96x256xbf16>
    %cst_92 = arith.constant dense<0.000000e+00> : vector<56x256xf32>
    %106 = tpu.matmul %15, %105, %cst_92 {dimension_numbers = #tpu.dot_dimension_numbers<[1], [0], [0], [1], [0, 0, 1, 1], [], []>} : vector<56x96xbf16>, vector<96x256xbf16>, vector<56x256xf32> -> vector<56x256xf32>
    %107 = arith.addf %103, %106 : vector<56x256xf32>
    %108 = vector.extract_strided_slice %107 {offsets = [0, 0], sizes = [56, 128], strides = [1, 1]} : vector<56x256xf32> to vector<56x128xf32>
    %109 = vector.extract_strided_slice %107 {offsets = [0, 128], sizes = [56, 128], strides = [1, 1]} : vector<56x256xf32> to vector<56x128xf32>
    %110 = arith.maximumf %108, %109 : vector<56x128xf32>
    %111 = arith.maximumf %88, %110 : vector<56x128xf32>
    %c0_93 = arith.constant 0 : index
    %c0_94 = arith.constant 0 : index
    %112 = vector.load %arg3[%c0_93, %c0_94] : memref<1x128xf32, #tpu.memory_space<vmem>>, vector<1x128xf32>
    %113 = vector.broadcast %112 : vector<1x128xf32> to vector<56x128xf32>
    %114 = arith.addf %111, %113 : vector<56x128xf32>
    %cst_95 = arith.constant 0.000000e+00 : f32
    %115 = vector.broadcast %cst_95 : f32 to vector<56x128xf32>
    %116 = arith.maximumf %114, %115 : vector<56x128xf32>
    %117 = arith.truncf %116 : vector<56x128xf32> to vector<56x128xbf16>
    %118 = vector.extract_strided_slice %66 {offsets = [0, 0], sizes = [40, 128], strides = [1, 1]} : vector<56x128xbf16> to vector<40x128xbf16>
    %119 = vector.extract_strided_slice %117 {offsets = [0, 0], sizes = [40, 128], strides = [1, 1]} : vector<56x128xbf16> to vector<40x128xbf16>
    %120 = vector.extract_strided_slice %66 {offsets = [8, 0], sizes = [40, 128], strides = [1, 1]} : vector<56x128xbf16> to vector<40x128xbf16>
    %121 = vector.extract_strided_slice %117 {offsets = [8, 0], sizes = [40, 128], strides = [1, 1]} : vector<56x128xbf16> to vector<40x128xbf16>
    %122 = vector.extract_strided_slice %66 {offsets = [16, 0], sizes = [40, 128], strides = [1, 1]} : vector<56x128xbf16> to vector<40x128xbf16>
    %123 = vector.extract_strided_slice %117 {offsets = [16, 0], sizes = [40, 128], strides = [1, 1]} : vector<56x128xbf16> to vector<40x128xbf16>
    %c0_96 = arith.constant 0 : index
    %c0_97 = arith.constant 0 : index
    %c0_98 = arith.constant 0 : index
    %124 = vector.load %arg4[%c0_96, %c0_97, %c0_98] : memref<5x128x256xbf16, #tpu.memory_space<vmem>>, vector<1x128x256xbf16>
    %125 = vector.shape_cast %124 : vector<1x128x256xbf16> to vector<128x256xbf16>
    %cst_99 = arith.constant dense<0.000000e+00> : vector<40x256xf32>
    %126 = tpu.matmul %118, %125, %cst_99 {dimension_numbers = #tpu.dot_dimension_numbers<[1], [0], [0], [1], [0, 0, 1, 1], [], []>} : vector<40x128xbf16>, vector<128x256xbf16>, vector<40x256xf32> -> vector<40x256xf32>
    %c1_100 = arith.constant 1 : index
    %c0_101 = arith.constant 0 : index
    %c0_102 = arith.constant 0 : index
    %127 = vector.load %arg4[%c1_100, %c0_101, %c0_102] : memref<5x128x256xbf16, #tpu.memory_space<vmem>>, vector<1x128x256xbf16>
    %128 = vector.shape_cast %127 : vector<1x128x256xbf16> to vector<128x256xbf16>
    %cst_103 = arith.constant dense<0.000000e+00> : vector<40x256xf32>
    %129 = tpu.matmul %119, %128, %cst_103 {dimension_numbers = #tpu.dot_dimension_numbers<[1], [0], [0], [1], [0, 0, 1, 1], [], []>} : vector<40x128xbf16>, vector<128x256xbf16>, vector<40x256xf32> -> vector<40x256xf32>
    %130 = arith.addf %126, %129 : vector<40x256xf32>
    %c2_104 = arith.constant 2 : index
    %c0_105 = arith.constant 0 : index
    %c0_106 = arith.constant 0 : index
    %131 = vector.load %arg4[%c2_104, %c0_105, %c0_106] : memref<5x128x256xbf16, #tpu.memory_space<vmem>>, vector<1x128x256xbf16>
    %132 = vector.shape_cast %131 : vector<1x128x256xbf16> to vector<128x256xbf16>
    %cst_107 = arith.constant dense<0.000000e+00> : vector<40x256xf32>
    %133 = tpu.matmul %120, %132, %cst_107 {dimension_numbers = #tpu.dot_dimension_numbers<[1], [0], [0], [1], [0, 0, 1, 1], [], []>} : vector<40x128xbf16>, vector<128x256xbf16>, vector<40x256xf32> -> vector<40x256xf32>
    %134 = arith.addf %130, %133 : vector<40x256xf32>
    %c3_108 = arith.constant 3 : index
    %c0_109 = arith.constant 0 : index
    %c0_110 = arith.constant 0 : index
    %135 = vector.load %arg4[%c3_108, %c0_109, %c0_110] : memref<5x128x256xbf16, #tpu.memory_space<vmem>>, vector<1x128x256xbf16>
    %136 = vector.shape_cast %135 : vector<1x128x256xbf16> to vector<128x256xbf16>
    %cst_111 = arith.constant dense<0.000000e+00> : vector<40x256xf32>
    %137 = tpu.matmul %121, %136, %cst_111 {dimension_numbers = #tpu.dot_dimension_numbers<[1], [0], [0], [1], [0, 0, 1, 1], [], []>} : vector<40x128xbf16>, vector<128x256xbf16>, vector<40x256xf32> -> vector<40x256xf32>
    %138 = arith.addf %134, %137 : vector<40x256xf32>
    %c4_112 = arith.constant 4 : index
    %c0_113 = arith.constant 0 : index
    %c0_114 = arith.constant 0 : index
    %139 = vector.load %arg4[%c4_112, %c0_113, %c0_114] : memref<5x128x256xbf16, #tpu.memory_space<vmem>>, vector<1x128x256xbf16>
    %140 = vector.shape_cast %139 : vector<1x128x256xbf16> to vector<128x256xbf16>
    %cst_115 = arith.constant dense<0.000000e+00> : vector<40x256xf32>
    %141 = tpu.matmul %122, %140, %cst_115 {dimension_numbers = #tpu.dot_dimension_numbers<[1], [0], [0], [1], [0, 0, 1, 1], [], []>} : vector<40x128xbf16>, vector<128x256xbf16>, vector<40x256xf32> -> vector<40x256xf32>
    %142 = arith.addf %138, %141 : vector<40x256xf32>
    %143 = vector.extract_strided_slice %142 {offsets = [0, 0], sizes = [40, 128], strides = [1, 1]} : vector<40x256xf32> to vector<40x128xf32>
    %144 = vector.extract_strided_slice %142 {offsets = [0, 128], sizes = [40, 128], strides = [1, 1]} : vector<40x256xf32> to vector<40x128xf32>
    %145 = arith.maximumf %143, %144 : vector<40x128xf32>
    %c0_116 = arith.constant 0 : index
    %c0_117 = arith.constant 0 : index
    %c0_118 = arith.constant 0 : index
    %146 = vector.load %arg4[%c0_116, %c0_117, %c0_118] : memref<5x128x256xbf16, #tpu.memory_space<vmem>>, vector<1x128x256xbf16>
    %147 = vector.shape_cast %146 : vector<1x128x256xbf16> to vector<128x256xbf16>
    %cst_119 = arith.constant dense<0.000000e+00> : vector<40x256xf32>
    %148 = tpu.matmul %119, %147, %cst_119 {dimension_numbers = #tpu.dot_dimension_numbers<[1], [0], [0], [1], [0, 0, 1, 1], [], []>} : vector<40x128xbf16>, vector<128x256xbf16>, vector<40x256xf32> -> vector<40x256xf32>
    %c1_120 = arith.constant 1 : index
    %c0_121 = arith.constant 0 : index
    %c0_122 = arith.constant 0 : index
    %149 = vector.load %arg4[%c1_120, %c0_121, %c0_122] : memref<5x128x256xbf16, #tpu.memory_space<vmem>>, vector<1x128x256xbf16>
    %150 = vector.shape_cast %149 : vector<1x128x256xbf16> to vector<128x256xbf16>
    %cst_123 = arith.constant dense<0.000000e+00> : vector<40x256xf32>
    %151 = tpu.matmul %120, %150, %cst_123 {dimension_numbers = #tpu.dot_dimension_numbers<[1], [0], [0], [1], [0, 0, 1, 1], [], []>} : vector<40x128xbf16>, vector<128x256xbf16>, vector<40x256xf32> -> vector<40x256xf32>
    %152 = arith.addf %148, %151 : vector<40x256xf32>
    %c2_124 = arith.constant 2 : index
    %c0_125 = arith.constant 0 : index
    %c0_126 = arith.constant 0 : index
    %153 = vector.load %arg4[%c2_124, %c0_125, %c0_126] : memref<5x128x256xbf16, #tpu.memory_space<vmem>>, vector<1x128x256xbf16>
    %154 = vector.shape_cast %153 : vector<1x128x256xbf16> to vector<128x256xbf16>
    %cst_127 = arith.constant dense<0.000000e+00> : vector<40x256xf32>
    %155 = tpu.matmul %121, %154, %cst_127 {dimension_numbers = #tpu.dot_dimension_numbers<[1], [0], [0], [1], [0, 0, 1, 1], [], []>} : vector<40x128xbf16>, vector<128x256xbf16>, vector<40x256xf32> -> vector<40x256xf32>
    %156 = arith.addf %152, %155 : vector<40x256xf32>
    %c3_128 = arith.constant 3 : index
    %c0_129 = arith.constant 0 : index
    %c0_130 = arith.constant 0 : index
    %157 = vector.load %arg4[%c3_128, %c0_129, %c0_130] : memref<5x128x256xbf16, #tpu.memory_space<vmem>>, vector<1x128x256xbf16>
    %158 = vector.shape_cast %157 : vector<1x128x256xbf16> to vector<128x256xbf16>
    %cst_131 = arith.constant dense<0.000000e+00> : vector<40x256xf32>
    %159 = tpu.matmul %122, %158, %cst_131 {dimension_numbers = #tpu.dot_dimension_numbers<[1], [0], [0], [1], [0, 0, 1, 1], [], []>} : vector<40x128xbf16>, vector<128x256xbf16>, vector<40x256xf32> -> vector<40x256xf32>
    %160 = arith.addf %156, %159 : vector<40x256xf32>
    %c4_132 = arith.constant 4 : index
    %c0_133 = arith.constant 0 : index
    %c0_134 = arith.constant 0 : index
    %161 = vector.load %arg4[%c4_132, %c0_133, %c0_134] : memref<5x128x256xbf16, #tpu.memory_space<vmem>>, vector<1x128x256xbf16>
    %162 = vector.shape_cast %161 : vector<1x128x256xbf16> to vector<128x256xbf16>
    %cst_135 = arith.constant dense<0.000000e+00> : vector<40x256xf32>
    %163 = tpu.matmul %123, %162, %cst_135 {dimension_numbers = #tpu.dot_dimension_numbers<[1], [0], [0], [1], [0, 0, 1, 1], [], []>} : vector<40x128xbf16>, vector<128x256xbf16>, vector<40x256xf32> -> vector<40x256xf32>
    %164 = arith.addf %160, %163 : vector<40x256xf32>
    %165 = vector.extract_strided_slice %164 {offsets = [0, 0], sizes = [40, 128], strides = [1, 1]} : vector<40x256xf32> to vector<40x128xf32>
    %166 = vector.extract_strided_slice %164 {offsets = [0, 128], sizes = [40, 128], strides = [1, 1]} : vector<40x256xf32> to vector<40x128xf32>
    %167 = arith.maximumf %165, %166 : vector<40x128xf32>
    %168 = arith.maximumf %145, %167 : vector<40x128xf32>
    %c0_136 = arith.constant 0 : index
    %c0_137 = arith.constant 0 : index
    %169 = vector.load %arg5[%c0_136, %c0_137] : memref<1x128xf32, #tpu.memory_space<vmem>>, vector<1x128xf32>
    %170 = vector.broadcast %169 : vector<1x128xf32> to vector<40x128xf32>
    %171 = arith.addf %168, %170 : vector<40x128xf32>
    %cst_138 = arith.constant 0.000000e+00 : f32
    %172 = vector.broadcast %cst_138 : f32 to vector<40x128xf32>
    %173 = arith.maximumf %171, %172 : vector<40x128xf32>
    %174 = arith.truncf %173 : vector<40x128xf32> to vector<40x128xbf16>
    %175 = vector.extract_strided_slice %174 {offsets = [0, 0], sizes = [8, 128], strides = [1, 1]} : vector<40x128xbf16> to vector<8x128xbf16>
    %c0_139 = arith.constant 0 : index
    %c0_140 = arith.constant 0 : index
    %c0_141 = arith.constant 0 : index
    %176 = vector.load %arg6[%c0_139, %c0_140, %c0_141] : memref<5x128x128xbf16, #tpu.memory_space<vmem>>, vector<1x128x128xbf16>
    %177 = vector.shape_cast %176 : vector<1x128x128xbf16> to vector<128x128xbf16>
    %cst_142 = arith.constant dense<0.000000e+00> : vector<8x128xf32>
    %178 = tpu.matmul %175, %177, %cst_142 {dimension_numbers = #tpu.dot_dimension_numbers<[1], [0], [0], [1], [0, 0, 1, 1], [], []>} : vector<8x128xbf16>, vector<128x128xbf16>, vector<8x128xf32> -> vector<8x128xf32>
    %179 = vector.extract_strided_slice %174 {offsets = [8, 0], sizes = [8, 128], strides = [1, 1]} : vector<40x128xbf16> to vector<8x128xbf16>
    %c1_143 = arith.constant 1 : index
    %c0_144 = arith.constant 0 : index
    %c0_145 = arith.constant 0 : index
    %180 = vector.load %arg6[%c1_143, %c0_144, %c0_145] : memref<5x128x128xbf16, #tpu.memory_space<vmem>>, vector<1x128x128xbf16>
    %181 = vector.shape_cast %180 : vector<1x128x128xbf16> to vector<128x128xbf16>
    %cst_146 = arith.constant dense<0.000000e+00> : vector<8x128xf32>
    %182 = tpu.matmul %179, %181, %cst_146 {dimension_numbers = #tpu.dot_dimension_numbers<[1], [0], [0], [1], [0, 0, 1, 1], [], []>} : vector<8x128xbf16>, vector<128x128xbf16>, vector<8x128xf32> -> vector<8x128xf32>
    %183 = arith.addf %178, %182 : vector<8x128xf32>
    %184 = vector.extract_strided_slice %174 {offsets = [16, 0], sizes = [8, 128], strides = [1, 1]} : vector<40x128xbf16> to vector<8x128xbf16>
    %c2_147 = arith.constant 2 : index
    %c0_148 = arith.constant 0 : index
    %c0_149 = arith.constant 0 : index
    %185 = vector.load %arg6[%c2_147, %c0_148, %c0_149] : memref<5x128x128xbf16, #tpu.memory_space<vmem>>, vector<1x128x128xbf16>
    %186 = vector.shape_cast %185 : vector<1x128x128xbf16> to vector<128x128xbf16>
    %cst_150 = arith.constant dense<0.000000e+00> : vector<8x128xf32>
    %187 = tpu.matmul %184, %186, %cst_150 {dimension_numbers = #tpu.dot_dimension_numbers<[1], [0], [0], [1], [0, 0, 1, 1], [], []>} : vector<8x128xbf16>, vector<128x128xbf16>, vector<8x128xf32> -> vector<8x128xf32>
    %188 = arith.addf %183, %187 : vector<8x128xf32>
    %189 = vector.extract_strided_slice %174 {offsets = [24, 0], sizes = [8, 128], strides = [1, 1]} : vector<40x128xbf16> to vector<8x128xbf16>
    %c3_151 = arith.constant 3 : index
    %c0_152 = arith.constant 0 : index
    %c0_153 = arith.constant 0 : index
    %190 = vector.load %arg6[%c3_151, %c0_152, %c0_153] : memref<5x128x128xbf16, #tpu.memory_space<vmem>>, vector<1x128x128xbf16>
    %191 = vector.shape_cast %190 : vector<1x128x128xbf16> to vector<128x128xbf16>
    %cst_154 = arith.constant dense<0.000000e+00> : vector<8x128xf32>
    %192 = tpu.matmul %189, %191, %cst_154 {dimension_numbers = #tpu.dot_dimension_numbers<[1], [0], [0], [1], [0, 0, 1, 1], [], []>} : vector<8x128xbf16>, vector<128x128xbf16>, vector<8x128xf32> -> vector<8x128xf32>
    %193 = arith.addf %188, %192 : vector<8x128xf32>
    %194 = vector.extract_strided_slice %174 {offsets = [32, 0], sizes = [8, 128], strides = [1, 1]} : vector<40x128xbf16> to vector<8x128xbf16>
    %c4_155 = arith.constant 4 : index
    %c0_156 = arith.constant 0 : index
    %c0_157 = arith.constant 0 : index
    %195 = vector.load %arg6[%c4_155, %c0_156, %c0_157] : memref<5x128x128xbf16, #tpu.memory_space<vmem>>, vector<1x128x128xbf16>
    %196 = vector.shape_cast %195 : vector<1x128x128xbf16> to vector<128x128xbf16>
    %cst_158 = arith.constant dense<0.000000e+00> : vector<8x128xf32>
    %197 = tpu.matmul %194, %196, %cst_158 {dimension_numbers = #tpu.dot_dimension_numbers<[1], [0], [0], [1], [0, 0, 1, 1], [], []>} : vector<8x128xbf16>, vector<128x128xbf16>, vector<8x128xf32> -> vector<8x128xf32>
    %198 = arith.addf %193, %197 : vector<8x128xf32>
    %c0_159 = arith.constant 0 : index
    %c0_160 = arith.constant 0 : index
    %199 = vector.load %arg7[%c0_159, %c0_160] : memref<1x128xf32, #tpu.memory_space<vmem>>, vector<1x128xf32>
    %200 = vector.broadcast %199 : vector<1x128xf32> to vector<8x128xf32>
    %201 = arith.addf %198, %200 : vector<8x128xf32>
    %cst_161 = arith.constant 0.000000e+00 : f32
    %202 = vector.broadcast %cst_161 : f32 to vector<8x128xf32>
    %203 = arith.maximumf %201, %202 : vector<8x128xf32>
    %204 = arith.truncf %203 : vector<8x128xf32> to vector<8x128xbf16>
    %c0_162 = arith.constant 0 : index
    %c0_163 = arith.constant 0 : index
    %205 = vector.load %arg8[%c0_162, %c0_163] : memref<128x128xbf16, #tpu.memory_space<vmem>>, vector<128x128xbf16>
    %cst_164 = arith.constant dense<0.000000e+00> : vector<8x128xf32>
    %206 = tpu.matmul %204, %205, %cst_164 {dimension_numbers = #tpu.dot_dimension_numbers<[1], [0], [0], [1], [0, 0, 1, 1], [], []>} : vector<8x128xbf16>, vector<128x128xbf16>, vector<8x128xf32> -> vector<8x128xf32>
    %c0_165 = arith.constant 0 : index
    %c0_166 = arith.constant 0 : index
    %207 = vector.load %arg9[%c0_165, %c0_166] : memref<1x128xf32, #tpu.memory_space<vmem>>, vector<1x128xf32>
    %208 = vector.broadcast %207 : vector<1x128xf32> to vector<8x128xf32>
    %209 = arith.addf %206, %208 : vector<8x128xf32>
    %cst_167 = arith.constant 0.000000e+00 : f32
    %210 = vector.broadcast %cst_167 : f32 to vector<8x128xf32>
    %211 = arith.maximumf %209, %210 : vector<8x128xf32>
    %212 = arith.truncf %211 : vector<8x128xf32> to vector<8x128xbf16>
    %c0_168 = arith.constant 0 : index
    %c0_169 = arith.constant 0 : index
    %213 = vector.load %arg10[%c0_168, %c0_169] : memref<128x128xbf16, #tpu.memory_space<vmem>>, vector<128x128xbf16>
    %cst_170 = arith.constant dense<0.000000e+00> : vector<8x128xf32>
    %214 = tpu.matmul %212, %213, %cst_170 {dimension_numbers = #tpu.dot_dimension_numbers<[1], [0], [0], [1], [0, 0, 1, 1], [], []>} : vector<8x128xbf16>, vector<128x128xbf16>, vector<8x128xf32> -> vector<8x128xf32>
    %c0_171 = arith.constant 0 : index
    %c0_172 = arith.constant 0 : index
    %215 = vector.load %arg11[%c0_171, %c0_172] : memref<1x128xf32, #tpu.memory_space<vmem>>, vector<1x128xf32>
    %216 = vector.broadcast %215 : vector<1x128xf32> to vector<8x128xf32>
    %217 = arith.addf %214, %216 : vector<8x128xf32>
    %c0_173 = arith.constant 0 : index
    %c0_174 = arith.constant 0 : index
    %218 = vector.load %arg12[%c0_173, %c0_174] : memref<8x128xf32, #tpu.memory_space<vmem>>, vector<8x128xf32>
    tpu.vector_store %arg12[%c0_173, %c0_174], %217 {strides = array<i32>} : memref<8x128xf32, #tpu.memory_space<vmem>>, vector<8x128xf32>,
    return
  }
  func.func @transform_0(%arg0: i32) -> (i32, i32, i32, i32) {
    %c0_i32 = arith.constant 0 : i32
    %c0_i32_0 = arith.constant 0 : i32
    %c0_i32_1 = arith.constant 0 : i32
    %c0_i32_2 = arith.constant 0 : i32
    return %arg0, %c0_i32, %c0_i32_0, %c0_i32_1 : i32, i32, i32, i32
  }
  func.func @transform_1(%arg0: i32) -> (i32, i32, i32) {
    %c0_i32 = arith.constant 0 : i32
    %c0_i32_0 = arith.constant 0 : i32
    %c0_i32_1 = arith.constant 0 : i32
    %c0_i32_2 = arith.constant 0 : i32
    return %c0_i32, %c0_i32_0, %c0_i32_1 : i32, i32, i32
  }
  func.func @transform_2(%arg0: i32) -> (i32, i32) {
    %c0_i32 = arith.constant 0 : i32
    %c0_i32_0 = arith.constant 0 : i32
    %c0_i32_1 = arith.constant 0 : i32
    return %c0_i32, %c0_i32_0 : i32, i32
  }
  func.func @transform_3(%arg0: i32) -> (i32, i32, i32) {
    %c0_i32 = arith.constant 0 : i32
    %c0_i32_0 = arith.constant 0 : i32
    %c0_i32_1 = arith.constant 0 : i32
    %c0_i32_2 = arith.constant 0 : i32
    return %c0_i32, %c0_i32_0, %c0_i32_1 : i32, i32, i32
  }
  func.func @transform_4(%arg0: i32) -> (i32, i32) {
    %c0_i32 = arith.constant 0 : i32
    %c0_i32_0 = arith.constant 0 : i32
    %c0_i32_1 = arith.constant 0 : i32
    return %c0_i32, %c0_i32_0 : i32, i32
  }
  func.func @transform_5(%arg0: i32) -> (i32, i32, i32) {
    %c0_i32 = arith.constant 0 : i32
    %c0_i32_0 = arith.constant 0 : i32
    %c0_i32_1 = arith.constant 0 : i32
    %c0_i32_2 = arith.constant 0 : i32
    return %c0_i32, %c0_i32_0, %c0_i32_1 : i32, i32, i32
  }
  func.func @transform_6(%arg0: i32) -> (i32, i32) {
    %c0_i32 = arith.constant 0 : i32
    %c0_i32_0 = arith.constant 0 : i32
    %c0_i32_1 = arith.constant 0 : i32
    return %c0_i32, %c0_i32_0 : i32, i32
  }
  func.func @transform_7(%arg0: i32) -> (i32, i32) {
    %c0_i32 = arith.constant 0 : i32
    %c0_i32_0 = arith.constant 0 : i32
    %c0_i32_1 = arith.constant 0 : i32
    return %c0_i32, %c0_i32_0 : i32, i32
  }
  func.func @transform_8(%arg0: i32) -> (i32, i32) {
    %c0_i32 = arith.constant 0 : i32
    %c0_i32_0 = arith.constant 0 : i32
    %c0_i32_1 = arith.constant 0 : i32
    return %c0_i32, %c0_i32_0 : i32, i32
  }
  func.func @transform_9(%arg0: i32) -> (i32, i32) {
    %c0_i32 = arith.constant 0 : i32
    %c0_i32_0 = arith.constant 0 : i32
    %c0_i32_1 = arith.constant 0 : i32
    return %c0_i32, %c0_i32_0 : i32, i32
  }
  func.func @transform_10(%arg0: i32) -> (i32, i32) {
    %c0_i32 = arith.constant 0 : i32
    %c0_i32_0 = arith.constant 0 : i32
    %c0_i32_1 = arith.constant 0 : i32
    return %c0_i32, %c0_i32_0 : i32, i32
  }
  func.func @transform_11(%arg0: i32) -> (i32, i32) {
    %c0_i32 = arith.constant 0 : i32
    %c0_i32_0 = arith.constant 0 : i32
    return %arg0, %c0_i32 : i32, i32
  }
}

</mosaic_0001>

<bundles_post_ra>
// kernel: net_forward.1
= control target key start
LH: loop header
LB: loop body
LE: loop exit
PB: predicated region body
PF: predicated region fallthrough
CT: control target
= control target key end

     0   :  { %16 = vsyncpa [#allocation3], 0  ;;  %s8176_s0 = inlined_call_operand.vmem [shape: bf16[2,4,64,96], index: 0, kind: input, shape index: {}]   ;;  %s8177_s1 = inlined_call_operand.vmem [shape: bf16[5,96,256], index: 1, kind: input, shape index: {}]   ;;  %s8178_s2 = inlined_call_operand.vmem [shape: f32[1,128], index: 2, kind: input, shape index: {}]   ;;  %s8179_s3 = inlined_call_operand.vmem [shape: bf16[5,128,256], index: 3, kind: input, shape index: {}]   ;;  %s8180_s4 = inlined_call_operand.vmem [shape: f32[1,128], index: 4, kind: input, shape index: {}]   ;;  %s8181_s5 = inlined_call_operand.vmem [shape: bf16[5,128,128], index: 5, kind: input, shape index: {}]   ;;  %s8182_s6 = inlined_call_operand.vmem [shape: f32[1,128], index: 6, kind: input, shape index: {}]   ;;  %s8183_s7 = inlined_call_operand.vmem [shape: bf16[128,128], index: 7, kind: input, shape index: {}]   ;;  %s8184_s8 = inlined_call_operand.vmem [shape: f32[1,128], index: 8, kind: input, shape index: {}]   ;;  %s8185_s9 = inlined_call_operand.vmem [shape: bf16[128,128], index: 9, kind: input, shape index: {}]   ;;  %s8186_s10 = inlined_call_operand.vmem [shape: f32[1,128], index: 10, kind: input, shape index: {}]   ;;  %s8187_s11 = inlined_call_operand.hbm [shape: f32[16,128], index: 11, kind: output, shape index: {}]  }
   0x1   :  { %18 = vsyncpa [#allocation3 + $0x1], 0  ;;  %s6289_s17 = smov 0   ;;  %s6291_s18 = smov 0  }
   0x2   :  { %s6293_s19 = smov 0   ;;  %s6295_s20 = smov 0  }
   0x3 LB: > { %s6310_s21 = sadd.s32 4294967295, %s6223_s20   ;;  %s4704_s22 = sadd.s32 4294967294, %s6223_s20   ;;  %s6223_s20 = sphi %s6295_s20, %s8262_s20   ;;  %s6219_s19 = sphi %s6293_s19, %s8261_s19   ;;  %s6215_s18 = sphi %s6291_s18, %s8260_s18   ;;  %s6211_s17 = sphi %s6289_s17, %s8259_s17  }
   0x4   : > { %s6314_s23 = sadd.s32 1, %s6223_s20   ;;  %s267_s24 = sadd.s32 1, %s6219_s19 }
   0x5   : > { %s264_s25 = ssub.s32 %s6223_s20, %s6314_s23  ;;  %p277_p0 = scmp.ne.s32.totalorder %s6219_s19, %s6215_s18 }
   0x6   : > { %p265_p1 = scmp.eq.s32.totalorder %s264_s25, 0  ;;  %p278_p2 = scmp.eq.s32.totalorder %s6310_s21, 1 }
   0x7   : > { %p283_p3 = scmp.ne.s32.totalorder %s6215_s18, %s6211_s17  ;;  %p284_p4 = scmp.eq.s32.totalorder %s4704_s22, 1 }
   0x8   : > { %s6325_s26 = scalar_select %p265_p1, %s6219_s19, %s267_s24  }
   0x9   : > { %p6327_p5 = por %p278_p2, %p277_p0  ;;  %p6331_p6 = por %p284_p4, %p283_p3 }
   0xa   : > { %p4707_p7 = scmp.ge.s32.totalorder %s6223_s20, 1  ;;  %p340_p8 = scmp.lt.s32.totalorder %s6223_s20, 3 }
   0xc   : > { %p341_p9 = pnand %p4707_p7, %p340_p8 }
   0xe   : > { %344 = sbr.rel (%p341_p9) target bundleno = 1669 (0x685), region = 64 }
  0x15   : > { %v5836_v0 = vld [vmem:[%s8177_s1 + $0x64] ss:$8 sps:$4 sm:$0xff]   ;;  %p380_p10 = scmp.lt.s32.totalorder %s6310_s21, 1  ;;  %v6344_v1 = vld [vmem:[%s8177_s1 + $0x60] ss:$8 sps:$4 sm:$0xff]   ;;  %v8188_v2 = vmov 0  }
  0x16   : > { %569 = vmatprep.mubr.bf16.mxu0 %v8188_v2  ;;  %599 = vmatprep.mubr.bf16.mxu1 %v8188_v2  ;;  %v6351_v3 = vld [vmem:[%s8177_s1 + $0x74] ss:$8 sps:$4 sm:$0xff]   ;;  %v6359_v4 = vld [vmem:[%s8177_s1 + $0x70] ss:$8 sps:$4 sm:$0xff]   ;;  %v6366_v5 = vld [vmem:[%s8177_s1 + $0x84] ss:$8 sps:$4 sm:$0xff]  }
  0x17   : > { %537 = vmatprep.subr.bf16.mxu0 %v5836_v0  ;;  %5432 = vmatprep.subr.bf16.mxu1 %v5836_v0  ;;  %s381_s16 = scalar_select %p380_p10, %s6310_s21, 1  ;;  %v6373_v6 = vld [vmem:[%s8177_s1 + $0x80] ss:$8 sps:$4 sm:$0xff]   ;;  %v6380_v7 = vld [vmem:[%s8177_s1 + $0x94] ss:$8 sps:$4 sm:$0xff]   ;;  %vm524_vm0 = vcmask 785408  }
  0x18   : > { %538 = vmatpush1.bf16.msra.mxu0 %v6344_v1  ;;  %5438 = vmatpush1.bf16.msra.mxu1 %v6344_v1  ;;  %v6392_v8 = vld [vmem:[%s8177_s1 + $0x90] ss:$8 sps:$4 sm:$0xff]   ;;  %v6401_v11 = vld [vmem:[%s8177_s1 + $0xa4] ss:$8 sps:$4 sm:$0xff]   ;;  %v6410_v13 = vld [vmem:[%s8177_s1 + $0xa0] ss:$8 sps:$4 sm:$0xff]  }
  0x19   : > { %539 = vmatprep.subr.bf16.mxu0 %v6351_v3  ;;  %5433 = vmatprep.subr.bf16.mxu1 %v6351_v3  ;;  %s5228_s30 = sshll.u32 %s381_s16, 7  ;;  %v6417_v14 = vld [vmem:[%s8177_s1 + $0xb4] ss:$8 sps:$4 sm:$0xff]   ;;  %v6422_v15 = vld [vmem:[%s8177_s1 + $0xb0] ss:$8 sps:$4 sm:$0xff]   ;;  %vm2986_vm1 = vcmask 1043456  }
  0x1a   : > { %s6385_s24 = scalar_lea.vmem %s8176_s0, %s5228_s30  ;;  %v6441_v20 = vld [vmem:[%s8177_s1 + $0x4] ss:$8 sps:$4 sm:$0xff]   ;;  %v6468_v27 = vld [vmem:[%s8177_s1] ss:$8 sps:$4 sm:$0xff]   ;;  %v6480_v30 = vld [vmem:[%s8177_s1 + $0x14] ss:$8 sps:$4 sm:$0xff]  }
  0x1b   : > { %v4712_v9 = vld [vmem:[%s6385_s24 + $0x24] sm:$0xf]  ;;  %v4713_v10 = vld [vmem:[%s6385_s24 + $0x28] sm:$0xf]  ;;  %v4711_v16 = vld [vmem:[%s6385_s24 + $0x20] sm:$0xf] }
  0x1c   : > { %540 = vmatpush1.bf16.msra.mxu0 %v6359_v4  ;;  %5439 = vmatpush1.bf16.msra.mxu1 %v6359_v4  ;;  %v6403_v12 = vcombine.low %v4712_v9, %v4713_v10  ;;  %v6428_v17 = vld [vmem:[%s6385_s24 + $0x38] sm:$0xf]  ;;  %v6431_v18 = vld [vmem:[%s6385_s24 + $0x4] sm:$0xf]  ;;  %v6434_v19 = vld [vmem:[%s6385_s24 + $0x8] sm:$0xf]  ;;  %v6453_v24 = vcombine.low %v4711_v16, %v4712_v9 }
  0x1d   : > { %541 = vmatprep.subr.bf16.mxu0 %v6366_v5  ;;  %5434 = vmatprep.subr.bf16.mxu1 %v6366_v5  ;;  %v6445_v21 = vcombine.low %v6431_v18, %v6434_v19  ;;  %v6448_v22 = vld [vmem:[%s6385_s24 + $0x44] sm:$0xf]  ;;  %v6451_v23 = vld [vmem:[%s6385_s24 + $0x48] sm:$0xf]  ;;  %v6457_v25 = vcombine.low %v6428_v17, %v6428_v17  ;;  %v6471_v28 = vld [vmem:[%s6385_s24 + $0xc] sm:$0xf] }
  0x1e   : > { %v6461_v26 = vcombine.low %v6448_v22, %v6451_v23  ;;  %v6474_v29 = vld [vmem:[%s6385_s24 + $0x10] sm:$0xf]  ;;  %v6498_v33 = vld [vmem:[%s6385_s24 + $0x2c] sm:$0xf]  ;;  %v6501_v34 = vld [vmem:[%s6385_s24 + $0x14] sm:$0xf]  ;;  %v4768_v61 = vcombine.low %v6434_v19, %v6471_v28 }
  0x1f   : > { %v6484_v31 = vcombine.low %v6471_v28, %v6474_v29  ;;  %v6493_v32 = vld [vmem:[%s8177_s1 + $0x10] ss:$8 sps:$4 sm:$0xff]   ;;  %v6511_v36 = vld [vmem:[%s8177_s1 + $0x24] ss:$8 sps:$4 sm:$0xff]   ;;  %v6520_v38 = vcombine.low %v4713_v10, %v6498_v33  ;;  %v6527_v39 = vld [vmem:[%s8177_s1 + $0x20] ss:$8 sps:$4 sm:$0xff]  }
  0x20   : > { %542 = vmatpush1.bf16.msra.mxu0 %v6373_v6  ;;  %5440 = vmatpush1.bf16.msra.mxu1 %v6373_v6  ;;  %8221 = vst [vmem:[#allocation5_spill] sm:$0xff] %v6461_v26  ;;  %v6504_v35 = vld [vmem:[%s6385_s24 + $0x18] sm:$0xf]  ;;  %v6534_v40 = vld [vmem:[%s8177_s1 + $0x34] ss:$8 sps:$4 sm:$0xff]   ;;  %vm6227_vm2 = vmmov 0  }
  0x21   : > { %543 = vmatprep.subr.bf16.mxu0 %v6380_v7  ;;  %5435 = vmatprep.subr.bf16.mxu1 %v6380_v7  ;;  %v6515_v37 = vcombine.low %v6501_v34, %v6504_v35  ;;  %v6541_v41 = vld [vmem:[%s8177_s1 + $0x30] ss:$8 sps:$4 sm:$0xff]   ;;  %v4716_v43 = vld [vmem:[%s6385_s24 + $0x34] sm:$0xf]  ;;  %v6552_v44 = vld [vmem:[%s8177_s1 + $0x44] ss:$8 sps:$4 sm:$0xff]   ;;  %v4770_v16 = vcombine.low %v6504_v35, %v6504_v35 }
  0x22   : > { %v4715_v42 = vld [vmem:[%s6385_s24 + $0x30] sm:$0xf]  ;;  %v6562_v46 = vld [vmem:[%s8177_s1 + $0x40] ss:$8 sps:$4 sm:$0xff]   ;;  %v6565_v47 = vld [vmem:[%s6385_s24 + $0x64] sm:$0xf] }
  0x23   : > { %v6555_v45 = vcombine.low %v4715_v42, %v4716_v43  ;;  %8222 = vst [vmem:[#allocation6_spill] sm:$0xff] %v6565_v47  ;;  %v6568_v48 = vld [vmem:[%s6385_s24 + $0x68] sm:$0xf]  ;;  %v6575_v49 = vld [vmem:[%s8177_s1 + $0x54] ss:$8 sps:$4 sm:$0xff]   ;;  %s377_s30 = sand.u32 1, %s6215_s18  }
  0x24   : > { %544 = vmatpush1.bf16.msra.mxu0 %v6392_v8  ;;  %5441 = vmatpush1.bf16.msra.mxu1 %v6392_v8  ;;  %8223 = vst [vmem:[#allocation7_spill] sm:$0xff] %v6568_v48  ;;  %v6584_v51 = vld [vmem:[%s8177_s1 + $0x50] ss:$8 sps:$4 sm:$0xff]   ;;  %v386_v52 = vld [vmem:[%s6385_s24] sm:$0xf]  ;;  %s4708_s12 = sshll.u32 %s377_s30, 3 }
  0x25   : > { %545 = vmatprep.subr.bf16.mxu0 %v6401_v11  ;;  %5436 = vmatprep.subr.bf16.mxu1 %v6401_v11  ;;  %v4719_v53 = vld [vmem:[%s6385_s24 + $0x40] sm:$0xf]  ;;  %v6595_v54 = vld [vmem:[%s8177_s1 + $0xc4] ss:$8 sps:$4 sm:$0xff]   ;;  %v4767_v55 = vcombine.low %v386_v52, %v6431_v18  ;;  %v6615_v59 = vld [vmem:[%s8177_s1 + $0xd4] ss:$8 sps:$4 sm:$0xff]  }
  0x26   : > { %v6600_v56 = vcombine.low %v4719_v53, %v6448_v22  ;;  %v4722_v57 = vld [vmem:[%s6385_s24 + $0x4c] sm:$0xf]  ;;  %v6610_v58 = vld [vmem:[%s8177_s1 + $0xc0] ss:$8 sps:$4 sm:$0xff]   ;;  %v6625_v60 = vld [vmem:[%s8177_s1 + $0xd0] ss:$8 sps:$4 sm:$0xff]  }
  0x27   : > { %v6633_v62 = vcombine.low %v6451_v23, %v4722_v57  ;;  %v6639_v63 = vld [vmem:[%s8177_s1 + $0xe4] ss:$8 sps:$4 sm:$0xff]   ;;  %v6736_v19 = vld [vmem:[%s8177_s1 + $0x120] ss:$8 sps:$4 sm:$0xff]   ;;  %v6752_v22 = vld [vmem:[%s8177_s1 + $0x130] ss:$8 sps:$4 sm:$0xff]  }
  0x28   : > { %546 = vmatpush1.bf16.msra.mxu0 %v6410_v13  ;;  %5442 = vmatpush1.bf16.msra.mxu1 %v6410_v13  ;;  %v6684_v10 = vld [vmem:[%s8177_s1 + $0x104] ss:$8 sps:$4 sm:$0xff]   ;;  %v6785_v28 = vld [vmem:[%s8177_s1 + $0x150] ss:$8 sps:$4 sm:$0xff]   ;;  %v6853_v52 = vld [vmem:[%s8177_s1 + $0x194] ss:$8 sps:$4 sm:$0xff]  }
  0x29   : > { %547 = vmatprep.subr.bf16.mxu0 %v6417_v14  ;;  %5437 = vmatprep.subr.bf16.mxu1 %v6417_v14  ;;  %v6722_v18 = vld [vmem:[%s8177_s1 + $0x124] ss:$8 sps:$4 sm:$0xff]   ;;  %v6819_v35 = vld [vmem:[%s8177_s1 + $0x170] ss:$8 sps:$4 sm:$0xff]   ;;  %8225 = vst [vmem:[#allocation9_spill] sm:$0xff] %v6853_v52  ;;  %s5225_s14 = sshll.u32 %s6310_s21, 7 }
  0x2a   : > { %v6761_v23 = vld [vmem:[%s8177_s1 + $0x144] ss:$8 sps:$4 sm:$0xff]   ;;  %v6870_v53 = vld [vmem:[%s8177_s1 + $0x190] ss:$8 sps:$4 sm:$0xff]   ;;  %v6932_v50 = vld [vmem:[%s8177_s1 + $0x1c0] ss:$8 sps:$4 sm:$0xff]   ;;  %s8134_s29 = scalar_lea.hbm %s8187_s11, %s5225_s14 }
  0x2b   : > { %8227 = vst [vmem:[#allocation11_spill] sm:$0xff] %v6870_v53  ;;  %v6882_v57 = vld [vmem:[%s8177_s1 + $0x1a4] ss:$8 sps:$4 sm:$0xff]   ;;  %8235 = vst [vmem:[#allocation19_spill] sm:$0xff] %v6932_v50  ;;  %v6136_v26 = vld [vmem:[%s8177_s1 + $0x74] ss:$8 sps:$4 sm:$0xff]  }
  0x2c   : > { %548 = vmatpush1.bf16.msra.mxu0 %v6422_v15  ;;  %5443 = vmatpush1.bf16.msra.mxu1 %v6422_v15  ;;  %8228 = vst [vmem:[#allocation12_spill] sm:$0xff] %v6882_v57  ;;  %s379_s15 = scalar_lea.vmem [#allocation2], %s4708_s12  ;;  %s6228_s12 = smov [#allocation2]  }
  0x2d   : > { %698 = vmatprep.subr.bf16.mxu0 %v6441_v20  ;;  %1328 = vmatprep.subr.bf16.mxu1 %v5836_v0  ;;  %v6645_v0 = vld [vmem:[%s8177_s1 + $0xe0] ss:$8 sps:$4 sm:$0xff]   ;;  %s4645_s22 = sshll.u32 %s379_s15, 4  ;;  %s6165_s13 = sshll.u32 %s6228_s12, 4  ;;  %s8136_s22 = int_to_ptr.vmem [resolvable:$true] %s4645_s22  ;;  %s6166_s13 = int_to_ptr.vmem [resolvable:$false] %s6165_s13 }
  0x2e   : > { %s6161_s21 = scalar_lea.vmem %s8136_s22, 128  ;;  %s6167_s16 = scalar_lea.vmem %s6166_s13, 256 }
  0x2f   : > { %4763 = vmatmul.mubr.msk.bf16.vlgmr.msra.gmra.mrb[0].mxu0 %vm524_vm0, %v6453_v24  ;;  %4766 = vmatmul.mubr.msk.bf16.vlgmr.msra.gmra.mrb[0].mxu1 %vm524_vm0, %v6457_v25  ;;  %p6162_p11 = scmp.ne.s32.totalorder %s8136_s22, %s6161_s21  ;;  %p6168_p0 = scmp.lt.s32.totalorder %s8136_s22, %s6166_s13 }
  0x30   : > { %699 = vmatpush1.bf16.msra.mxu0 %v6468_v27  ;;  %1329 = vmatpush1.bf16.msra.mxu1 %v6344_v1  ;;  %v6648_v1 = vcombine.low %v6498_v33, %v4715_v42  ;;  %v6801_v33 = vld [vmem:[%s8177_s1 + $0x160] ss:$8 sps:$4 sm:$0xff]   ;;  %p6169_p1 = scmp.lt.s32.totalorder %s6167_s16, %s6161_s21 }
  0x31   : > { %700 = vmatprep.subr.bf16.mxu0 %v6480_v30  ;;  %1330 = vmatprep.subr.bf16.mxu1 %v6351_v3  ;;  %v6654_v3 = vld [vmem:[%s8177_s1 + $0xf4] ss:$8 sps:$4 sm:$0xff]   ;;  %v4727_v42 = vld [vmem:[%s6385_s24 + $0x60] sm:$0xf]  ;;  %p6163_p12 = pnand %p6162_p11, %p6327_p5 }
  0x32   : > { %579 = vmatprep.mubr.bf16.mxu0 %v8188_v2  ;;  %1360 = vmatprep.mubr.bf16.mxu1 %v8188_v2  ;;  %p6170_p2 = por %p6169_p1, %p6168_p0 }
  0x33   : > { %p6164_p13 = pneg %p6163_p12 }
  0x34   : > { %701 = vmatpush1.bf16.msra.mxu0 %v6493_v32  ;;  %1331 = vmatpush1.bf16.msra.mxu1 %v6359_v4  ;;  %v4723_v4 = vld [vmem:[%s6385_s24 + $0x50] sm:$0xf] }
  0x35   : > { %702 = vmatprep.subr.bf16.mxu0 %v6511_v36  ;;  %1332 = vmatprep.subr.bf16.mxu1 %v6366_v5  ;;  %v4724_v5 = vld [vmem:[%s6385_s24 + $0x54] sm:$0xf]  ;;  %p6171_p3 = pnand %p6170_p2, %p6164_p13 }
  0x36   : > { %v6678_v9 = vcombine.low %v4723_v4, %v4724_v5  ;;  %v6897_v4 = vld [vmem:[%s8177_s1 + $0x1b4] ss:$8 sps:$4 sm:$0xff]   ;;  %v6902_v5 = vld [vmem:[%s6385_s24 + $0x70] sm:$0xf] }
  0x37   : > { %4764 = vmatmul.mubr.msk.bf16.gmra.mrb[4].mxu0 %vm524_vm0, %v6520_v38  ;;  %8230 = vst [vmem:[#allocation14_spill] sm:$0xff] %v6897_v4  ;;  %8231 = vst [vmem:[#allocation15_spill] sm:$0xff] %v6902_v5 }
  0x38   : > { %703 = vmatpush1.bf16.msra.mxu0 %v6527_v39  ;;  %1333 = vmatpush1.bf16.msra.mxu1 %v6373_v6  ;;  %v6667_v6 = vld [vmem:[%s8177_s1 + $0xf0] ss:$8 sps:$4 sm:$0xff]  }
  0x39   : > { %704 = vmatprep.subr.bf16.mxu0 %v6534_v40  ;;  %1334 = vmatprep.subr.bf16.mxu1 %v6380_v7  ;;  %v6672_v7 = vcombine.low %v4716_v43, %v6428_v17  ;;  %v6843_v43 = vcombine.low %v4727_v42, %v6565_v47  ;;  %v6926_v42 = vld [vmem:[%s8177_s1 + $0x1c4] ss:$8 sps:$4 sm:$0xff]   ;;  %v6135_v47 = vld [vmem:[%s8177_s1 + $0x60] ss:$8 sps:$4 sm:$0xff]  }
  0x3a   : > { %589 = vmatprep.mubr.bf16.mxu0 %v8188_v2  ;;  %8234 = vst [vmem:[#allocation18_spill] sm:$0xff] %v6926_v42 }
  0x3c   : > { %705 = vmatpush1.bf16.msra.mxu0 %v6541_v41  ;;  %1335 = vmatpush1.bf16.msra.mxu1 %v6392_v8  ;;  %v4769_v8 = vcombine.low %v6474_v29, %v6501_v34  ;;  %v6795_v29 = vld [vmem:[%s8177_s1 + $0x164] ss:$8 sps:$4 sm:$0xff]   ;;  %v6807_v34 = vld [vmem:[%s8177_s1 + $0x174] ss:$8 sps:$4 sm:$0xff]  }
  0x3d   : > { %706 = vmatprep.subr.bf16.mxu0 %v6552_v44  ;;  %1336 = vmatprep.subr.bf16.mxu1 %v6401_v11  ;;  %v6690_v11 = vld [vmem:[%s8177_s1 + $0x100] ss:$8 sps:$4 sm:$0xff]  }
  0x3f   : > { %4765 = vmatmul.mubr.msk.bf16.gmra.mrb[8].mxu0 %vm524_vm0, %v6555_v45 }
  0x40   : > { %707 = vmatpush1.bf16.msra.mxu0 %v6562_v46  ;;  %1337 = vmatpush1.bf16.msra.mxu1 %v6410_v13  ;;  %v6696_v13 = vld [vmem:[%s8177_s1 + $0x114] ss:$8 sps:$4 sm:$0xff]  }
  0x41   : > { %708 = vmatprep.subr.bf16.mxu0 %v6575_v49  ;;  %1338 = vmatprep.subr.bf16.mxu1 %v6417_v14  ;;  %v4725_v14 = vld [vmem:[%s6385_s24 + $0x58] sm:$0xf] }
  0x42   : > { %730 = vmatprep.mubr.bf16.mxu0 %v8188_v2  ;;  %v6716_v17 = vcombine.low %v4725_v14, %v4725_v14  ;;  %v6914_v14 = vld [vmem:[%s8177_s1 + $0x1b0] ss:$8 sps:$4 sm:$0xff]  }
  0x43   : > { %8233 = vst [vmem:[#allocation17_spill] sm:$0xff] %v6914_v14 }
  0x44   : > { %709 = vmatpush1.bf16.msra.mxu0 %v6584_v51  ;;  %1339 = vmatpush1.bf16.msra.mxu1 %v6422_v15  ;;  %v6710_v15 = vld [vmem:[%s8177_s1 + $0x110] ss:$8 sps:$4 sm:$0xff]  }
  0x45   : > { %1399 = vmatprep.subr.bf16.mxu1 %v6441_v20  ;;  %872 = vmatprep.subr.bf16.mxu0 %v6595_v54  ;;  %v6741_v20 = vld [vmem:[%s8177_s1 + $0x134] ss:$8 sps:$4 sm:$0xff]  }
  0x47   : > { %4783 = vmatmul.mubr.msk.bf16.vlgmr.msra.gmra.mrb[0].mxu0 %vm524_vm0, %v4767_v55  ;;  %4883 = vmatmul.mubr.msk.bf16.vlgmr.msra.gmra.mrb[4].mxu1 %vm524_vm0, %v6600_v56 }
  0x48   : > { %1400 = vmatpush1.bf16.msra.mxu1 %v6468_v27  ;;  %740 = vmatprep.mubr.bf16.mxu0 %v8188_v2  ;;  %v6773_v27 = vld [vmem:[%s8177_s1 + $0x154] ss:$8 sps:$4 sm:$0xff]  }
  0x49   : > { %1401 = vmatprep.subr.bf16.mxu1 %v6480_v30  ;;  %1370 = vmatprep.mubr.bf16.mxu1 %v8188_v2 }
  0x4a   : > { %873 = vmatpush1.bf16.msra.mxu0 %v6610_v58 }
  0x4b   : > { %874 = vmatprep.subr.bf16.mxu0 %v6615_v59 }
  0x4c   : > { %1402 = vmatpush1.bf16.msra.mxu1 %v6493_v32 }
  0x4d   : > { %1403 = vmatprep.subr.bf16.mxu1 %v6511_v36 }
  0x4e   : > { %875 = vmatpush1.bf16.msra.mxu0 %v6625_v60 }
  0x4f   : > { %4784 = vmatmul.mubr.msk.bf16.gmra.mrb[4].mxu0 %vm524_vm0, %v4768_v61  ;;  %4884 = vmatmul.mubr.msk.bf16.gmra.mrb[8].mxu1 %vm524_vm0, %v6633_v62  ;;  %v6888_v61 = vld [vmem:[%s8177_s1 + $0x1a0] ss:$8 sps:$4 sm:$0xff]  }
  0x50   : > { %1404 = vmatpush1.bf16.msra.mxu1 %v6527_v39  ;;  %750 = vmatprep.mubr.bf16.mxu0 %v8188_v2  ;;  %8229 = vst [vmem:[#allocation13_spill] sm:$0xff] %v6888_v61 }
  0x51   : > { %1380 = vmatprep.mubr.bf16.mxu1 %v8188_v2  ;;  %876 = vmatprep.subr.bf16.mxu0 %v6639_v63 }
  0x52   : > { %1405 = vmatprep.subr.bf16.mxu1 %v6534_v40  ;;  %877 = vmatpush1.bf16.msra.mxu0 %v6645_v0 }
  0x53   : > { %878 = vmatprep.subr.bf16.mxu0 %v6654_v3 }
  0x54   : > { %1406 = vmatpush1.bf16.msra.mxu1 %v6541_v41 }
  0x55   : > { %1407 = vmatprep.subr.bf16.mxu1 %v6552_v44 }
  0x56   : > { %879 = vmatpush1.bf16.msra.mxu0 %v6667_v6 }
  0x57   : > { %4785 = vmatmul.mubr.msk.bf16.gmra.mrb[8].mxu0 %vm524_vm0, %v4769_v8  ;;  %4885 = vmatmul.mubr.msk.bf16.gmra.mrb[12].mxu1 %vm524_vm0, %v6678_v9  ;;  %v6905_v8 = vld [vmem:[%s6385_s24 + $0x74] sm:$0xf] }
  0x58   : > { %760 = vmatprep.mubr.bf16.mxu0 %v8188_v2  ;;  %1390 = vmatprep.mubr.bf16.mxu1 %v8188_v2  ;;  %8232 = vst [vmem:[#allocation16_spill] sm:$0xff] %v6905_v8 }
  0x59   : > { %1408 = vmatpush1.bf16.msra.mxu1 %v6562_v46  ;;  %880 = vmatprep.subr.bf16.mxu0 %v6684_v10 }
  0x5a   : > { %881 = vmatpush1.bf16.msra.mxu0 %v6690_v11  ;;  %1409 = vmatprep.subr.bf16.mxu1 %v6575_v49 }
  0x5b   : > { %882 = vmatprep.subr.bf16.mxu0 %v6696_v13 }
  0x5d   : > { %1410 = vmatpush1.bf16.msra.mxu1 %v6584_v51 }
  0x5e   : > { %883 = vmatpush1.bf16.msra.mxu0 %v6710_v15  ;;  %1470 = vmatprep.subr.bf16.mxu1 %v6595_v54 }
  0x5f   : > { %4786 = vmatmul.mubr.msk.bf16.gmra.mrb[12].mxu0 %vm524_vm0, %v4770_v16  ;;  %4886 = vmatmul.mubr.msk.bf16.gmra.mrb[16].mxu1 %vm524_vm0, %v6716_v17  ;;  %v6918_v16 = vcombine.low %v6902_v5, %v6905_v8  ;;  %v8237_v8 = vmov 0   ;;  %v6955_v5 = vld [vmem:[%s8177_s1 + $0x1d0] ss:$8 sps:$4 sm:$0xff]  }
  0x60   : > { %904 = vmatprep.mubr.bf16.mxu0 %v8188_v2  ;;  %1431 = vmatprep.mubr.bf16.mxu1 %v8188_v2  ;;  %8239 = vst [vmem:[#allocation22_spill] sm:$0xff] %v6955_v5 }
  0x61   : > { %1060 = vmatprep.subr.bf16.mxu0 %v6722_v18 }
  0x67   : > { %4815 = vmatmul.mubr.msk.bf16.vlgmr.msra.gmra.mrb[0].mxu0 %vm524_vm0, %v6600_v56  ;;  %4887 = vmatmul.mubr.msk.bf16.vlgmr.msra.gmra.mrb[4].mxu1 %vm524_vm0, %v6453_v24  ;;  %v6767_v24 = vld [vmem:[%s8177_s1 + $0x140] ss:$8 sps:$4 sm:$0xff]  }
  0x68   : > { %1471 = vmatpush1.bf16.msra.mxu1 %v6610_v58  ;;  %914 = vmatprep.mubr.bf16.mxu0 %v8188_v2 }
  0x69   : > { %1472 = vmatprep.subr.bf16.mxu1 %v6615_v59  ;;  %1441 = vmatprep.mubr.bf16.mxu1 %v8188_v2 }
  0x6a   : > { %1061 = vmatpush1.bf16.msra.mxu0 %v6736_v19 }
  0x6b   : > { %1062 = vmatprep.subr.bf16.mxu0 %v6741_v20 }
  0x6c   : > { %1473 = vmatpush1.bf16.msra.mxu1 %v6625_v60 }
  0x6d   : > { %1474 = vmatprep.subr.bf16.mxu1 %v6639_v63 }
  0x6e   : > { %1063 = vmatpush1.bf16.msra.mxu0 %v6752_v22 }
  0x6f   : > { %4816 = vmatmul.mubr.msk.bf16.gmra.mrb[4].mxu0 %vm524_vm0, %v6633_v62  ;;  %4888 = vmatmul.mubr.msk.bf16.gmra.mrb[8].mxu1 %vm524_vm0, %v6520_v38  ;;  %v6829_v38 = vld [vmem:[%s8177_s1 + $0x184] ss:$8 sps:$4 sm:$0xff]  }
  0x70   : > { %1475 = vmatpush1.bf16.msra.mxu1 %v6645_v0  ;;  %924 = vmatprep.mubr.bf16.mxu0 %v8188_v2 }
  0x71   : > { %1451 = vmatprep.mubr.bf16.mxu1 %v8188_v2  ;;  %1064 = vmatprep.subr.bf16.mxu0 %v6761_v23 }
  0x72   : > { %1476 = vmatprep.subr.bf16.mxu1 %v6654_v3  ;;  %1065 = vmatpush1.bf16.msra.mxu0 %v6767_v24 }
  0x73   : > { %1066 = vmatprep.subr.bf16.mxu0 %v6773_v27 }
  0x74   : > { %1477 = vmatpush1.bf16.msra.mxu1 %v6667_v6 }
  0x75   : > { %1478 = vmatprep.subr.bf16.mxu1 %v6684_v10 }
  0x76   : > { %1067 = vmatpush1.bf16.msra.mxu0 %v6785_v28 }
  0x77   : > { %4817 = vmatmul.mubr.msk.bf16.gmra.mrb[8].mxu0 %vm524_vm0, %v6678_v9  ;;  %4889 = vmatmul.mubr.msk.bf16.gmra.mrb[12].mxu1 %vm524_vm0, %v6555_v45  ;;  %v6848_v45 = vld [vmem:[%s8177_s1 + $0x180] ss:$8 sps:$4 sm:$0xff]  }
  0x78   : > { %934 = vmatprep.mubr.bf16.mxu0 %v8188_v2  ;;  %1461 = vmatprep.mubr.bf16.mxu1 %v8188_v2  ;;  %8224 = vst [vmem:[#allocation8_spill] sm:$0xff] %v6848_v45 }
  0x79   : > { %1479 = vmatpush1.bf16.msra.mxu1 %v6690_v11  ;;  %1068 = vmatprep.subr.bf16.mxu0 %v6795_v29 }
  0x7a   : > { %1069 = vmatpush1.bf16.msra.mxu0 %v6801_v33  ;;  %1480 = vmatprep.subr.bf16.mxu1 %v6696_v13 }
  0x7b   : > { %1070 = vmatprep.subr.bf16.mxu0 %v6807_v34 }
  0x7d   : > { %1481 = vmatpush1.bf16.msra.mxu1 %v6710_v15 }
  0x7e   : > { %1071 = vmatpush1.bf16.msra.mxu0 %v6819_v35  ;;  %1555 = vmatprep.subr.bf16.mxu1 %v6722_v18 }
  0x7f   : > { %4818 = vmatmul.mubr.msk.bf16.gmra.mrb[12].mxu0 %vm524_vm0, %v6716_v17  ;;  %4890 = vmatmul.mubr.msk.bf16.gmra.mrb[16].mxu1 %vm524_vm0, %v6457_v25  ;;  %v6862_v25 = vld [vmem:[%s6385_s24 + $0x6c] sm:$0xf] }
  0x80   : > { %1092 = vmatprep.mubr.bf16.mxu0 %v8188_v2  ;;  %1502 = vmatprep.mubr.bf16.mxu1 %v8188_v2  ;;  %8226 = vst [vmem:[#allocation10_spill] sm:$0xff] %v6862_v25  ;;  %v6874_v55 = vcombine.low %v6568_v48, %v6862_v25  ;;  %v6946_v25 = vld [vmem:[%s6385_s24 + $0x78] sm:$0xf] }
  0x81   : > { %1236 = vmatprep.subr.bf16.mxu0 %v6829_v38  ;;  %8238 = vst [vmem:[#allocation21_spill] sm:$0xff] %v6946_v25  ;;  %v6959_v48 = vcombine.low %v6946_v25, %v6946_v25  ;;  %v6134_v25 = vld [vmem:[%s8177_s1 + $0x64] ss:$8 sps:$4 sm:$0xff]  }
  0x87   : > { %4847 = vmatmul.mubr.msk.bf16.vlgmr.msra.gmra.mrb[0].mxu0 %vm524_vm0, %v6843_v43  ;;  %4891 = vmatmul.mubr.msk.bf16.vlgmr.msra.gmra.mrb[4].mxu1 %vm524_vm0, %v6843_v43 }
  0x88   : > { %1556 = vmatpush1.bf16.msra.mxu1 %v6736_v19  ;;  %1102 = vmatprep.mubr.bf16.mxu0 %v8188_v2 }
  0x89   : > { %1557 = vmatprep.subr.bf16.mxu1 %v6741_v20  ;;  %1512 = vmatprep.mubr.bf16.mxu1 %v8188_v2 }
  0x8a   : > { %1237 = vmatpush1.bf16.msra.mxu0 %v6848_v45 }
  0x8b   : > { %1238 = vmatprep.subr.bf16.mxu0 %v6853_v52 }
  0x8c   : > { %1558 = vmatpush1.bf16.msra.mxu1 %v6752_v22 }
  0x8d   : > { %1559 = vmatprep.subr.bf16.mxu1 %v6761_v23 }
  0x8e   : > { %1239 = vmatpush1.bf16.msra.mxu0 %v6870_v53 }
  0x8f   : > { %4848 = vmatmul.mubr.msk.bf16.gmra.mrb[4].mxu0 %vm524_vm0, %v6874_v55  ;;  %4892 = vmatmul.mubr.msk.bf16.gmra.mrb[8].mxu1 %vm524_vm0, %v6874_v55 }
  0x90   : > { %1560 = vmatpush1.bf16.msra.mxu1 %v6767_v24  ;;  %1112 = vmatprep.mubr.bf16.mxu0 %v8188_v2 }
  0x91   : > { %1522 = vmatprep.mubr.bf16.mxu1 %v8188_v2  ;;  %1240 = vmatprep.subr.bf16.mxu0 %v6882_v57  ;;  %v6941_v2 = vld [vmem:[%s8177_s1 + $0x1d4] ss:$8 sps:$4 sm:$0xff]  }
  0x92   : > { %1561 = vmatprep.subr.bf16.mxu1 %v6773_v27  ;;  %1241 = vmatpush1.bf16.msra.mxu0 %v6888_v61  ;;  %8236 = vst [vmem:[#allocation20_spill] sm:$0xff] %v6941_v2 }
  0x93   : > { %1242 = vmatprep.subr.bf16.mxu0 %v6897_v4 }
  0x94   : > { %1562 = vmatpush1.bf16.msra.mxu1 %v6785_v28 }
  0x95   : > { %1563 = vmatprep.subr.bf16.mxu1 %v6795_v29 }
  0x96   : > { %1243 = vmatpush1.bf16.msra.mxu0 %v6914_v14 }
  0x97   : > { %4849 = vmatmul.mubr.msk.bf16.gmra.mrb[8].mxu0 %vm524_vm0, %v6918_v16  ;;  %4893 = vmatmul.mubr.msk.bf16.gmra.mrb[12].mxu1 %vm524_vm0, %v6918_v16 }
  0x98   : > { %1122 = vmatprep.mubr.bf16.mxu0 %v8237_v8  ;;  %1532 = vmatprep.mubr.bf16.mxu1 %v8237_v8 }
  0x99   : > { %1564 = vmatpush1.bf16.msra.mxu1 %v6801_v33  ;;  %1244 = vmatprep.subr.bf16.mxu0 %v6926_v42 }
  0x9a   : > { %1245 = vmatpush1.bf16.msra.mxu0 %v6932_v50  ;;  %1565 = vmatprep.subr.bf16.mxu1 %v6807_v34 }
  0x9b   : > { %1246 = vmatprep.subr.bf16.mxu0 %v6941_v2 }
  0x9d   : > { %1566 = vmatpush1.bf16.msra.mxu1 %v6819_v35 }
  0x9e   : > { %1247 = vmatpush1.bf16.msra.mxu0 %v6955_v5  ;;  %1658 = vmatprep.subr.bf16.mxu1 %v6829_v38 }
  0x9f   : > { %4850 = vmatmul.mubr.msk.bf16.gmra.mrb[12].mxu0 %vm524_vm0, %v6959_v48  ;;  %4894 = vmatmul.mubr.msk.bf16.gmra.mrb[16].mxu1 %vm524_vm0, %v6959_v48 }
  0xa0   : > { %1268 = vmatprep.mubr.bf16.mxu0 %v8237_v8  ;;  %1587 = vmatprep.mubr.bf16.mxu1 %v8237_v8 }
  0xa1   : > { %1782 = vmatprep.subr.bf16.mxu0 %v6134_v25 }
  0xa7   : > { %4879 = vmatmul.mubr.msk.bf16.vlgmr.msra.gmra.mrb[0].mxu0 %vm524_vm0, %v6445_v21  ;;  %4895 = vmatmul.mubr.msk.bf16.vlgmr.msra.gmra.mrb[4].mxu1 %vm524_vm0, %v6445_v21 }
  0xa8   : > { %1659 = vmatpush1.bf16.msra.mxu1 %v6848_v45  ;;  %1278 = vmatprep.mubr.bf16.mxu0 %v8237_v8  ;;  %v6143_v45 = vld [vmem:[%s8177_s1 + $0xa0] ss:$8 sps:$4 sm:$0xff]  }
  0xa9   : > { %1660 = vmatprep.subr.bf16.mxu1 %v6853_v52  ;;  %1597 = vmatprep.mubr.bf16.mxu1 %v8237_v8  ;;  %v6137_v52 = vld [vmem:[%s8177_s1 + $0x70] ss:$8 sps:$4 sm:$0xff]  }
  0xaa   : > { %1783 = vmatpush1.bf16.msra.mxu0 %v6135_v47 }
  0xab   : > { %1784 = vmatprep.subr.bf16.mxu0 %v6136_v26 }
  0xac   : > { %1661 = vmatpush1.bf16.msra.mxu1 %v6870_v53  ;;  %v6139_v53 = vld [vmem:[%s8177_s1 + $0x80] ss:$8 sps:$4 sm:$0xff]  }
  0xad   : > { %1662 = vmatprep.subr.bf16.mxu1 %v6882_v57  ;;  %v6138_v57 = vld [vmem:[%s8177_s1 + $0x84] ss:$8 sps:$4 sm:$0xff]  }
  0xae   : > { %1785 = vmatpush1.bf16.msra.mxu0 %v6137_v52 }
  0xaf   : > { %4880 = vmatmul.mubr.msk.bf16.gmra.mrb[4].mxu0 %vm524_vm0, %v6484_v31  ;;  %4896 = vmatmul.mubr.msk.bf16.gmra.mrb[8].mxu1 %vm524_vm0, %v6484_v31 }
  0xb0   : > { %1663 = vmatpush1.bf16.msra.mxu1 %v6888_v61  ;;  %1288 = vmatprep.mubr.bf16.mxu0 %v8237_v8  ;;  %v6140_v61 = vld [vmem:[%s8177_s1 + $0x94] ss:$8 sps:$4 sm:$0xff]  }
  0xb1   : > { %1607 = vmatprep.mubr.bf16.mxu1 %v8237_v8  ;;  %1664 = vmatprep.subr.bf16.mxu1 %v6897_v4  ;;  %v6141_v4 = vld [vmem:[%s8177_s1 + $0x90] ss:$8 sps:$4 sm:$0xff]  }
  0xb2   : > { %1786 = vmatprep.subr.bf16.mxu0 %v6138_v57 }
  0xb3   : > { %1787 = vmatpush1.bf16.msra.mxu0 %v6139_v53 }
  0xb4   : > { %1665 = vmatpush1.bf16.msra.mxu1 %v6914_v14  ;;  %1788 = vmatprep.subr.bf16.mxu0 %v6140_v61  ;;  %v7027_v14 = vld [vmem:[%s6385_s24 + $0x1c] ss:$0 sps:$4 sm:$0xff]  }
  0xb5   : > { %1666 = vmatprep.subr.bf16.mxu1 %v6926_v42  ;;  %v6142_v42 = vld [vmem:[%s8177_s1 + $0xa4] ss:$8 sps:$4 sm:$0xff]  }
  0xb7   : > { %4881 = vmatmul.mubr.msk.bf16.gmra.mrb[8].mxu0 %vm524_vm0, %v6515_v37  ;;  %4897 = vmatmul.mubr.msk.bf16.gmra.mrb[12].mxu1 %vm524_vm0, %v6515_v37 }
  0xb8   : > { %1789 = vmatpush1.bf16.msra.mxu0 %v6141_v4  ;;  %1298 = vmatprep.mubr.bf16.mxu0 %v8237_v8 }
  0xb9   : > { %1617 = vmatprep.mubr.bf16.mxu1 %v8237_v8  ;;  %1667 = vmatpush1.bf16.msra.mxu1 %v6932_v50  ;;  %v6144_v50 = vld [vmem:[%s8177_s1 + $0xb4] ss:$8 sps:$4 sm:$0xff]  }
  0xba   : > { %1790 = vmatprep.subr.bf16.mxu0 %v6142_v42  ;;  %1668 = vmatprep.subr.bf16.mxu1 %v6941_v2  ;;  %v6145_v2 = vld [vmem:[%s8177_s1 + $0xb0] ss:$8 sps:$4 sm:$0xff]  }
  0xbc   : > { %1791 = vmatpush1.bf16.msra.mxu0 %v6143_v45 }
  0xbd   : > { %1669 = vmatpush1.bf16.msra.mxu1 %v6955_v5  ;;  %1792 = vmatprep.subr.bf16.mxu0 %v6144_v50  ;;  %v6146_v5 = vld [vmem:[%s8177_s1 + $0x4] ss:$8 sps:$4 sm:$0xff]  }
  0xbe   : > { %2204 = vmatprep.subr.bf16.mxu1 %v6134_v25  ;;  %v6147_v25 = vld [vmem:[%s8177_s1] ss:$8 sps:$4 sm:$0xff]  }
  0xbf   : > { %4882 = vmatmul.mubr.msk.bf16.gmra.mrb[12].mxu0 %vm524_vm0, %v7027_v14  ;;  %4898 = vmatmul.mubr.msk.bf16.gmra.mrb[16].mxu1 %vm524_vm0, %v7027_v14 }
  0xc0   : > { %1793 = vmatpush1.bf16.msra.mxu0 %v6145_v2  ;;  %1690 = vmatprep.mubr.bf16.mxu1 %v8237_v8 }
  0xc1   : > { %1814 = vmatprep.mubr.bf16.mxu0 %v8237_v8  ;;  %1853 = vmatprep.subr.bf16.mxu0 %v6146_v5 }
  0xc7   : > { %4903 = vmatmul.mubr.msk.bf16.vlgmr.msra.gmra.mrb[4].mxu1 %vm524_vm0, %v6403_v12  ;;  %4908 = vmatmul.mubr.msk.bf16.vlgmr.msra.gmra.mrb[16].mxu0 %vm524_vm0, %v6843_v43 }
  0xc8   : > { %2205 = vmatpush1.bf16.msra.mxu1 %v6135_v47  ;;  %1700 = vmatprep.mubr.bf16.mxu1 %v8237_v8 }
  0xc9   : > { %2206 = vmatprep.subr.bf16.mxu1 %v6136_v26  ;;  %1824 = vmatprep.mubr.bf16.mxu0 %v8237_v8  ;;  %v7078_v26 = vld [vmem:[%s6385_s24 + $0x3c] ss:$0 sps:$4 sm:$0xff]  }
  0xca   : > { %1854 = vmatpush1.bf16.msra.mxu0 %v6147_v25 }
  0xcb   : > { %1855 = vmatprep.subr.bf16.mxu0 %v6480_v30  ;;  %v6149_v30 = vld [vmem:[%s8177_s1 + $0x10] ss:$8 sps:$4 sm:$0xff]  }
  0xcc   : > { %2207 = vmatpush1.bf16.msra.mxu1 %v6137_v52  ;;  %v8255_v52 = vld [vmem:[#allocation15_spill] sm:$0xff] }
  0xcd   : > { %2208 = vmatprep.subr.bf16.mxu1 %v6138_v57  ;;  %v8257_v57 = vld [vmem:[#allocation21_spill] sm:$0xff] }
  0xce   : > { %1856 = vmatpush1.bf16.msra.mxu0 %v6493_v32  ;;  %v6150_v32 = vld [vmem:[%s8177_s1 + $0x24] ss:$8 sps:$4 sm:$0xff]  }
  0xcf   : > { %4904 = vmatmul.mubr.msk.bf16.gmra.mrb[8].mxu1 %vm524_vm0, %v6648_v1  ;;  %4909 = vmatmul.mubr.msk.bf16.gmra.mrb[20].mxu0 %vm524_vm0, %v6874_v55 }
  0xd0   : > { %2209 = vmatpush1.bf16.msra.mxu1 %v6139_v53  ;;  %1710 = vmatprep.mubr.bf16.mxu1 %v8237_v8  ;;  %v8256_v53 = vld [vmem:[#allocation10_spill] sm:$0xff] }
  0xd1   : > { %1834 = vmatprep.mubr.bf16.mxu0 %v8237_v8  ;;  %1857 = vmatprep.subr.bf16.mxu0 %v6511_v36  ;;  %v6151_v36 = vld [vmem:[%s8177_s1 + $0x20] ss:$8 sps:$4 sm:$0xff]  }
  0xd2   : > { %2210 = vmatprep.subr.bf16.mxu1 %v6140_v61  ;;  %1858 = vmatpush1.bf16.msra.mxu0 %v6527_v39  ;;  %v6152_v39 = vld [vmem:[%s8177_s1 + $0x34] ss:$8 sps:$4 sm:$0xff]   ;;  %v8258_v61 = vld [vmem:[#allocation16_spill] sm:$0xff] }
  0xd3   : > { %1859 = vmatprep.subr.bf16.mxu0 %v6534_v40  ;;  %v6153_v40 = vld [vmem:[%s8177_s1 + $0x30] ss:$8 sps:$4 sm:$0xff]  }
  0xd4   : > { %2211 = vmatpush1.bf16.msra.mxu1 %v6141_v4  ;;  %v4950_v4 = vcombine.low %v8258_v61, %v8257_v57 }
  0xd5   : > { %2212 = vmatprep.subr.bf16.mxu1 %v6142_v42 }
  0xd6   : > { %1860 = vmatpush1.bf16.msra.mxu0 %v6541_v41  ;;  %v6154_v41 = vld [vmem:[%s8177_s1 + $0x44] ss:$8 sps:$4 sm:$0xff]  }
  0xd7   : > { %4905 = vmatmul.mubr.msk.bf16.gmra.mrb[12].mxu1 %vm524_vm0, %v6672_v7  ;;  %4910 = vmatmul.mubr.msk.bf16.gmra.mrb[24].mxu0 %vm524_vm0, %v6918_v16 }
  0xd8   : > { %1720 = vmatprep.mubr.bf16.mxu1 %v8237_v8  ;;  %1844 = vmatprep.mubr.bf16.mxu0 %v8237_v8 }
  0xd9   : > { %2213 = vmatpush1.bf16.msra.mxu1 %v6143_v45  ;;  %1861 = vmatprep.subr.bf16.mxu0 %v6552_v44  ;;  %v6155_v44 = vld [vmem:[%s8177_s1 + $0x40] ss:$8 sps:$4 sm:$0xff]   ;;  %v5979_v45 = vld [vmem:[%s8179_s3 + $0xf0] ss:$8 sps:$4 sm:$0xff]  }
  0xda   : > { %1862 = vmatpush1.bf16.msra.mxu0 %v6562_v46  ;;  %2214 = vmatprep.subr.bf16.mxu1 %v6144_v50  ;;  %v6156_v46 = vld [vmem:[%s8177_s1 + $0x54] ss:$8 sps:$4 sm:$0xff]  }
  0xdb   : > { %1863 = vmatprep.subr.bf16.mxu0 %v6575_v49 }
  0xdd   : > { %2215 = vmatpush1.bf16.msra.mxu1 %v6145_v2  ;;  %v6148_v2 = vld [vmem:[%s8177_s1 + $0x14] ss:$8 sps:$4 sm:$0xff]  }
  0xde   : > { %1864 = vmatpush1.bf16.msra.mxu0 %v6584_v51  ;;  %2275 = vmatprep.subr.bf16.mxu1 %v6146_v5 }
  0xdf   : > { %4906 = vmatmul.mubr.msk.bf16.gmra.mrb[16].mxu1 %vm524_vm0, %v7078_v26  ;;  %4911 = vmatmul.mubr.msk.bf16.gmra.mrb[28].mxu0 %vm524_vm0, %v6959_v48 }
  0xe0   : > { %1885 = vmatprep.mubr.bf16.mxu0 %v8237_v8  ;;  %2236 = vmatprep.mubr.bf16.mxu1 %v8237_v8 }
  0xe1   : > { %1924 = vmatprep.subr.bf16.mxu0 %v6595_v54 }
  0xe7   : > { %4912 = vmatmul.mubr.msk.bf16.vlgmr.msra.gmra.mrb[16].mxu0 %vm524_vm0, %v6600_v56  ;;  %4932 = vmatmul.mubr.msk.bf16.vlgmr.msra.gmra.mrb[20].mxu1 %vm524_vm0, %v6445_v21  ;;  %v8246_v56 = vld [vmem:[#allocation17_spill] sm:$0xff] }
  0xe8   : > { %2276 = vmatpush1.bf16.msra.mxu1 %v6147_v25  ;;  %1895 = vmatprep.mubr.bf16.mxu0 %v8237_v8 }
  0xe9   : > { %2277 = vmatprep.subr.bf16.mxu1 %v6148_v2  ;;  %2246 = vmatprep.mubr.bf16.mxu1 %v8237_v8 }
  0xea   : > { %1925 = vmatpush1.bf16.msra.mxu0 %v6610_v58 }
  0xeb   : > { %1926 = vmatprep.subr.bf16.mxu0 %v6615_v59 }
  0xec   : > { %2278 = vmatpush1.bf16.msra.mxu1 %v6149_v30 }
  0xed   : > { %2279 = vmatprep.subr.bf16.mxu1 %v6150_v32 }
  0xee   : > { %1927 = vmatpush1.bf16.msra.mxu0 %v6625_v60 }
  0xef   : > { %4913 = vmatmul.mubr.msk.bf16.gmra.mrb[20].mxu0 %vm524_vm0, %v6633_v62  ;;  %4933 = vmatmul.mubr.msk.bf16.gmra.mrb[24].mxu1 %vm524_vm0, %v6484_v31  ;;  %v8250_v62 = vld [vmem:[#allocation22_spill] sm:$0xff] }
  0xf0   : > { %2280 = vmatpush1.bf16.msra.mxu1 %v6151_v36  ;;  %1905 = vmatprep.mubr.bf16.mxu0 %v8237_v8 }
  0xf1   : > { %2256 = vmatprep.mubr.bf16.mxu1 %v8237_v8  ;;  %1928 = vmatprep.subr.bf16.mxu0 %v6639_v63 }
  0xf2   : > { %2281 = vmatprep.subr.bf16.mxu1 %v6152_v39  ;;  %1929 = vmatpush1.bf16.msra.mxu0 %v6645_v0 }
  0xf3   : > { %1930 = vmatprep.subr.bf16.mxu0 %v6654_v3 }
  0xf4   : > { %2282 = vmatpush1.bf16.msra.mxu1 %v6153_v40 }
  0xf5   : > { %2283 = vmatprep.subr.bf16.mxu1 %v6154_v41 }
  0xf6   : > { %1931 = vmatpush1.bf16.msra.mxu0 %v6667_v6 }
  0xf7   : > { %4914 = vmatmul.mubr.msk.bf16.gmra.mrb[24].mxu0 %vm524_vm0, %v6678_v9  ;;  %4934 = vmatmul.mubr.msk.bf16.gmra.mrb[28].mxu1 %vm524_vm0, %v6515_v37 }
  0xf8   : > { %1915 = vmatprep.mubr.bf16.mxu0 %v8237_v8  ;;  %2266 = vmatprep.mubr.bf16.mxu1 %v8237_v8 }
  0xf9   : > { %2284 = vmatpush1.bf16.msra.mxu1 %v6155_v44  ;;  %1932 = vmatprep.subr.bf16.mxu0 %v6684_v10 }
  0xfa   : > { %1933 = vmatpush1.bf16.msra.mxu0 %v6690_v11  ;;  %2285 = vmatprep.subr.bf16.mxu1 %v6156_v46 }
  0xfb   : > { %1934 = vmatprep.subr.bf16.mxu0 %v6696_v13 }
  0xfd   : > { %2286 = vmatpush1.bf16.msra.mxu1 %v6584_v51 }
  0xfe   : > { %1935 = vmatpush1.bf16.msra.mxu0 %v6710_v15  ;;  %2346 = vmatprep.subr.bf16.mxu1 %v6595_v54  ;;  %v8245_v54 = vld [vmem:[#allocation14_spill] sm:$0xff] }
  0xff   : > { %4915 = vmatmul.mubr.msk.bf16.gmra.mrb[28].mxu0 %vm524_vm0, %v6716_v17  ;;  %4935 = vmatmul.mubr.msk.bf16.gmra.mrb[32].mxu1 %vm524_vm0, %v7027_v14  ;;  %v6159_v17 = vld [vmem:[%s6385_s24 + $0x54] sm:$0xf] }
 0x100   : > { %1956 = vmatprep.mubr.bf16.mxu0 %v8237_v8  ;;  %2307 = vmatprep.mubr.bf16.mxu1 %v8237_v8 }
 0x101   : > { %2009 = vmatprep.subr.bf16.mxu0 %v6722_v18 }
 0x102   : > { %v7154_v47 = vpop.f32.mrb[0].mxu1 }
 0x103   : > { %v7156_v49 = vpop.f32.mrb[1].mxu1 }
 0x104   : > { %v605_v50 = vpop.f32.mrb[2].mxu1 }
 0x105   : > { %v606_v51 = vpop.f32.mrb[3].mxu1 }
 0x107   : > { %4916 = vmatmul.mubr.msk.bf16.vlgmr.msra.gmra.mrb[16].mxu0 %vm524_vm0, %v6445_v21  ;;  %4936 = vmatmul.mubr.msk.bf16.vlgmr.msra.gmra.mrb[20].mxu1 %vm524_vm0, %v6843_v43  ;;  %v8240_v21 = vld [vmem:[#allocation8_spill] sm:$0xff] }
 0x108   : > { %2347 = vmatpush1.bf16.msra.mxu1 %v6610_v58  ;;  %1966 = vmatprep.mubr.bf16.mxu0 %v8237_v8  ;;  %v8247_v58 = vld [vmem:[#allocation18_spill] sm:$0xff] }
 0x109   : > { %2348 = vmatprep.subr.bf16.mxu1 %v6615_v59  ;;  %2317 = vmatprep.mubr.bf16.mxu1 %v8237_v8  ;;  %v8248_v59 = vld [vmem:[#allocation19_spill] sm:$0xff] }
 0x10a   : > { %2010 = vmatpush1.bf16.msra.mxu0 %v6736_v19 }
 0x10b   : > { %2011 = vmatprep.subr.bf16.mxu0 %v6741_v20 }
 0x10c   : > { %2349 = vmatpush1.bf16.msra.mxu1 %v6625_v60  ;;  %v8249_v60 = vld [vmem:[#allocation20_spill] sm:$0xff] }
 0x10d   : > { %2350 = vmatprep.subr.bf16.mxu1 %v6639_v63  ;;  %v5960_v63 = vld [vmem:[%s8179_s3 + $0x84] ss:$8 sps:$4 sm:$0xff]  }
 0x10e   : > { %2012 = vmatpush1.bf16.msra.mxu0 %v6752_v22 }
 0x10f   : > { %4917 = vmatmul.mubr.msk.bf16.gmra.mrb[20].mxu0 %vm524_vm0, %v6484_v31  ;;  %4937 = vmatmul.mubr.msk.bf16.gmra.mrb[24].mxu1 %vm524_vm0, %v6874_v55  ;;  %v8241_v31 = vld [vmem:[#allocation9_spill] sm:$0xff]  ;;  %v4949_v55 = vcombine.low %v8256_v53, %v8255_v52 }
 0x110   : > { %2351 = vmatpush1.bf16.msra.mxu1 %v6645_v0  ;;  %1976 = vmatprep.mubr.bf16.mxu0 %v8237_v8  ;;  %v8251_v0 = vld [vmem:[#allocation5_spill] sm:$0xff] }
 0x111   : > { %2327 = vmatprep.mubr.bf16.mxu1 %v8237_v8  ;;  %2013 = vmatprep.subr.bf16.mxu0 %v6761_v23 }
 0x112   : > { %2352 = vmatprep.subr.bf16.mxu1 %v6654_v3  ;;  %2014 = vmatpush1.bf16.msra.mxu0 %v6767_v24  ;;  %v5963_v3 = vld [vmem:[%s8179_s3 + $0x94] ss:$8 sps:$4 sm:$0xff]  }
 0x113   : > { %2015 = vmatprep.subr.bf16.mxu0 %v6773_v27 }
 0x114   : > { %2353 = vmatpush1.bf16.msra.mxu1 %v6667_v6  ;;  %v6157_v6 = vld [vmem:[%s6385_s24 + $0x4c] sm:$0xf] }
 0x115   : > { %2354 = vmatprep.subr.bf16.mxu1 %v6684_v10  ;;  %v5961_v10 = vld [vmem:[%s8179_s3 + $0x90] ss:$8 sps:$4 sm:$0xff]  }
 0x116   : > { %2016 = vmatpush1.bf16.msra.mxu0 %v6785_v28 }
 0x117   : > { %4918 = vmatmul.mubr.msk.bf16.gmra.mrb[24].mxu0 %vm524_vm0, %v6515_v37  ;;  %4938 = vmatmul.mubr.msk.bf16.gmra.mrb[28].mxu1 %vm524_vm0, %v6918_v16  ;;  %v8242_v37 = vld [vmem:[#allocation11_spill] sm:$0xff]  ;;  %v5957_v16 = vld [vmem:[%s6385_s24 + $0x7c] ss:$0 sps:$4 sm:$0xff]  }
 0x118   : > { %1986 = vmatprep.mubr.bf16.mxu0 %v8237_v8  ;;  %2337 = vmatprep.mubr.bf16.mxu1 %v8237_v8 }
 0x119   : > { %2355 = vmatpush1.bf16.msra.mxu1 %v6690_v11  ;;  %2017 = vmatprep.subr.bf16.mxu0 %v6795_v29  ;;  %v5966_v11 = vld [vmem:[%s8179_s3 + $0xa4] ss:$8 sps:$4 sm:$0xff]  }
 0x11a   : > { %2018 = vmatpush1.bf16.msra.mxu0 %v6801_v33  ;;  %2356 = vmatprep.subr.bf16.mxu1 %v6696_v13  ;;  %v5964_v13 = vld [vmem:[%s8179_s3 + $0xa0] ss:$8 sps:$4 sm:$0xff]  }
 0x11b   : > { %2019 = vmatprep.subr.bf16.mxu0 %v6807_v34 }
 0x11d   : > { %2357 = vmatpush1.bf16.msra.mxu1 %v6710_v15  ;;  %v5969_v15 = vld [vmem:[%s8179_s3 + $0xb4] ss:$8 sps:$4 sm:$0xff]  }
 0x11e   : > { %2020 = vmatpush1.bf16.msra.mxu0 %v6819_v35  ;;  %2431 = vmatprep.subr.bf16.mxu1 %v6722_v18  ;;  %v6160_v18 = vld [vmem:[%s6385_s24 + $0x58] sm:$0xf] }
 0x11f   : > { %4919 = vmatmul.mubr.msk.bf16.gmra.mrb[28].mxu0 %vm524_vm0, %v7027_v14  ;;  %4939 = vmatmul.mubr.msk.bf16.gmra.mrb[32].mxu1 %vm524_vm0, %v6959_v48  ;;  %v8244_v48 = vld [vmem:[#allocation13_spill] sm:$0xff] }
 0x120   : > { %2041 = vmatprep.mubr.bf16.mxu0 %v8237_v8  ;;  %2378 = vmatprep.mubr.bf16.mxu1 %v8237_v8 }
 0x121   : > { %2112 = vmatprep.subr.bf16.mxu0 %v6829_v38 }
 0x127   : > { %4920 = vmatmul.mubr.msk.bf16.vlgmr.msra.gmra.mrb[16].mxu0 %vm524_vm0, %v6403_v12  ;;  %4940 = vmatmul.mubr.msk.bf16.vlgmr.msra.gmra.mrb[20].mxu1 %vm524_vm0, %v6403_v12  ;;  %v8243_v12 = vld [vmem:[#allocation12_spill] sm:$0xff] }
 0x128   : > { %2432 = vmatpush1.bf16.msra.mxu1 %v6736_v19  ;;  %2051 = vmatprep.mubr.bf16.mxu0 %v8237_v8  ;;  %v4926_v19 = vcombine.low %v6159_v17, %v6160_v18 }
 0x129   : > { %2433 = vmatprep.subr.bf16.mxu1 %v6741_v20  ;;  %2388 = vmatprep.mubr.bf16.mxu1 %v8237_v8  ;;  %v5967_v20 = vld [vmem:[%s8179_s3 + $0xb0] ss:$8 sps:$4 sm:$0xff]  }
 0x12a   : > { %2113 = vmatpush1.bf16.msra.mxu0 %v8240_v21 }
 0x12b   : > { %2114 = vmatprep.subr.bf16.mxu0 %v8241_v31 }
 0x12c   : > { %2434 = vmatpush1.bf16.msra.mxu1 %v6752_v22  ;;  %v5972_v22 = vld [vmem:[%s8179_s3 + $0xc4] ss:$8 sps:$4 sm:$0xff]  }
 0x12d   : > { %2435 = vmatprep.subr.bf16.mxu1 %v6761_v23  ;;  %v5954_v23 = vld [vmem:[%s6385_s24 + $0x5c] ss:$0 sps:$4 sm:$0xff]  }
 0x12e   : > { %2115 = vmatpush1.bf16.msra.mxu0 %v8242_v37 }
 0x12f   : > { %4921 = vmatmul.mubr.msk.bf16.gmra.mrb[20].mxu0 %vm524_vm0, %v6648_v1  ;;  %4941 = vmatmul.mubr.msk.bf16.gmra.mrb[24].mxu1 %vm524_vm0, %v6648_v1  ;;  %v5958_v1 = vld [vmem:[%s8179_s3 + $0x80] ss:$8 sps:$4 sm:$0xff]  }
 0x130   : > { %2436 = vmatpush1.bf16.msra.mxu1 %v6767_v24  ;;  %2061 = vmatprep.mubr.bf16.mxu0 %v8237_v8  ;;  %v5970_v24 = vld [vmem:[%s8179_s3 + $0xc0] ss:$8 sps:$4 sm:$0xff]  }
 0x131   : > { %2398 = vmatprep.mubr.bf16.mxu1 %v8237_v8  ;;  %2116 = vmatprep.subr.bf16.mxu0 %v8243_v12 }
 0x132   : > { %2437 = vmatprep.subr.bf16.mxu1 %v6773_v27  ;;  %2117 = vmatpush1.bf16.msra.mxu0 %v8244_v48  ;;  %v5975_v27 = vld [vmem:[%s8179_s3 + $0xd4] ss:$8 sps:$4 sm:$0xff]  }
 0x133   : > { %2118 = vmatprep.subr.bf16.mxu0 %v8245_v54 }
 0x134   : > { %2438 = vmatpush1.bf16.msra.mxu1 %v6785_v28  ;;  %v5973_v28 = vld [vmem:[%s8179_s3 + $0xd0] ss:$8 sps:$4 sm:$0xff]  }
 0x135   : > { %2439 = vmatprep.subr.bf16.mxu1 %v6795_v29  ;;  %v5978_v29 = vld [vmem:[%s8179_s3 + $0xe4] ss:$8 sps:$4 sm:$0xff]  }
 0x136   : > { %2119 = vmatpush1.bf16.msra.mxu0 %v8246_v56 }
 0x137   : > { %4922 = vmatmul.mubr.msk.bf16.gmra.mrb[24].mxu0 %vm524_vm0, %v6672_v7  ;;  %4942 = vmatmul.mubr.msk.bf16.gmra.mrb[28].mxu1 %vm524_vm0, %v6672_v7  ;;  %v6158_v7 = vld [vmem:[%s6385_s24 + $0x50] sm:$0xf]  ;;  %s4632_s24 = scalar_lea.sflag [#allocation3], %s377_s30 }
 0x138   : > { %2071 = vmatprep.mubr.bf16.mxu0 %v8237_v8  ;;  %2408 = vmatprep.mubr.bf16.mxu1 %v8237_v8  ;;  %v4925_v9 = vcombine.low %v6157_v6, %v6158_v7 }
 0x139   : > { %2440 = vmatpush1.bf16.msra.mxu1 %v6801_v33  ;;  %2120 = vmatprep.subr.bf16.mxu0 %v8247_v58  ;;  %v5976_v33 = vld [vmem:[%s8179_s3 + $0xe0] ss:$8 sps:$4 sm:$0xff]  }
 0x13a   : > { %2121 = vmatpush1.bf16.msra.mxu0 %v8248_v59  ;;  %2441 = vmatprep.subr.bf16.mxu1 %v6807_v34  ;;  %v5981_v34 = vld [vmem:[%s8179_s3 + $0xf4] ss:$8 sps:$4 sm:$0xff]  }
 0x13b   : > { %2122 = vmatprep.subr.bf16.mxu0 %v8249_v60 }
 0x13d   : > { %2442 = vmatpush1.bf16.msra.mxu1 %v6819_v35  ;;  %v8252_v35 = vld [vmem:[#allocation6_spill] sm:$0xff] }
 0x13e   : > { %2123 = vmatpush1.bf16.msra.mxu0 %v8250_v62  ;;  %2534 = vmatprep.subr.bf16.mxu1 %v6829_v38  ;;  %v8253_v38 = vld [vmem:[#allocation7_spill] sm:$0xff] }
 0x13f   : > { %4923 = vmatmul.mubr.msk.bf16.gmra.mrb[28].mxu0 %vm524_vm0, %v7078_v26  ;;  %4943 = vmatmul.mubr.msk.bf16.gmra.mrb[32].mxu1 %vm524_vm0, %v7078_v26  ;;  %v8254_v43 = vcombine.low %v8252_v35, %v8253_v38 }
 0x140   : > { %2144 = vmatprep.mubr.bf16.mxu0 %v8237_v8  ;;  %2463 = vmatprep.mubr.bf16.mxu1 %v8237_v8 }
 0x141   : > { %2764 = vmatprep.subr.bf16.mxu0 %v5960_v63 }
 0x147   : > { %4928 = vmatmul.mubr.msk.bf16.vlgmr.msra.gmra.mrb[16].mxu0 %vm524_vm0, %v8251_v0  ;;  %4944 = vmatmul.mubr.msk.bf16.vlgmr.msra.gmra.mrb[20].mxu1 %vm524_vm0, %v8251_v0 }
 0x148   : > { %2535 = vmatpush1.bf16.msra.mxu1 %v8240_v21  ;;  %2154 = vmatprep.mubr.bf16.mxu0 %v8237_v8 }
 0x149   : > { %2536 = vmatprep.subr.bf16.mxu1 %v8241_v31  ;;  %2473 = vmatprep.mubr.bf16.mxu1 %v8237_v8 }
 0x14a   : > { %2765 = vmatpush1.bf16.msra.mxu0 %v5958_v1 }
 0x14b   : > { %2766 = vmatprep.subr.bf16.mxu0 %v5963_v3 }
 0x14c   : > { %2537 = vmatpush1.bf16.msra.mxu1 %v8242_v37 }
 0x14d   : > { %2538 = vmatprep.subr.bf16.mxu1 %v8243_v12 }
 0x14e   : > { %2767 = vmatpush1.bf16.msra.mxu0 %v5961_v10 }
 0x14f   : > { %4929 = vmatmul.mubr.msk.bf16.gmra.mrb[20].mxu0 %vm524_vm0, %v4925_v9  ;;  %4945 = vmatmul.mubr.msk.bf16.gmra.mrb[24].mxu1 %vm524_vm0, %v4925_v9 }
 0x150   : > { %2539 = vmatpush1.bf16.msra.mxu1 %v8244_v48  ;;  %2164 = vmatprep.mubr.bf16.mxu0 %v8237_v8 }
 0x151   : > { %2483 = vmatprep.mubr.bf16.mxu1 %v8237_v8  ;;  %2540 = vmatprep.subr.bf16.mxu1 %v8245_v54 }
 0x152   : > { %2768 = vmatprep.subr.bf16.mxu0 %v5966_v11 }
 0x153   : > { %2769 = vmatpush1.bf16.msra.mxu0 %v5964_v13 }
 0x154   : > { %2541 = vmatpush1.bf16.msra.mxu1 %v8246_v56  ;;  %2770 = vmatprep.subr.bf16.mxu0 %v5969_v15 }
 0x155   : > { %2542 = vmatprep.subr.bf16.mxu1 %v8247_v58 }
 0x157   : > { %4930 = vmatmul.mubr.msk.bf16.gmra.mrb[24].mxu0 %vm524_vm0, %v4926_v19  ;;  %4946 = vmatmul.mubr.msk.bf16.gmra.mrb[28].mxu1 %vm524_vm0, %v4926_v19 }
 0x158   : > { %2174 = vmatprep.mubr.bf16.mxu0 %v8237_v8  ;;  %2493 = vmatprep.mubr.bf16.mxu1 %v8237_v8 }
 0x159   : > { %2543 = vmatpush1.bf16.msra.mxu1 %v8248_v59  ;;  %2771 = vmatpush1.bf16.msra.mxu0 %v5967_v20 }
 0x15a   : > { %2544 = vmatprep.subr.bf16.mxu1 %v8249_v60  ;;  %2772 = vmatprep.subr.bf16.mxu0 %v5972_v22 }
 0x15d   : > { %2545 = vmatpush1.bf16.msra.mxu1 %v8250_v62  ;;  %2773 = vmatpush1.bf16.msra.mxu0 %v5970_v24 }
 0x15e   : > { %3498 = vmatprep.subr.bf16.mxu1 %v5960_v63  ;;  %2774 = vmatprep.subr.bf16.mxu0 %v5975_v27 }
 0x15f   : > { %4931 = vmatmul.mubr.msk.bf16.gmra.mrb[28].mxu0 %vm524_vm0, %v5954_v23  ;;  %4947 = vmatmul.mubr.msk.bf16.gmra.mrb[32].mxu1 %vm524_vm0, %v5954_v23 }
 0x160   : > { %2566 = vmatprep.mubr.bf16.mxu1 %v8237_v8  ;;  %2796 = vmatprep.mubr.bf16.mxu0 %v8237_v8 }
 0x161   : > { %2775 = vmatpush1.bf16.msra.mxu0 %v5973_v28 }
 0x162   : > { %2776 = vmatprep.subr.bf16.mxu0 %v5978_v29 }
 0x165   : > { %2777 = vmatpush1.bf16.msra.mxu0 %v5976_v33 }
 0x166   : > { %2778 = vmatprep.subr.bf16.mxu0 %v5981_v34 }
 0x167   : > { %4952 = vmatmul.mubr.msk.bf16.vlgmr.msra.gmra.mrb[20].mxu1 %vm524_vm0, %v8254_v43 }
 0x168   : > { %2576 = vmatprep.mubr.bf16.mxu1 %v8237_v8  ;;  %3499 = vmatpush1.bf16.msra.mxu1 %v5958_v1  ;;  %v7362_v1 = vld [vmem:[%s8178_s2] ss:$0 sm:$0xff] }
 0x169   : > { %3500 = vmatprep.subr.bf16.mxu1 %v5963_v3  ;;  %2779 = vmatpush1.bf16.msra.mxu0 %v5979_v45 }
 0x16c   : > { %3501 = vmatpush1.bf16.msra.mxu1 %v5961_v10 }
 0x16d   : > { %3502 = vmatprep.subr.bf16.mxu1 %v5966_v11 }
 0x16f   : > { %4953 = vmatmul.mubr.msk.bf16.gmra.mrb[24].mxu1 %vm524_vm0, %v4949_v55 }
 0x170   : > { %2586 = vmatprep.mubr.bf16.mxu1 %v8237_v8  ;;  %3503 = vmatpush1.bf16.msra.mxu1 %v5964_v13 }
 0x171   : > { %3504 = vmatprep.subr.bf16.mxu1 %v5969_v15 }
 0x174   : > { %3505 = vmatpush1.bf16.msra.mxu1 %v5967_v20  ;;  %v5984_v20 = vld [vmem:[%s8179_s3 + $0x4] ss:$8 sps:$4 sm:$0xff]  }
 0x175   : > { %3506 = vmatprep.subr.bf16.mxu1 %v5972_v22  ;;  %2905 = vmatprep.subr.bf16.mxu0 %v5984_v20 }
 0x177   : > { %4954 = vmatmul.mubr.msk.bf16.gmra.mrb[28].mxu1 %vm524_vm0, %v4950_v4 }
 0x178   : > { %2596 = vmatprep.mubr.bf16.mxu1 %v8237_v8  ;;  %3507 = vmatpush1.bf16.msra.mxu1 %v5970_v24 }
 0x179   : > { %3508 = vmatprep.subr.bf16.mxu1 %v5975_v27 }
 0x17a   : > { %v1270_v5 = vpop.f32.mrb[0].mxu0 }
 0x17b   : > { %v1272_v14 = vpop.f32.mrb[1].mxu0 }
 0x17c   : > { %v1321_v42 = vmax.f32 %v1270_v5, %v1272_v14  ;;  %v1274_v25 = vpop.f32.mrb[2].mxu0  ;;  %3509 = vmatpush1.bf16.msra.mxu1 %v5973_v28 }
 0x17d   : > { %v1276_v26 = vpop.f32.mrb[3].mxu0  ;;  %3510 = vmatprep.subr.bf16.mxu1 %v5978_v29 }
 0x17e   : > { %v1322_v2 = vmax.f32 %v1274_v25, %v1276_v26 }
 0x17f   : > { %4955 = vmatmul.mubr.msk.bf16.gmra.mrb[32].mxu1 %vm524_vm0, %v5957_v16  ;;  %v7381_v16 = vld [vmem:[%s8179_s3] ss:$8 sps:$4 sm:$0xff]  }
 0x180   : > { %3511 = vmatpush1.bf16.msra.mxu1 %v5976_v33  ;;  %3530 = vmatprep.mubr.bf16.mxu1 %v8237_v8 }
 0x181   : > { %3512 = vmatprep.subr.bf16.mxu1 %v5981_v34 }
 0x182   : > { %v1280_v30 = vpop.f32.mrb[4].mxu0 }
 0x183   : > { %v1282_v32 = vpop.f32.mrb[5].mxu0 }
 0x184   : > { %v1323_v36 = vmax.f32 %v1280_v30, %v1282_v32  ;;  %v1284_v39 = vpop.f32.mrb[6].mxu0  ;;  %3513 = vmatpush1.bf16.msra.mxu1 %v5979_v45 }
 0x185   : > { %v1286_v40 = vpop.f32.mrb[7].mxu0  ;;  %3559 = vmatprep.subr.bf16.mxu1 %v5984_v20 }
 0x186   : > { %v1324_v41 = vmax.f32 %v1284_v39, %v1286_v40 }
 0x18a   : > { %v1290_v44 = vpop.f32.mrb[8].mxu0 }
 0x18b   : > { %v1292_v46 = vpop.f32.mrb[9].mxu0 }
 0x18c   : > { %v1325_v50 = vmax.f32 %v1290_v44, %v1292_v46  ;;  %v1294_v51 = vpop.f32.mrb[10].mxu0  ;;  %v7404_v46 = vld [vmem:[%s8179_s3 + $0x24] ss:$8 sps:$4 sm:$0xff]  }
 0x18d   : > { %v1296_v21 = vpop.f32.mrb[11].mxu0 }
 0x18e   : > { %v1326_v31 = vmax.f32 %v1294_v51, %v1296_v21 }
 0x192   : > { %v1300_v37 = vpop.f32.mrb[12].mxu0 }
 0x193   : > { %v7352_v12 = vadd.f32 %v1300_v37, %v7154_v47  ;;  %v1302_v48 = vpop.f32.mrb[13].mxu0  ;;  %v7423_v37 = vld [vmem:[%s8179_s3 + $0x34] ss:$8 sps:$4 sm:$0xff]  }
 0x194   : > { %v7355_v54 = vadd.f32 %v1302_v48, %v7156_v49  ;;  %v1304_v56 = vpop.f32.mrb[14].mxu0  ;;  %v7435_v48 = vld [vmem:[%s8179_s3 + $0x30] ss:$8 sps:$4 sm:$0xff]  }
 0x195   : > { %v1305_v58 = vpop.f32.mrb[15].mxu0  ;;  %v7447_v56 = vld [vmem:[%s8179_s3 + $0x40] ss:$8 sps:$4 sm:$0xff]  }
 0x196   : > { %v1327_v59 = vmax.f32 %v7352_v12, %v7355_v54  ;;  %v7441_v54 = vld [vmem:[%s8179_s3 + $0x44] ss:$8 sps:$4 sm:$0xff]   ;;  %v7453_v58 = vld [vmem:[%s8179_s3 + $0x54] ss:$8 sps:$4 sm:$0xff]  }
 0x19a   : > { %v1692_v60 = vpop.f32.mrb[4].mxu1 }
 0x19b   : > { %v1694_v62 = vpop.f32.mrb[5].mxu1 }
 0x19c   : > { %v1743_v63 = vmax.f32 %v1692_v60, %v1694_v62  ;;  %v1696_v0 = vpop.f32.mrb[6].mxu1  ;;  %v7467_v60 = vld [vmem:[%s8179_s3 + $0x64] ss:$8 sps:$4 sm:$0xff]   ;;  %v7473_v62 = vld [vmem:[%s8179_s3 + $0x60] ss:$8 sps:$4 sm:$0xff]  }
 0x19d   : > { %v1698_v47 = vpop.f32.mrb[7].mxu1 }
 0x19e   : > { %v1750_v3 = vmax.f32 %v1321_v42, %v1743_v63  ;;  %v1744_v6 = vmax.f32 %v1696_v0, %v1698_v47  ;;  %v7386_v42 = vld [vmem:[%s8179_s3 + $0x14] ss:$8 sps:$4 sm:$0xff]   ;;  %v7485_v0 = vld [vmem:[%s8179_s3 + $0x70] ss:$8 sps:$4 sm:$0xff]   ;;  %v7491_v47 = vld [vmem:[%s8179_s3 + $0x104] ss:$8 sps:$4 sm:$0xff]  }
 0x19f   : > { %v7479_v63 = vld [vmem:[%s8179_s3 + $0x74] ss:$8 sps:$4 sm:$0xff]  }
 0x1a0   : > { %v1764_v49 = vadd.f32 %v7362_v1, %v1750_v3  ;;  %v1751_v7 = vmax.f32 %v1322_v2, %v1744_v6 }
 0x1a2   : > { %v1765_v9 = vadd.f32 %v7362_v1, %v1751_v7  ;;  %v1702_v10 = vpop.f32.mrb[8].mxu1  ;;  %v1771_v13 = vmax.f32 %v1764_v49, 0.0 }
 0x1a3   : > { %v1704_v11 = vpop.f32.mrb[9].mxu1 }
 0x1a4   : > { %v1772_v15 = vmax.f32 %v1765_v9, 0.0  ;;  %v1745_v17 = vmax.f32 %v1702_v10, %v1704_v11  ;;  %v1706_v18 = vpop.f32.mrb[10].mxu1 }
 0x1a5   : > { %v1708_v19 = vpop.f32.mrb[11].mxu1 }
 0x1a6   : > { %v7369_v22 = vpack.c.bf16 %v1772_v15, %v1771_v13  ;;  %v1752_v23 = vmax.f32 %v1323_v36, %v1745_v17  ;;  %v1746_v24 = vmax.f32 %v1706_v18, %v1708_v19 }
 0x1a8   : > { %v1766_v27 = vadd.f32 %v7362_v1, %v1752_v23  ;;  %v1753_v28 = vmax.f32 %v1324_v41, %v1746_v24  ;;  %v2987_v61 = vrot.slane %v7369_v22, 4  ;;  %v7398_v41 = vld [vmem:[%s8179_s3 + $0x10] ss:$8 sps:$4 sm:$0xff]  }
 0x1aa   : > { %v1767_v29 = vadd.f32 %v7362_v1, %v1753_v28  ;;  %v1712_v33 = vpop.f32.mrb[12].mxu1  ;;  %v1773_v35 = vmax.f32 %v1766_v27, 0.0 }
 0x1ab   : > { %v1714_v34 = vpop.f32.mrb[13].mxu1 }
 0x1ac   : > { %v1774_v38 = vmax.f32 %v1767_v29, 0.0  ;;  %v1747_v43 = vmax.f32 %v1712_v33, %v1714_v34  ;;  %v1716_v45 = vpop.f32.mrb[14].mxu1 }
 0x1ad   : > { %v1718_v52 = vpop.f32.mrb[15].mxu1 }
 0x1ae   : > { %v7373_v53 = vpack.c.bf16 %v1774_v38, %v1773_v35  ;;  %v1754_v55 = vmax.f32 %v1325_v50, %v1747_v43  ;;  %v1748_v57 = vmax.f32 %v1716_v45, %v1718_v52 }
 0x1b0   : > { %v1768_v4 = vadd.f32 %v7362_v1, %v1754_v55  ;;  %v1755_v5 = vmax.f32 %v1326_v31, %v1748_v57  ;;  %v2988_v14 = vrot.slane %v7373_v53, 4  ;;  %v7417_v31 = vld [vmem:[%s8179_s3 + $0x20] ss:$8 sps:$4 sm:$0xff]  }
 0x1b2   : > { %v1769_v25 = vadd.f32 %v7362_v1, %v1755_v5  ;;  %v1722_v26 = vpop.f32.mrb[16].mxu1  ;;  %v7390_v2 = vsel %vm2986_vm1, %v2987_v61, %v2988_v14  ;;  %v1775_v32 = vmax.f32 %v1768_v4, 0.0 }
 0x1b3   : > { %v1724_v30 = vpop.f32.mrb[17].mxu1  ;;  %3531 = vmatmul.mubr.bf16.vlgmr.msra.gmra.mrb[36].mxu1 %v7390_v2 }
 0x1b4   : > { %v1776_v36 = vmax.f32 %v1769_v25, 0.0  ;;  %v1749_v39 = vmax.f32 %v1722_v26, %v1724_v30  ;;  %v1726_v40 = vpop.f32.mrb[18].mxu1  ;;  %3540 = vmatprep.mubr.bf16.mxu1 %v8237_v8  ;;  %3560 = vmatpush1.bf16.msra.mxu1 %v7381_v16 }
 0x1b5   : > { %v1727_v44 = vpop.f32.mrb[19].mxu1  ;;  %3561 = vmatprep.subr.bf16.mxu1 %v7386_v42 }
 0x1b6   : > { %v7406_v50 = vpack.c.bf16 %v1776_v36, %v1775_v32  ;;  %v7408_v51 = vmax.f32 %v1327_v59, %v1749_v39  ;;  %v7460_v59 = vld [vmem:[%s8179_s3 + $0x50] ss:$8 sps:$4 sm:$0xff]  }
 0x1b8   : > { %v7411_v21 = vrot.slane %v7406_v50, 4  ;;  %3562 = vmatpush1.bf16.msra.mxu1 %v7398_v41 }
 0x1b9   : > { %3563 = vmatprep.subr.bf16.mxu1 %v7404_v46 }
 0x1ba   : > { %v7427_v12 = vsel %vm2986_vm1, %v2988_v14, %v7411_v21 }
 0x1bb   : > { %3541 = vmatmul.mubr.bf16.gmra.mrb[40].mxu1 %v7427_v12 }
 0x1bc   : > { %3550 = vmatprep.mubr.bf16.mxu1 %v8237_v8  ;;  %3564 = vmatpush1.bf16.msra.mxu1 %v7417_v31 }
 0x1bd   : > { %3565 = vmatprep.subr.bf16.mxu1 %v7423_v37 }
 0x1c0   : > { %3566 = vmatpush1.bf16.msra.mxu1 %v7435_v48 }
 0x1c1   : > { %3567 = vmatprep.subr.bf16.mxu1 %v7441_v54 }
 0x1c3   : > { %3551 = vmatmul.mubr.bf16.gmra.mrb[44].mxu1 %v7411_v21 }
 0x1c4   : > { %3568 = vmatpush1.bf16.msra.mxu1 %v7447_v56  ;;  %3591 = vmatprep.mubr.bf16.mxu1 %v8237_v8 }
 0x1c5   : > { %3569 = vmatprep.subr.bf16.mxu1 %v7453_v58 }
 0x1c8   : > { %3570 = vmatpush1.bf16.msra.mxu1 %v7460_v59 }
 0x1c9   : > { %3571 = vmatprep.subr.bf16.mxu1 %v7467_v60 }
 0x1cc   : > { %3572 = vmatpush1.bf16.msra.mxu1 %v7473_v62 }
 0x1cd   : > { %3573 = vmatprep.subr.bf16.mxu1 %v7479_v63 }
 0x1d0   : > { %3574 = vmatpush1.bf16.msra.mxu1 %v7485_v0 }
 0x1d1   : > { %3620 = vmatprep.subr.bf16.mxu1 %v7491_v47 }
 0x21a   : > { %v2146_v3 = vpop.f32.mrb[16].mxu0 }
 0x21b   : > { %v2148_v6 = vpop.f32.mrb[17].mxu0 }
 0x21c   : > { %v2197_v49 = vmax.f32 %v2146_v3, %v2148_v6  ;;  %v2150_v7 = vpop.f32.mrb[18].mxu0  ;;  %v7506_v6 = vld [vmem:[%s8179_s3 + $0x100] ss:$8 sps:$4 sm:$0xff]  }
 0x21d   : > { %v2152_v9 = vpop.f32.mrb[19].mxu0 }
 0x21e   : > { %v2198_v10 = vmax.f32 %v2150_v7, %v2152_v9 }
 0x222   : > { %v2156_v11 = vpop.f32.mrb[20].mxu0 }
 0x223   : > { %v2158_v13 = vpop.f32.mrb[21].mxu0 }
 0x224   : > { %v2199_v15 = vmax.f32 %v2156_v11, %v2158_v13  ;;  %v2160_v17 = vpop.f32.mrb[22].mxu0 }
 0x225   : > { %v2162_v18 = vpop.f32.mrb[23].mxu0 }
 0x226   : > { %v2200_v19 = vmax.f32 %v2160_v17, %v2162_v18 }
 0x22a   : > { %v2166_v20 = vpop.f32.mrb[24].mxu0 }
 0x22b   : > { %v2168_v23 = vpop.f32.mrb[25].mxu0 }
 0x22c   : > { %v2201_v24 = vmax.f32 %v2166_v20, %v2168_v23  ;;  %v2170_v27 = vpop.f32.mrb[26].mxu0 }
 0x22d   : > { %v2172_v28 = vpop.f32.mrb[27].mxu0 }
 0x22e   : > { %v2202_v29 = vmax.f32 %v2170_v27, %v2172_v28 }
 0x232   : > { %v7495_v33 = vpop.f32.mrb[28].mxu0 }
 0x233   : > { %v7497_v34 = vpop.f32.mrb[29].mxu0 }
 0x234   : > { %v2203_v35 = vmax.f32 %v7495_v33, %v7497_v34  ;;  %v2180_v38 = vpop.f32.mrb[30].mxu0  ;;  %v7599_v33 = vld [vmem:[%s8179_s3 + $0x150] ss:$8 sps:$4 sm:$0xff]  }
 0x235   : > { %v2181_v43 = vpop.f32.mrb[31].mxu0  ;;  %v7540_v38 = vld [vmem:[%s8179_s3 + $0x120] ss:$8 sps:$4 sm:$0xff]  }
 0x23a   : > { %v2568_v45 = vpop.f32.mrb[20].mxu1 }
 0x23b   : > { %v2570_v52 = vpop.f32.mrb[21].mxu1 }
 0x23c   : > { %v2619_v55 = vmax.f32 %v2568_v45, %v2570_v52  ;;  %v2572_v57 = vpop.f32.mrb[22].mxu1 }
 0x23d   : > { %v2574_v61 = vpop.f32.mrb[23].mxu1 }
 0x23e   : > { %v2626_v4 = vmax.f32 %v2197_v49, %v2619_v55  ;;  %v2620_v5 = vmax.f32 %v2572_v57, %v2574_v61 }
 0x240   : > { %v2633_v14 = vadd.f32 %v7362_v1, %v2626_v4  ;;  %v2627_v25 = vmax.f32 %v2198_v10, %v2620_v5  ;;  %v7513_v10 = vld [vmem:[%s8179_s3 + $0x114] ss:$8 sps:$4 sm:$0xff]  }
 0x242   : > { %v2634_v26 = vadd.f32 %v7362_v1, %v2627_v25  ;;  %v2578_v30 = vpop.f32.mrb[24].mxu1  ;;  %v2640_v36 = vmax.f32 %v2633_v14, 0.0 }
 0x243   : > { %v2580_v32 = vpop.f32.mrb[25].mxu1 }
 0x244   : > { %v2641_v39 = vmax.f32 %v2634_v26, 0.0  ;;  %v2621_v40 = vmax.f32 %v2578_v30, %v2580_v32  ;;  %v2582_v44 = vpop.f32.mrb[26].mxu1  ;;  %v7576_v26 = vld [vmem:[%s8179_s3 + $0x140] ss:$8 sps:$4 sm:$0xff]  }
 0x245   : > { %v2584_v3 = vpop.f32.mrb[27].mxu1 }
 0x246   : > { %v7508_v7 = vpack.c.bf16 %v2641_v39, %v2640_v36  ;;  %v2628_v49 = vmax.f32 %v2199_v15, %v2621_v40  ;;  %v2622_v9 = vmax.f32 %v2582_v44, %v2584_v3  ;;  %v7523_v15 = vld [vmem:[%s8179_s3 + $0x110] ss:$8 sps:$4 sm:$0xff]   ;;  %v7671_v36 = vld [vmem:[%s8179_s3 + $0x1a4] ss:$8 sps:$4 sm:$0xff]   ;;  %v7683_v39 = vld [vmem:[%s8179_s3 + $0x1a0] ss:$8 sps:$4 sm:$0xff]  }
 0x247   : > { %v7690_v40 = vld [vmem:[%s8179_s3 + $0x1b4] ss:$8 sps:$4 sm:$0xff]   ;;  %v7703_v3 = vld [vmem:[%s8179_s3 + $0x1b0] ss:$8 sps:$4 sm:$0xff]  }
 0x248   : > { %v2635_v11 = vadd.f32 %v7362_v1, %v2628_v49  ;;  %v2629_v13 = vmax.f32 %v2200_v19, %v2622_v9  ;;  %2797 = vmatmul.mubr.bf16.vlgmr.msra.gmra.mrb[32].mxu0 %v7508_v7  ;;  %3592 = vmatmul.mubr.bf16.vlgmr.msra.gmra.mrb[36].mxu1 %v7508_v7  ;;  %v7531_v19 = vld [vmem:[%s8179_s3 + $0x124] ss:$8 sps:$4 sm:$0xff]   ;;  %v7726_v49 = vld [vmem:[%s8179_s3 + $0x1d4] ss:$8 sps:$4 sm:$0xff]   ;;  %v7735_v9 = vld [vmem:[%s8179_s3 + $0x1d0] ss:$8 sps:$4 sm:$0xff]  }
 0x249   : > { %2906 = vmatpush1.bf16.msra.mxu0 %v7381_v16  ;;  %3621 = vmatpush1.bf16.msra.mxu1 %v7506_v6 }
 0x24a   : > { %v2636_v17 = vadd.f32 %v7362_v1, %v2629_v13  ;;  %v2588_v18 = vpop.f32.mrb[28].mxu1  ;;  %2907 = vmatprep.subr.bf16.mxu0 %v7386_v42  ;;  %3622 = vmatprep.subr.bf16.mxu1 %v7513_v10  ;;  %v2642_v20 = vmax.f32 %v2635_v11, 0.0  ;;  %v7751_v11 = vld [vmem:[%s8179_s3 + $0x1e0] ss:$8 sps:$4 sm:$0xff]   ;;  %v7758_v13 = vld [vmem:[%s8179_s3 + $0x1f4] ss:$8 sps:$4 sm:$0xff]  }
 0x24b   : > { %v2590_v16 = vpop.f32.mrb[29].mxu1  ;;  %2806 = vmatprep.mubr.bf16.mxu0 %v8237_v8  ;;  %3601 = vmatprep.mubr.bf16.mxu1 %v8237_v8 }
 0x24c   : > { %v2643_v23 = vmax.f32 %v2636_v17, 0.0  ;;  %v2623_v27 = vmax.f32 %v2588_v18, %v2590_v16  ;;  %v2592_v28 = vpop.f32.mrb[30].mxu1  ;;  %v7772_v17 = vld [vmem:[%s8179_s3 + $0x204] ss:$8 sps:$4 sm:$0xff]   ;;  %v7779_v18 = vld [vmem:[%s8179_s3 + $0x200] ss:$8 sps:$4 sm:$0xff]  }
 0x24d   : > { %2908 = vmatpush1.bf16.msra.mxu0 %v7398_v41  ;;  %3623 = vmatpush1.bf16.msra.mxu1 %v7523_v15  ;;  %v2594_v42 = vpop.f32.mrb[31].mxu1  ;;  %v7549_v41 = vld [vmem:[%s8179_s3 + $0x134] ss:$8 sps:$4 sm:$0xff]   ;;  %v6057_v16 = vld [vmem:[%s8179_s3 + $0x210] ss:$8 sps:$4 sm:$0xff]  }
 0x24e   : > { %v7542_v43 = vpack.c.bf16 %v2643_v23, %v2642_v20  ;;  %v2630_v45 = vmax.f32 %v2201_v24, %v2623_v27  ;;  %v2624_v52 = vmax.f32 %v2592_v28, %v2594_v42  ;;  %2909 = vmatprep.subr.bf16.mxu0 %v7404_v46  ;;  %3624 = vmatprep.subr.bf16.mxu1 %v7531_v19  ;;  %v7559_v46 = vld [vmem:[%s8179_s3 + $0x130] ss:$8 sps:$4 sm:$0xff]   ;;  %v6062_v20 = vld [vmem:[%s8179_s3 + $0x224] ss:$8 sps:$4 sm:$0xff]   ;;  %v6065_v27 = vld [vmem:[%s8179_s3 + $0x234] ss:$8 sps:$4 sm:$0xff]  }
 0x24f   : > { %v1770_v23 = vadd.f32 %v7362_v1, %v7408_v51  ;;  %v6063_v28 = vld [vmem:[%s8179_s3 + $0x230] ss:$8 sps:$4 sm:$0xff]   ;;  %v6068_v42 = vld [vmem:[%s8179_s3 + $0x244] ss:$8 sps:$4 sm:$0xff]  }
 0x250   : > { %v2637_v55 = vadd.f32 %v7362_v1, %v2630_v45  ;;  %v2631_v57 = vmax.f32 %v2202_v29, %v2624_v52  ;;  %2807 = vmatmul.mubr.bf16.gmra.mrb[36].mxu0 %v7542_v43  ;;  %3602 = vmatmul.mubr.bf16.gmra.mrb[40].mxu1 %v7542_v43  ;;  %v7567_v29 = vld [vmem:[%s8179_s3 + $0x144] ss:$8 sps:$4 sm:$0xff]   ;;  %v3167_v34 = vrot.slane %v7542_v43, 4  ;;  %v6071_v45 = vld [vmem:[%s8179_s3 + $0x254] ss:$8 sps:$4 sm:$0xff]  }
 0x251   : > { %2910 = vmatpush1.bf16.msra.mxu0 %v7417_v31  ;;  %3625 = vmatpush1.bf16.msra.mxu1 %v7540_v38  ;;  %v1777_v51 = vmax.f32 %v1770_v23, 0.0  ;;  %v6069_v52 = vld [vmem:[%s8179_s3 + $0x250] ss:$8 sps:$4 sm:$0xff]  }
 0x252   : > { %v2638_v24 = vadd.f32 %v7362_v1, %v2631_v57  ;;  %v2598_v61 = vpop.f32.mrb[32].mxu1  ;;  %2911 = vmatprep.subr.bf16.mxu0 %v7423_v37  ;;  %3626 = vmatprep.subr.bf16.mxu1 %v7549_v41  ;;  %v2644_v4 = vmax.f32 %v2637_v55, 0.0  ;;  %v6077_v55 = vld [vmem:[%s8179_s3 + $0x274] ss:$8 sps:$4 sm:$0xff]   ;;  %v6075_v57 = vld [vmem:[%s8179_s3 + $0x270] ss:$8 sps:$4 sm:$0xff]  }
 0x253   : > { %v2600_v31 = vpop.f32.mrb[33].mxu1  ;;  %2816 = vmatprep.mubr.bf16.mxu0 %v8237_v8  ;;  %3611 = vmatprep.mubr.bf16.mxu1 %v8237_v8 }
 0x254   : > { %v2645_v5 = vmax.f32 %v2638_v24, 0.0  ;;  %v2625_v14 = vmax.f32 %v2598_v61, %v2600_v31  ;;  %v2602_v25 = vpop.f32.mrb[34].mxu1  ;;  %v6226_v61 = vmov 0.0   ;;  %v6083_v31 = vld [vmem:[%s8181_s5 + $0x50] sm:$0xff]  }
 0x255   : > { %2912 = vmatpush1.bf16.msra.mxu0 %v7435_v48  ;;  %3627 = vmatpush1.bf16.msra.mxu1 %v7559_v46  ;;  %v2603_v37 = vpop.f32.mrb[35].mxu1  ;;  %v7590_v48 = vld [vmem:[%s8179_s3 + $0x154] ss:$8 sps:$4 sm:$0xff]   ;;  %v6087_v25 = vld [vmem:[%s8181_s5 + $0x60] sm:$0xff]  }
 0x256   : > { %v7578_v30 = vpack.c.bf16 %v2645_v5, %v2644_v4  ;;  %v7583_v32 = vmax.f32 %v2203_v35, %v2625_v14  ;;  %2913 = vmatprep.subr.bf16.mxu0 %v7441_v54  ;;  %3628 = vmatprep.subr.bf16.mxu1 %v7567_v29  ;;  %v7606_v54 = vld [vmem:[%s8179_s3 + $0x164] ss:$8 sps:$4 sm:$0xff]   ;;  %v7645_v35 = vld [vmem:[%s8179_s3 + $0x180] ss:$8 sps:$4 sm:$0xff]   ;;  %v6084_v4 = vld [vmem:[%s8181_s5 + $0x18] sm:$0xff]  }
 0x257   : > { %v6085_v5 = vld [vmem:[%s8181_s5 + $0x58] sm:$0xff]   ;;  %v6086_v14 = vld [vmem:[%s8181_s5 + $0x20] sm:$0xff]   ;;  %v6088_v37 = vld [vmem:[%s8181_s5 + $0x28] sm:$0xff]  }
 0x258   : > { %2817 = vmatmul.mubr.bf16.gmra.mrb[40].mxu0 %v7578_v30  ;;  %3612 = vmatmul.mubr.bf16.gmra.mrb[44].mxu1 %v7578_v30 }
 0x259   : > { %2914 = vmatpush1.bf16.msra.mxu0 %v7447_v56  ;;  %3629 = vmatpush1.bf16.msra.mxu1 %v7576_v26  ;;  %v7615_v56 = vld [vmem:[%s8179_s3 + $0x160] ss:$8 sps:$4 sm:$0xff]  }
 0x25a   : > { %2915 = vmatprep.subr.bf16.mxu0 %v7453_v58  ;;  %3630 = vmatprep.subr.bf16.mxu1 %v7590_v48  ;;  %v7622_v58 = vld [vmem:[%s8179_s3 + $0x174] ss:$8 sps:$4 sm:$0xff]  }
 0x25b   : > { %2937 = vmatprep.mubr.bf16.mxu0 %v8237_v8  ;;  %3652 = vmatprep.mubr.bf16.mxu1 %v8237_v8 }
 0x25d   : > { %2916 = vmatpush1.bf16.msra.mxu0 %v7460_v59  ;;  %3631 = vmatpush1.bf16.msra.mxu1 %v7599_v33  ;;  %v7629_v59 = vld [vmem:[%s8179_s3 + $0x170] ss:$8 sps:$4 sm:$0xff]  }
 0x25e   : > { %2917 = vmatprep.subr.bf16.mxu0 %v7467_v60  ;;  %3632 = vmatprep.subr.bf16.mxu1 %v7606_v54  ;;  %v7636_v60 = vld [vmem:[%s8179_s3 + $0x184] ss:$8 sps:$4 sm:$0xff]  }
 0x261   : > { %2918 = vmatpush1.bf16.msra.mxu0 %v7473_v62  ;;  %3633 = vmatpush1.bf16.msra.mxu1 %v7615_v56  ;;  %v3166_v62 = vrot.slane %v7508_v7, 4  ;;  %v7719_v7 = vld [vmem:[%s8179_s3 + $0x1c0] ss:$8 sps:$4 sm:$0xff]  }
 0x262   : > { %2919 = vmatprep.subr.bf16.mxu0 %v7479_v63  ;;  %3634 = vmatprep.subr.bf16.mxu1 %v7622_v58  ;;  %v7652_v63 = vld [vmem:[%s8179_s3 + $0x194] ss:$8 sps:$4 sm:$0xff]  }
 0x265   : > { %2920 = vmatpush1.bf16.msra.mxu0 %v7485_v0  ;;  %3635 = vmatpush1.bf16.msra.mxu1 %v7629_v59  ;;  %v7655_v0 = vsel %vm2986_vm1, %v3166_v62, %v3167_v34 }
 0x266   : > { %3075 = vmatprep.subr.bf16.mxu0 %v7491_v47  ;;  %3691 = vmatprep.subr.bf16.mxu1 %v7636_v60  ;;  %v7664_v47 = vld [vmem:[%s8179_s3 + $0x190] ss:$8 sps:$4 sm:$0xff]  }
 0x268   : > { %2938 = vmatmul.mubr.bf16.vlgmr.msra.gmra.mrb[32].mxu0 %v7369_v22  ;;  %3653 = vmatmul.mubr.bf16.vlgmr.msra.gmra.mrb[36].mxu1 %v7655_v0  ;;  %v7676_v22 = vrot.slane %v7578_v30, 4 }
 0x269   : > { %3076 = vmatpush1.bf16.msra.mxu0 %v7506_v6  ;;  %3692 = vmatpush1.bf16.msra.mxu1 %v7645_v35  ;;  %v7710_v6 = vld [vmem:[%s8179_s3 + $0x1c4] ss:$8 sps:$4 sm:$0xff]  }
 0x26a   : > { %3077 = vmatprep.subr.bf16.mxu0 %v7513_v10  ;;  %3693 = vmatprep.subr.bf16.mxu1 %v7652_v63  ;;  %v7694_v44 = vsel %vm2986_vm1, %v3167_v34, %v7676_v22  ;;  %v7742_v10 = vld [vmem:[%s8179_s3 + $0x1e4] ss:$8 sps:$4 sm:$0xff]  }
 0x26b   : > { %2947 = vmatprep.mubr.bf16.mxu0 %v8237_v8  ;;  %3662 = vmatprep.mubr.bf16.mxu1 %v8237_v8 }
 0x26d   : > { %3078 = vmatpush1.bf16.msra.mxu0 %v7523_v15  ;;  %3694 = vmatpush1.bf16.msra.mxu1 %v7664_v47  ;;  %v7765_v15 = vld [vmem:[%s8179_s3 + $0x1f0] ss:$8 sps:$4 sm:$0xff]  }
 0x26e   : > { %3079 = vmatprep.subr.bf16.mxu0 %v7531_v19  ;;  %3695 = vmatprep.subr.bf16.mxu1 %v7671_v36  ;;  %v7786_v19 = vld [vmem:[%s8179_s3 + $0x214] ss:$8 sps:$4 sm:$0xff]  }
 0x270   : > { %2948 = vmatmul.mubr.bf16.gmra.mrb[36].mxu0 %v7373_v53  ;;  %3663 = vmatmul.mubr.bf16.gmra.mrb[40].mxu1 %v7694_v44 }
 0x271   : > { %3080 = vmatpush1.bf16.msra.mxu0 %v7540_v38  ;;  %3696 = vmatpush1.bf16.msra.mxu1 %v7683_v39  ;;  %v1781_v38 = vpack.c.bf16 %v1777_v51, %v1777_v51 }
 0x272   : > { %3081 = vmatprep.subr.bf16.mxu0 %v7549_v41  ;;  %3697 = vmatprep.subr.bf16.mxu1 %v7690_v40  ;;  %v6074_v41 = vld [vmem:[%s8179_s3 + $0x264] ss:$8 sps:$4 sm:$0xff]  }
 0x273   : > { %2957 = vmatprep.mubr.bf16.mxu0 %v8237_v8  ;;  %3672 = vmatprep.mubr.bf16.mxu1 %v8237_v8 }
 0x275   : > { %3082 = vmatpush1.bf16.msra.mxu0 %v7559_v46  ;;  %3698 = vmatpush1.bf16.msra.mxu1 %v7703_v3  ;;  %v2639_v46 = vadd.f32 %v7362_v1, %v7583_v32  ;;  %v6078_v1 = vld [vmem:[%s8181_s5] sm:$0xff]   ;;  %v6091_v32 = vld [vmem:[%s8181_s5 + $0x70] sm:$0xff]  }
 0x276   : > { %3083 = vmatprep.subr.bf16.mxu0 %v7567_v29  ;;  %3699 = vmatprep.subr.bf16.mxu1 %v7710_v6  ;;  %v6082_v29 = vld [vmem:[%s8181_s5 + $0x10] sm:$0xff]  }
 0x278   : > { %2958 = vmatmul.mubr.bf16.gmra.mrb[40].mxu0 %v7406_v50  ;;  %3673 = vmatmul.mubr.bf16.gmra.mrb[44].mxu1 %v7676_v22 }
 0x279   : > { %3084 = vmatpush1.bf16.msra.mxu0 %v7576_v26  ;;  %3700 = vmatpush1.bf16.msra.mxu1 %v7719_v7  ;;  %v6089_v26 = vld [vmem:[%s8181_s5 + $0x68] sm:$0xff]  }
 0x27a   : > { %3085 = vmatprep.subr.bf16.mxu0 %v7590_v48  ;;  %3701 = vmatprep.subr.bf16.mxu1 %v7726_v49  ;;  %v6092_v48 = vld [vmem:[%s8181_s5 + $0x38] sm:$0xff]  }
 0x27b   : > { %3107 = vmatprep.mubr.bf16.mxu0 %v8237_v8  ;;  %3723 = vmatprep.mubr.bf16.mxu1 %v8237_v8 }
 0x27d   : > { %3086 = vmatpush1.bf16.msra.mxu0 %v7599_v33  ;;  %3702 = vmatpush1.bf16.msra.mxu1 %v7735_v9  ;;  %v6093_v33 = vld [vmem:[%s8181_s5 + $0x78] sm:$0xff]  }
 0x27e   : > { %3087 = vmatprep.subr.bf16.mxu0 %v7606_v54  ;;  %3703 = vmatprep.subr.bf16.mxu1 %v7742_v10 }
 0x281   : > { %3088 = vmatpush1.bf16.msra.mxu0 %v7615_v56  ;;  %3704 = vmatpush1.bf16.msra.mxu1 %v7751_v11 }
 0x282   : > { %3089 = vmatprep.subr.bf16.mxu0 %v7622_v58  ;;  %3705 = vmatprep.subr.bf16.mxu1 %v7758_v13 }
 0x285   : > { %3090 = vmatpush1.bf16.msra.mxu0 %v7629_v59  ;;  %3706 = vmatpush1.bf16.msra.mxu1 %v7765_v15 }
 0x286   : > { %3254 = vmatprep.subr.bf16.mxu0 %v7636_v60  ;;  %3762 = vmatprep.subr.bf16.mxu1 %v7772_v17 }
 0x288   : > { %3108 = vmatmul.mubr.bf16.vlgmr.msra.gmra.mrb[32].mxu0 %v7390_v2  ;;  %3724 = vmatmul.mubr.bf16.vlgmr.msra.gmra.mrb[36].mxu1 %v7373_v53  ;;  %v6060_v2 = vld [vmem:[%s8179_s3 + $0x220] ss:$8 sps:$4 sm:$0xff]  }
 0x289   : > { %3255 = vmatpush1.bf16.msra.mxu0 %v7645_v35  ;;  %3763 = vmatpush1.bf16.msra.mxu1 %v7779_v18 }
 0x28a   : > { %3256 = vmatprep.subr.bf16.mxu0 %v7652_v63  ;;  %3764 = vmatprep.subr.bf16.mxu1 %v7786_v19 }
 0x28b   : > { %3117 = vmatprep.mubr.bf16.mxu0 %v8237_v8  ;;  %3733 = vmatprep.mubr.bf16.mxu1 %v8237_v8 }
 0x28d   : > { %3257 = vmatpush1.bf16.msra.mxu0 %v7664_v47  ;;  %3765 = vmatpush1.bf16.msra.mxu1 %v6057_v16 }
 0x28e   : > { %3258 = vmatprep.subr.bf16.mxu0 %v7671_v36  ;;  %3766 = vmatprep.subr.bf16.mxu1 %v6062_v20 }
 0x290   : > { %3118 = vmatmul.mubr.bf16.gmra.mrb[36].mxu0 %v7427_v12  ;;  %3734 = vmatmul.mubr.bf16.gmra.mrb[40].mxu1 %v7406_v50  ;;  %v6066_v12 = vld [vmem:[%s8179_s3 + $0x240] ss:$8 sps:$4 sm:$0xff]  }
 0x291   : > { %3259 = vmatpush1.bf16.msra.mxu0 %v7683_v39  ;;  %3767 = vmatpush1.bf16.msra.mxu1 %v6060_v2 }
 0x292   : > { %3260 = vmatprep.subr.bf16.mxu0 %v7690_v40  ;;  %3768 = vmatprep.subr.bf16.mxu1 %v6065_v27 }
 0x293   : > { %3127 = vmatprep.mubr.bf16.mxu0 %v8237_v8  ;;  %3743 = vmatprep.mubr.bf16.mxu1 %v8237_v8 }
 0x295   : > { %3261 = vmatpush1.bf16.msra.mxu0 %v7703_v3  ;;  %3769 = vmatpush1.bf16.msra.mxu1 %v6063_v28 }
 0x296   : > { %3262 = vmatprep.subr.bf16.mxu0 %v7710_v6  ;;  %3770 = vmatprep.subr.bf16.mxu1 %v6068_v42 }
 0x298   : > { %3128 = vmatmul.mubr.bf16.gmra.mrb[40].mxu0 %v7411_v21  ;;  %3744 = vmatmul.mubr.bf16.gmra.mrb[44].mxu1 %v1781_v38  ;;  %v6072_v21 = vld [vmem:[%s8179_s3 + $0x260] ss:$8 sps:$4 sm:$0xff]  }
 0x299   : > { %3263 = vmatpush1.bf16.msra.mxu0 %v7719_v7  ;;  %3771 = vmatpush1.bf16.msra.mxu1 %v6066_v12 }
 0x29a   : > { %3264 = vmatprep.subr.bf16.mxu0 %v7726_v49  ;;  %3772 = vmatprep.subr.bf16.mxu1 %v6071_v45 }
 0x29b   : > { %3286 = vmatprep.mubr.bf16.mxu0 %v8237_v8  ;;  %3794 = vmatprep.mubr.bf16.mxu1 %v8237_v8 }
 0x29d   : > { %3265 = vmatpush1.bf16.msra.mxu0 %v7735_v9  ;;  %3773 = vmatpush1.bf16.msra.mxu1 %v6069_v52 }
 0x29e   : > { %3266 = vmatprep.subr.bf16.mxu0 %v7742_v10  ;;  %3774 = vmatprep.subr.bf16.mxu1 %v6074_v41  ;;  %v5100_v10 = vld [vmem:[%s8180_s4] ss:$0 sm:$0xff] }
 0x2a1   : > { %3267 = vmatpush1.bf16.msra.mxu0 %v7751_v11  ;;  %3775 = vmatpush1.bf16.msra.mxu1 %v6072_v21 }
 0x2a2   : > { %3268 = vmatprep.subr.bf16.mxu0 %v7758_v13  ;;  %3776 = vmatprep.subr.bf16.mxu1 %v6077_v55 }
 0x2a5   : > { %3269 = vmatpush1.bf16.msra.mxu0 %v7765_v15  ;;  %3777 = vmatpush1.bf16.msra.mxu1 %v6075_v57 }
 0x2a6   : > { %3422 = vmatprep.subr.bf16.mxu0 %v7772_v17  ;;  %5312 = vmatprep.subr.bf16.mxu1 %v6226_v61 }
 0x2a8   : > { %3287 = vmatmul.mubr.bf16.vlgmr.msra.gmra.mrb[32].mxu0 %v7655_v0  ;;  %3795 = vmatmul.mubr.bf16.vlgmr.msra.gmra.mrb[36].mxu1 %v7542_v43  ;;  %v2646_v43 = vmax.f32 %v2639_v46, 0.0 }
 0x2a9   : > { %3423 = vmatpush1.bf16.msra.mxu0 %v7779_v18  ;;  %3296 = vmatprep.mubr.bf16.mxu0 %v8237_v8 }
 0x2aa   : > { %3424 = vmatprep.subr.bf16.mxu0 %v7786_v19  ;;  %3804 = vmatprep.mubr.bf16.mxu1 %v8237_v8  ;;  %v2650_v24 = vpack.c.bf16 %v2646_v43, %v2646_v43 }
 0x2ab   : > { %5313 = vmatpush3.bf16.msra.mxu1 %v6078_v1  ;;  %v6097_v1 = vld [vmem:[%s8181_s5 + $0x88] sm:$0xff]  }
 0x2ac   : > { %5314 = vmatprep.subr.bf16.mxu1 %v6226_v61 }
 0x2ad   : > { %3425 = vmatpush1.bf16.msra.mxu0 %v6057_v16 }
 0x2ae   : > { %3426 = vmatprep.subr.bf16.mxu0 %v6062_v20 }
 0x2b0   : > { %3297 = vmatmul.mubr.bf16.gmra.mrb[36].mxu0 %v7694_v44  ;;  %3805 = vmatmul.mubr.bf16.gmra.mrb[40].mxu1 %v7578_v30  ;;  %v6090_v30 = vld [vmem:[%s8181_s5 + $0x30] sm:$0xff]  }
 0x2b1   : > { %3427 = vmatpush1.bf16.msra.mxu0 %v6060_v2  ;;  %3306 = vmatprep.mubr.bf16.mxu0 %v8237_v8 }
 0x2b2   : > { %3428 = vmatprep.subr.bf16.mxu0 %v6065_v27  ;;  %3814 = vmatprep.mubr.bf16.mxu1 %v8237_v8 }
 0x2b5   : > { %3429 = vmatpush1.bf16.msra.mxu0 %v6063_v28 }
 0x2b6   : > { %3430 = vmatprep.subr.bf16.mxu0 %v6068_v42  ;;  %v6094_v42 = vld [vmem:[%s8181_s5 + $0xc0] sm:$0xff]  }
 0x2b8   : > { %3307 = vmatmul.mubr.bf16.gmra.mrb[40].mxu0 %v7676_v22  ;;  %3815 = vmatmul.mubr.bf16.gmra.mrb[44].mxu1 %v2650_v24 }
 0x2b9   : > { %3431 = vmatpush1.bf16.msra.mxu0 %v6066_v12  ;;  %3454 = vmatprep.mubr.bf16.mxu0 %v8237_v8 }
 0x2ba   : > { %3432 = vmatprep.subr.bf16.mxu0 %v6071_v45  ;;  %5328 = vmatprep.mubr.msk.bf16.mxu1 %vm6227_vm2, %v6226_v61 }
 0x2bd   : > { %3433 = vmatpush1.bf16.msra.mxu0 %v6069_v52  ;;  %v6095_v52 = vld [vmem:[%s8181_s5 + $0x80] sm:$0xff]  }
 0x2be   : > { %3434 = vmatprep.subr.bf16.mxu0 %v6074_v41 }
 0x2c1   : > { %3435 = vmatpush1.bf16.msra.mxu0 %v6072_v21 }
 0x2c2   : > { %3436 = vmatprep.subr.bf16.mxu0 %v6077_v55 }
 0x2c5   : > { %3437 = vmatpush1.bf16.msra.mxu0 %v6075_v57  ;;  %v6096_v57 = vld [vmem:[%s8181_s5 + $0xc8] sm:$0xff]  }
 0x2c6   : > { %5292 = vmatprep.subr.bf16.mxu0 %v6226_v61 }
 0x2c8   : > { %3455 = vmatmul.mubr.bf16.vlgmr.msra.gmra.mrb[32].mxu0 %v7373_v53  ;;  %v6079_v53 = vld [vmem:[%s8181_s5 + $0x40] sm:$0xff]  }
 0x2c9   : > { %3464 = vmatprep.mubr.bf16.mxu0 %v8237_v8  ;;  %5293 = vmatpush3.bf16.msra.mxu0 %v6079_v53 }
 0x2ca   : > { %5294 = vmatprep.subr.bf16.mxu0 %v6226_v61 }
 0x2d0   : > { %3465 = vmatmul.mubr.bf16.gmra.mrb[36].mxu0 %v7406_v50  ;;  %v6081_v50 = vld [vmem:[%s8181_s5 + $0x48] sm:$0xff]  }
 0x2d1   : > { %3474 = vmatprep.mubr.bf16.mxu0 %v8237_v8  ;;  %v6080_v8 = vld [vmem:[%s8181_s5 + $0x8] sm:$0xff]   ;;  %5295 = vmatpush3.bf16.msra.mxu0 %v6081_v50 }
 0x2d2   : > { %5315 = vmatpush3.bf16.msra.mxu1 %v6080_v8  ;;  %5296 = vmatprep.subr.bf16.mxu0 %v6226_v61 }
 0x2d3   : > { %5316 = vmatprep.subr.bf16.mxu1 %v6226_v61 }
 0x2d5   : > { %5297 = vmatpush3.bf16.msra.mxu0 %v6083_v31 }
 0x2d6   : > { %5317 = vmatpush3.bf16.msra.mxu1 %v6082_v29  ;;  %5298 = vmatprep.subr.bf16.mxu0 %v6226_v61 }
 0x2d7   : > { %5318 = vmatprep.subr.bf16.mxu1 %v6226_v61 }
 0x2d8   : > { %3475 = vmatmul.mubr.bf16.gmra.mrb[40].mxu0 %v1781_v38 }
 0x2d9   : > { %5299 = vmatpush3.bf16.msra.mxu0 %v6085_v5  ;;  %5308 = vmatprep.mubr.msk.bf16.mxu0 %vm6227_vm2, %v6226_v61 }
 0x2da   : > { %5319 = vmatpush3.bf16.msra.mxu1 %v6084_v4  ;;  %5300 = vmatprep.subr.bf16.mxu0 %v6226_v61  ;;  %v6098_v4 = vld [vmem:[%s8181_s5 + $0xd0] sm:$0xff]  }
 0x2db   : > { %5320 = vmatprep.subr.bf16.mxu1 %v6226_v61 }
 0x2dd   : > { %5301 = vmatpush3.bf16.msra.mxu0 %v6087_v25  ;;  %v6099_v25 = vld [vmem:[%s8181_s5 + $0x90] sm:$0xff]  }
 0x2de   : > { %5321 = vmatpush3.bf16.msra.mxu1 %v6086_v14  ;;  %5302 = vmatprep.subr.bf16.mxu0 %v6226_v61 }
 0x2df   : > { %5322 = vmatprep.subr.bf16.mxu1 %v6226_v61 }
 0x2e1   : > { %5303 = vmatpush3.bf16.msra.mxu0 %v6089_v26  ;;  %v6100_v26 = vld [vmem:[%s8181_s5 + $0xd8] sm:$0xff]  }
 0x2e2   : > { %5323 = vmatpush3.bf16.msra.mxu1 %v6088_v37  ;;  %5304 = vmatprep.subr.bf16.mxu0 %v6226_v61 }
 0x2e3   : > { %5324 = vmatprep.subr.bf16.mxu1 %v6226_v61 }
 0x2e5   : > { %5305 = vmatpush3.bf16.msra.mxu0 %v6091_v32  ;;  %v6102_v32 = vld [vmem:[%s8181_s5 + $0xe0] sm:$0xff]  }
 0x2e6   : > { %5325 = vmatpush3.bf16.msra.mxu1 %v6090_v30  ;;  %5306 = vmatprep.subr.bf16.mxu0 %v6226_v61  ;;  %v6101_v30 = vld [vmem:[%s8181_s5 + $0x98] sm:$0xff]  }
 0x2e7   : > { %5326 = vmatprep.subr.bf16.mxu1 %v6226_v61 }
 0x2e9   : > { %5307 = vmatpush3.bf16.msra.mxu0 %v6093_v33  ;;  %v6104_v33 = vld [vmem:[%s8181_s5 + $0xe8] sm:$0xff]  }
 0x2ea   : > { %5327 = vmatpush3.bf16.msra.mxu1 %v6092_v48  ;;  %5332 = vmatprep.subr.bf16.mxu0 %v6226_v61  ;;  %v6103_v48 = vld [vmem:[%s8181_s5 + $0xa0] sm:$0xff]  }
 0x2eb   : > { %5352 = vmatprep.subr.bf16.mxu1 %v6226_v61 }
 0x37b   : > { %v3796_v54 = vpop.f32.mrb[36].mxu1 }
 0x37c   : > { %v3798_v56 = vpop.f32.mrb[37].mxu1 }
 0x37d   : > { %v3833_v58 = vmax.f32 %v3796_v54, %v3798_v56  ;;  %v3800_v59 = vpop.f32.mrb[38].mxu1  ;;  %v6105_v54 = vld [vmem:[%s8181_s5 + $0xa8] sm:$0xff]   ;;  %v6106_v56 = vld [vmem:[%s8181_s5 + $0xf0] sm:$0xff]  }
 0x37e   : > { %v3802_v60 = vpop.f32.mrb[39].mxu1 }
 0x37f   : > { %v3834_v34 = vmax.f32 %v3800_v59, %v3802_v60  ;;  %v6108_v59 = vld [vmem:[%s8181_s5 + $0xf8] sm:$0xff]  }
 0x380   : > { %v6109_v60 = vld [vmem:[%s8181_s5 + $0xb8] sm:$0xff]  }
 0x383   : > { %v3806_v62 = vpop.f32.mrb[40].mxu1 }
 0x384   : > { %v3808_v35 = vpop.f32.mrb[41].mxu1 }
 0x385   : > { %v3835_v63 = vmax.f32 %v3806_v62, %v3808_v35  ;;  %v3810_v0 = vpop.f32.mrb[42].mxu1  ;;  %v6110_v62 = vld [vmem:[%s8181_s5 + $0x100] sm:$0xff]   ;;  %v6111_v35 = vld [vmem:[%s8181_s5 + $0x108] sm:$0xff]  }
 0x386   : > { %v3812_v47 = vpop.f32.mrb[43].mxu1 }
 0x387   : > { %v3836_v36 = vmax.f32 %v3810_v0, %v3812_v47  ;;  %v6113_v0 = vld [vmem:[%s8181_s5 + $0x118] sm:$0xff]   ;;  %v6114_v47 = vld [vmem:[%s8181_s5 + $0x120] sm:$0xff]  }
 0x38b   : > { %v3816_v22 = vpop.f32.mrb[44].mxu1 }
 0x38c   : > { %v3818_v39 = vpop.f32.mrb[45].mxu1 }
 0x38d   : > { %v3837_v40 = vmax.f32 %v3816_v22, %v3818_v39  ;;  %v3820_v44 = vpop.f32.mrb[46].mxu1  ;;  %v6116_v22 = vld [vmem:[%s8181_s5 + $0x130] sm:$0xff]   ;;  %v6117_v39 = vld [vmem:[%s8181_s5 + $0x138] sm:$0xff]  }
 0x38e   : > { %v3821_v3 = vpop.f32.mrb[47].mxu1 }
 0x38f   : > { %v6118_v3 = vld [vmem:[%s8183_s7] sm:$0xff]  }
 0x39b   : > { %v3456_v6 = vpop.f32.mrb[32].mxu0 }
 0x39c   : > { %v3458_v7 = vpop.f32.mrb[33].mxu0 }
 0x39d   : > { %v3493_v49 = vmax.f32 %v3456_v6, %v3458_v7  ;;  %v3460_v9 = vpop.f32.mrb[34].mxu0  ;;  %v6119_v6 = vld [vmem:[%s8183_s7 + $0x8] sm:$0xff]   ;;  %v6120_v7 = vld [vmem:[%s8183_s7 + $0x10] sm:$0xff]  }
 0x39e   : > { %v3462_v11 = vpop.f32.mrb[35].mxu0 }
 0x39f   : > { %v3838_v13 = vmax.f32 %v3493_v49, %v3833_v58  ;;  %v3494_v15 = vmax.f32 %v3460_v9, %v3462_v11  ;;  %v6107_v58 = vld [vmem:[%s8181_s5 + $0xb0] sm:$0xff]   ;;  %v6121_v49 = vld [vmem:[%s8183_s7 + $0x18] sm:$0xff]   ;;  %v6122_v9 = vld [vmem:[%s8183_s7 + $0x20] sm:$0xff]  }
 0x3a0   : > { %v6124_v11 = vld [vmem:[%s8183_s7 + $0x30] sm:$0xff]  }
 0x3a1   : > { %v3850_v17 = vadd.f32 %v5100_v10, %v3838_v13  ;;  %v3839_v18 = vmax.f32 %v3494_v15, %v3834_v34  ;;  %v6125_v13 = vld [vmem:[%s8183_s7 + $0x38] sm:$0xff]   ;;  %v6126_v15 = vld [vmem:[%s8185_s9] sm:$0xff]  }
 0x3a3   : > { %v3851_v19 = vadd.f32 %v5100_v10, %v3839_v18  ;;  %v3466_v16 = vpop.f32.mrb[36].mxu0  ;;  %v3855_v2 = vmax.f32 %v3850_v17, 0.0  ;;  %v6127_v17 = vld [vmem:[%s8185_s9 + $0x8] sm:$0xff]   ;;  %v6128_v18 = vld [vmem:[%s8185_s9 + $0x10] sm:$0xff]  }
 0x3a4   : > { %v3468_v20 = vpop.f32.mrb[37].mxu0 }
 0x3a5   : > { %v3856_v23 = vmax.f32 %v3851_v19, 0.0  ;;  %v3495_v27 = vmax.f32 %v3466_v16, %v3468_v20  ;;  %v3470_v28 = vpop.f32.mrb[38].mxu0  ;;  %v6129_v19 = vld [vmem:[%s8185_s9 + $0x18] sm:$0xff]   ;;  %v6130_v16 = vld [vmem:[%s8185_s9 + $0x20] sm:$0xff]   ;;  %v6131_v20 = vld [vmem:[%s8185_s9 + $0x28] sm:$0xff]  }
 0x3a6   : > { %v3472_v51 = vpop.f32.mrb[39].mxu0 }
 0x3a7   : > { %v3860_v12 = vpack.c.bf16 %v3856_v23, %v3855_v2  ;;  %v3840_v38 = vmax.f32 %v3495_v27, %v3835_v63  ;;  %v3496_v45 = vmax.f32 %v3470_v28, %v3472_v51  ;;  %v6112_v63 = vld [vmem:[%s8181_s5 + $0x110] sm:$0xff]  }
 0x3a9   : > { %v3897_v41 = vrot.slane %v3860_v12, 4  ;;  %v3852_v21 = vadd.f32 %v5100_v10, %v3840_v38  ;;  %v3841_v55 = vmax.f32 %v3496_v45, %v3836_v36  ;;  %5329 = vmatmul.mubr.bf16.vlgmr.msra.gmra.mrb[48].mxu1 %v3860_v12  ;;  %v6115_v36 = vld [vmem:[%s8181_s5 + $0x128] sm:$0xff]  }
 0x3aa   : > { %5353 = vmatpush3.bf16.msra.mxu1 %v6094_v42  ;;  %5368 = vmatprep.mubr.msk.bf16.mxu1 %vm6227_vm2, %v6226_v61 }
 0x3ab   : > { %v3853_v46 = vadd.f32 %v5100_v10, %v3841_v55  ;;  %v3476_v43 = vpop.f32.mrb[40].mxu0  ;;  %5309 = vmatmul.mubr.bf16.vlgmr.msra.gmra.mrb[44].mxu0 %v3897_v41  ;;  %5354 = vmatprep.subr.bf16.mxu1 %v6226_v61  ;;  %v3857_v53 = vmax.f32 %v3852_v21, 0.0 }
 0x3ac   : > { %5333 = vmatpush3.bf16.msra.mxu0 %v6095_v52  ;;  %v3478_v24 = vpop.f32.mrb[41].mxu0  ;;  %5348 = vmatprep.mubr.msk.bf16.mxu0 %vm6227_vm2, %v6226_v61 }
 0x3ad   : > { %v3858_v8 = vmax.f32 %v3853_v46, 0.0  ;;  %v3497_v50 = vmax.f32 %v3476_v43, %v3478_v24  ;;  %v3480_v29 = vpop.f32.mrb[42].mxu0  ;;  %5334 = vmatprep.subr.bf16.mxu0 %v6226_v61 }
 0x3ae   : > { %5355 = vmatpush3.bf16.msra.mxu1 %v6096_v57  ;;  %v3481_v31 = vpop.f32.mrb[43].mxu0 }
 0x3af   : > { %v3861_v5 = vpack.c.bf16 %v3858_v8, %v3857_v53  ;;  %v3842_v14 = vmax.f32 %v3497_v50, %v3837_v40  ;;  %5356 = vmatprep.subr.bf16.mxu1 %v6226_v61  ;;  %v5205_v50 = vld [vmem:[%s8182_s6] ss:$0 sm:$0xff] }
 0x3b0   : > { %5335 = vmatpush3.bf16.msra.mxu0 %v6097_v1 }
 0x3b1   : > { %v7974_v37 = vadd.f32 %v5100_v10, %v3842_v14  ;;  %5336 = vmatprep.subr.bf16.mxu0 %v6226_v61  ;;  %v4199_v34 = vrot.slane %v3861_v5, 4  ;;  %v6123_v10 = vld [vmem:[%s8183_s7 + $0x28] sm:$0xff]  }
 0x3b2   : > { %5357 = vmatpush3.bf16.msra.mxu1 %v6098_v4 }
 0x3b3   : > { %5358 = vmatprep.subr.bf16.mxu1 %v6226_v61  ;;  %v3859_v40 = vmax.f32 %v7974_v37, 0.0 }
 0x3b4   : > { %5337 = vmatpush3.bf16.msra.mxu0 %v6099_v25 }
 0x3b5   : > { %5338 = vmatprep.subr.bf16.mxu0 %v6226_v61  ;;  %v3862_v44 = vpack.c.bf16 %v3859_v40, %v3859_v40 }
 0x3b6   : > { %5359 = vmatpush3.bf16.msra.mxu1 %v6100_v26  ;;  %v6132_v26 = vld [vmem:[%s8185_s9 + $0x30] sm:$0xff]  }
 0x3b7   : > { %5360 = vmatprep.subr.bf16.mxu1 %v6226_v61 }
 0x3b8   : > { %5339 = vmatpush3.bf16.msra.mxu0 %v6101_v30  ;;  %v6133_v30 = vld [vmem:[%s8185_s9 + $0x38] sm:$0xff]  }
 0x3b9   : > { %5340 = vmatprep.subr.bf16.mxu0 %v6226_v61 }
 0x3ba   : > { %5361 = vmatpush3.bf16.msra.mxu1 %v6102_v32  ;;  %v5206_v32 = vld [vmem:[%s8184_s8] ss:$0 sm:$0xff] }
 0x3bb   : > { %5362 = vmatprep.subr.bf16.mxu1 %v6226_v61 }
 0x3bc   : > { %5341 = vmatpush3.bf16.msra.mxu0 %v6103_v48 }
 0x3bd   : > { %5342 = vmatprep.subr.bf16.mxu0 %v6226_v61 }
 0x3be   : > { %5363 = vmatpush3.bf16.msra.mxu1 %v6104_v33 }
 0x3bf   : > { %5364 = vmatprep.subr.bf16.mxu1 %v6226_v61 }
 0x3c0   : > { %5343 = vmatpush3.bf16.msra.mxu0 %v6105_v54 }
 0x3c1   : > { %5344 = vmatprep.subr.bf16.mxu0 %v6226_v61 }
 0x3c2   : > { %5365 = vmatpush3.bf16.msra.mxu1 %v6106_v56 }
 0x3c3   : > { %5366 = vmatprep.subr.bf16.mxu1 %v6226_v61 }
 0x3c4   : > { %5345 = vmatpush3.bf16.msra.mxu0 %v6107_v58 }
 0x3c5   : > { %5346 = vmatprep.subr.bf16.mxu0 %v6226_v61 }
 0x3c6   : > { %5367 = vmatpush3.bf16.msra.mxu1 %v6108_v59 }
 0x3c7   : > { %5392 = vmatprep.subr.bf16.mxu1 %v6226_v61 }
 0x3c8   : > { %5347 = vmatpush3.bf16.msra.mxu0 %v6109_v60 }
 0x3c9   : > { %5369 = vmatmul.mubr.bf16.vlgmr.msra.gmra.mrb[52].mxu1 %v4199_v34  ;;  %5372 = vmatprep.subr.bf16.mxu0 %v6226_v61 }
 0x3ca   : > { %5408 = vmatprep.mubr.msk.bf16.mxu1 %vm6227_vm2, %v6226_v61  ;;  %5393 = vmatpush3.bf16.msra.mxu1 %v6118_v3 }
 0x3cb   : > { %5349 = vmatmul.mubr.bf16.vlgmr.msra.gmra.mrb[48].mxu0 %v3861_v5  ;;  %5394 = vmatprep.subr.bf16.mxu1 %v6226_v61 }
 0x3cc   : > { %5373 = vmatpush3.bf16.msra.mxu0 %v6110_v62  ;;  %5388 = vmatprep.mubr.msk.bf16.mxu0 %vm6227_vm2, %v6226_v61 }
 0x3cd   : > { %5374 = vmatprep.subr.bf16.mxu0 %v6226_v61 }
 0x3ce   : > { %5395 = vmatpush3.bf16.msra.mxu1 %v6119_v6 }
 0x3cf   : > { %5396 = vmatprep.subr.bf16.mxu1 %v6226_v61 }
 0x3d0   : > { %5375 = vmatpush3.bf16.msra.mxu0 %v6111_v35 }
 0x3d1   : > { %5376 = vmatprep.subr.bf16.mxu0 %v6226_v61 }
 0x3d2   : > { %5397 = vmatpush3.bf16.msra.mxu1 %v6120_v7 }
 0x3d3   : > { %5398 = vmatprep.subr.bf16.mxu1 %v6226_v61 }
 0x3d4   : > { %5377 = vmatpush3.bf16.msra.mxu0 %v6112_v63 }
 0x3d5   : > { %5378 = vmatprep.subr.bf16.mxu0 %v6226_v61 }
 0x3d6   : > { %5399 = vmatpush3.bf16.msra.mxu1 %v6121_v49 }
 0x3d7   : > { %5400 = vmatprep.subr.bf16.mxu1 %v6226_v61 }
 0x3d8   : > { %5379 = vmatpush3.bf16.msra.mxu0 %v6113_v0 }
 0x3d9   : > { %5380 = vmatprep.subr.bf16.mxu0 %v6226_v61 }
 0x3da   : > { %5401 = vmatpush3.bf16.msra.mxu1 %v6122_v9 }
 0x3db   : > { %5402 = vmatprep.subr.bf16.mxu1 %v6226_v61 }
 0x3dc   : > { %5381 = vmatpush3.bf16.msra.mxu0 %v6114_v47 }
 0x3dd   : > { %5382 = vmatprep.subr.bf16.mxu0 %v6226_v61 }
 0x3de   : > { %5403 = vmatpush3.bf16.msra.mxu1 %v6123_v10 }
 0x3df   : > { %5404 = vmatprep.subr.bf16.mxu1 %v6226_v61 }
 0x3e0   : > { %5383 = vmatpush3.bf16.msra.mxu0 %v6115_v36 }
 0x3e1   : > { %5384 = vmatprep.subr.bf16.mxu0 %v6226_v61 }
 0x3e2   : > { %5405 = vmatpush3.bf16.msra.mxu1 %v6124_v11 }
 0x3e3   : > { %5406 = vmatprep.subr.bf16.mxu1 %v6226_v61 }
 0x3e4   : > { %5385 = vmatpush3.bf16.msra.mxu0 %v6116_v22 }
 0x3e5   : > { %5386 = vmatprep.subr.bf16.mxu0 %v6226_v61 }
 0x3e6   : > { %5407 = vmatpush3.bf16.msra.mxu1 %v6125_v13 }
 0x3e8   : > { %5387 = vmatpush3.bf16.msra.mxu0 %v6117_v39 }
 0x3e9   : > { %5412 = vmatprep.subr.bf16.mxu0 %v6226_v61 }
 0x3eb   : > { %5389 = vmatmul.mubr.bf16.vlgmr.msra.gmra.mrb[52].mxu0 %v3862_v44 }
 0x3ec   : > { %5428 = vmatprep.mubr.msk.bf16.mxu0 %vm6227_vm2, %v6226_v61  ;;  %5413 = vmatpush3.bf16.msra.mxu0 %v6126_v15 }
 0x3ed   : > { %5414 = vmatprep.subr.bf16.mxu0 %v6226_v61 }
 0x3f0   : > { %5415 = vmatpush3.bf16.msra.mxu0 %v6127_v17 }
 0x3f1   : > { %5416 = vmatprep.subr.bf16.mxu0 %v6226_v61 }
 0x3f4   : > { %5417 = vmatpush3.bf16.msra.mxu0 %v6128_v18 }
 0x3f5   : > { %5418 = vmatprep.subr.bf16.mxu0 %v6226_v61 }
 0x3f8   : > { %5419 = vmatpush3.bf16.msra.mxu0 %v6129_v19 }
 0x3f9   : > { %5420 = vmatprep.subr.bf16.mxu0 %v6226_v61 }
 0x3fc   : > { %5421 = vmatpush3.bf16.msra.mxu0 %v6130_v16 }
 0x3fd   : > { %5422 = vmatprep.subr.bf16.mxu0 %v6226_v61 }
 0x400   : > { %5423 = vmatpush3.bf16.msra.mxu0 %v6131_v20 }
 0x401   : > { %5424 = vmatprep.subr.bf16.mxu0 %v6226_v61 }
 0x404   : > { %5425 = vmatpush3.bf16.msra.mxu0 %v6132_v26 }
 0x405   : > { %5426 = vmatprep.subr.bf16.mxu0 %v6226_v61  ;;  %v5215_v61 = vld [vmem:[%s8186_s10] ss:$0 sm:$0xff] }
 0x408   : > { %5427 = vmatpush3.bf16.msra.mxu0 %v6133_v30 }
 0x47c   : > { %v4069_v2 = vpop.f32.mrb[48].mxu1 }
 0x47d   : > { %v5330_v23 = vpop.f32.mrb[49].mxu1 }
 0x47e   : > { %v3981_v27 = vpop.f32.mrb[44].mxu0  ;;  %v4072_v28 = vpop.f32.mrb[50].mxu1 }
 0x47f   : > { %v4070_v51 = vadd.f32 %v4069_v2, %v3981_v27  ;;  %v5310_v42 = vpop.f32.mrb[45].mxu0  ;;  %v5331_v12 = vpop.f32.mrb[51].mxu1 }
 0x480   : > { %v3984_v38 = vpop.f32.mrb[46].mxu0 }
 0x481   : > { %v5311_v45 = vpop.f32.mrb[47].mxu0 }
 0x49c   : > { %v4283_v52 = vpop.f32.mrb[52].mxu1 }
 0x49d   : > { %v5370_v41 = vpop.f32.mrb[53].mxu1 }
 0x49e   : > { %v4174_v21 = vpop.f32.mrb[48].mxu0  ;;  %v4286_v55 = vpop.f32.mrb[54].mxu1 }
 0x49f   : > { %v4180_v57 = vadd.f32 %v4174_v21, %v4070_v51  ;;  %v5350_v46 = vpop.f32.mrb[49].mxu0  ;;  %v5371_v43 = vpop.f32.mrb[55].mxu1 }
 0x4a0   : > { %v4177_v24 = vpop.f32.mrb[50].mxu0 }
 0x4a1   : > { %v5351_v1 = vpop.f32.mrb[51].mxu0  ;;  %v4289_v53 = vadd.f32 %v4283_v52, %v4180_v57 }
 0x4be   : > { %v4389_v8 = vpop.f32.mrb[52].mxu0 }
 0x4bf   : > { %v4395_v29 = vadd.f32 %v4389_v8, %v4289_v53  ;;  %v5390_v31 = vpop.f32.mrb[53].mxu0 }
 0x4c0   : > { %v4392_v4 = vpop.f32.mrb[54].mxu0 }
 0x4c1   : > { %v4403_v5 = vadd.f32 %v5205_v50, %v4395_v29  ;;  %v5391_v14 = vpop.f32.mrb[55].mxu0 }
 0x4c3   : > { %v4404_v25 = vmax.f32 %v4403_v5, 0.0 }
 0x4c5   : > { %v4405_v37 = vpack.c.bf16 %v4404_v25, %v4404_v25 }
 0x4c7   : > { %5409 = vmatmul.mubr.bf16.vlgmr.msra.gmra.mrb[56].mxu1 %v4405_v37 }
 0x59a   : > { %v4511_v48 = vpop.f32.mrb[56].mxu1 }
 0x59b   : > { %v4512_v33 = vadd.f32 %v5206_v32, %v4511_v48  ;;  %v5410_v54 = vpop.f32.mrb[57].mxu1 }
 0x59c   : > { %v4514_v56 = vpop.f32.mrb[58].mxu1 }
 0x59d   : > { %v4517_v58 = vmax.f32 %v4512_v33, 0.0  ;;  %v5411_v59 = vpop.f32.mrb[59].mxu1 }
 0x59f   : > { %v4518_v60 = vpack.c.bf16 %v4517_v58, %v4517_v58 }
 0x5a1   : > { %5429 = vmatmul.mubr.bf16.vlgmr.msra.gmra.mrb[56].mxu0 %v4518_v60 }
 0x674   : > { %v4624_v34 = vpop.f32.mrb[56].mxu0 }
 0x675   : > { %v4625_v62 = vadd.f32 %v5215_v61, %v4624_v34  ;;  %v5430_v35 = vpop.f32.mrb[57].mxu0 }
 0x676   : > { %v4627_v63 = vpop.f32.mrb[58].mxu0 }
 0x677   : > { %4630 = vst [vmem:[%s379_s15] sm:$0xff] %v4625_v62  ;;  %v5431_v0 = vpop.f32.mrb[59].mxu0 }
 0x678   : > { %6174 = shalt.err (!%p6171_p3)
}
 0x679   : > { %s6175_s30 = scalar_lea.hbm %s8134_s29, 128  ;;  %s6179_s25 = scalar_lea.hbm %s8187_s11, 256 }
 0x67a   : > { %p6176_p4 = scmp.ne.s32.totalorder %s8134_s29, %s6175_s30  ;;  %p6180_p9 = scmp.lt.u32.totalorder %s8134_s29, %s8187_s11 }
 0x67b   : > { %p6181_p10 = scmp.lt.u32.totalorder %s6179_s25, %s6175_s30  ;;  %p6183_p12 = scmp.lt.u32.totalorder %s6175_s30, %s8134_s29 }
 0x67c   : > { %p6177_p7 = pnand %p6176_p4, %p6327_p5 }
 0x67d   : > { %p6182_p11 = por %p6181_p10, %p6180_p9 }
 0x67e   : > { %p6178_p8 = pneg %p6177_p7 }
 0x67f   : > { %p6184_p13 = por %p6183_p12, %p6182_p11 }
 0x681   : > { %p6185_p0 = pnand %p6184_p13, %p6178_p8 }
 0x683   : > { %6188 = shalt.err (!%p6185_p0)
}
 0x684   : > { %5794 = dma.vmem_to_hbm [thread:$0]  (%p6327_p5), %s8136_s22, 128, %s8134_s29, %s4632_s24  }
 0x685 PF: > { %p5800_p1 = scmp.ge.s32.totalorder %s6223_s20, 2  ;;  %s4657_s21 = sand.u32 1, %s6211_s17  }
 0x686   : > { %s4658_s16 = scalar_lea.sflag [#allocation3], %s4657_s21 }
 0x687   : > { %p5797_p2 = pnand %p5800_p1, %p6331_p6 }
 0x689   : > { %6206 = dma.done.wait (!%p5797_p2), %s4658_s16, 128  }
 0x68a   : > { %6208 = vsyncadd (!%p5797_p2), %s4658_s16, 4294967168  ;;  %p21_p3 = scmp.ge.s32.totalorder %s6314_s23, 4   ;;  %s8259_s17 = smov %s6215_s18 }
 0x68b   : > { %s8260_s18 = smov %s6219_s19  ;;  %s8261_s19 = smov %s6325_s26 }
 0x68c   : > { %s8262_s20 = smov %s6314_s23  ;;  %23 = sbr.rel (!%p21_p3) target bundleno = 3 (0x3), region = 114 }
 0x693   :  { %4663 = vsyncpa [#allocation3], 1 }
 0x694   :  { %4665 = vsyncpa [#allocation3 + $0x1], 1 }

</bundles_post_ra>
